<compile_context>
chip_gen: v7x
topology: tpu7x:2x2x1
jax: 0.10.0
libtpu: 0.0.40
codegen_flags: <defaults>
</compile_context>

<pallas_src>
import math

import jax
import jax.numpy as jnp
from jax.experimental import pallas as pl
from jax.experimental.pallas import tpu as pltpu

# ----------------------- config (Falcon-style, small) -----------------------
SEQ = 128                                 # token dim >= 128 fills MXU rows
HIDDEN = 128
NUM_Q_HEADS = 4
NUM_KV_HEADS = 1
HEAD_DIM = HIDDEN // NUM_Q_HEADS          # 32
FFN_HIDDEN = 4 * HIDDEN                   # 512
LN_EPS = 1e-5
QKV_OUT = (NUM_Q_HEADS + 2 * NUM_KV_HEADS) * HEAD_DIM


# --------------------------------- kernel -----------------------------------
def falcon_layer_kernel(
    x_ref, cos_q_ref, sin_q_ref, cos_k_ref, sin_k_ref, rot_ref,
    ln_attn_w_ref, ln_attn_b_ref, ln_mlp_w_ref, ln_mlp_b_ref,
    wq_ref, wk_ref, wv_ref, wdense_ref, w_h4h_ref, w_4hh_ref,
    out_ref,
):
    f32 = jnp.float32
    bf16 = jnp.bfloat16

    x = x_ref[...]                                   # [S, H] f32
    S = x.shape[0]

    # ----- shared LayerNorm statistics (one reduce + one rsqrt for both LNs)
    mu = jnp.mean(x, axis=-1, keepdims=True)
    xc = x - mu
    var = jnp.mean(xc * xc, axis=-1, keepdims=True)
    xn = xc * jax.lax.rsqrt(var + LN_EPS)            # normalized once
    attn_ln = xn * ln_attn_w_ref[...] + ln_attn_b_ref[...]
    mlp_ln = xn * ln_mlp_w_ref[...] + ln_mlp_b_ref[...]
    attn_ln_bf = attn_ln.astype(bf16)

    # ----- Q/K/V projections (bf16 operands, f32 accumulation) -----
    # Per-head Q weights are pre-stacked as [H, HIDDEN, D] on the wrapper, so
    # the kernel never lane-slices a fused QKV output; the head stack is a
    # sublane-only concatenation of aligned [S, D] blocks.
    q_heads = [
        jnp.dot(attn_ln_bf, wq_ref[h], preferred_element_type=f32)
        for h in range(NUM_Q_HEADS)
    ]
    q_stk = jnp.concatenate(q_heads, axis=0)         # [H*S, D] f32
    k = jnp.dot(attn_ln_bf, wk_ref[...], preferred_element_type=f32)  # [S, D]
    v = jnp.dot(attn_ln_bf, wv_ref[...], preferred_element_type=f32)  # [S, D]

    # ----- RoPE on full stacked blocks.  rotate_half == signed permutation,
    # done as a tiny bf16 [D,D] matmul (rot is +/-1/0 so bf16 is exact; keeps
    # the shuffle off the XLU and off the f32 MXU path).
    rot = rot_ref[...]                               # [D, D] bf16

    def rope(t, cos_t, sin_t):
        t_half = jnp.dot(t.astype(bf16), rot, preferred_element_type=f32)
        return t * cos_t + t_half * sin_t

    # cos_q/sin_q already carry the 1/sqrt(D) softmax scale (folded on the
    # wrapper); cos_k/sin_k are unscaled.
    q_rope = rope(q_stk, cos_q_ref[...], sin_q_ref[...])    # [H*S, D]
    k_rope = rope(k, cos_k_ref[...], sin_k_ref[...])        # [S, D]

    # ----- batched attention: one QK^T, one PV for all heads -----
    scores = jax.lax.dot_general(                    # contract head_dim dims
        q_rope.astype(bf16), k_rope.astype(bf16),
        dimension_numbers=(((1,), (1,)), ((), ())),
        preferred_element_type=f32)                  # [H*S, S] f32 (pre-scaled)

    # Causal mask in the head-stacked layout: row-within-head = iota & (S-1)
    # (S is a power of two) — single 2-D iota, no 3-D iota/reshape relayout.
    row = jax.lax.broadcasted_iota(jnp.int32, (NUM_Q_HEADS * S, S), 0) & (S - 1)
    col = jax.lax.broadcasted_iota(jnp.int32, (NUM_Q_HEADS * S, S), 1)
    scores = jnp.where(row >= col, scores, -1e30)    # mask + exp stay in f32

    m = jnp.max(scores, axis=-1, keepdims=True)
    p = jnp.exp(scores - m)                          # [H*S, S] f32
    denom = jnp.sum(p, axis=-1, keepdims=True)       # [H*S, 1] f32
    # Deferred normalization: PV first (bf16 operands), then one multiply of
    # the [H*S, D] context by the EUP reciprocal (4x fewer VALU mults than
    # normalizing p, and p's live footprint is halved by the bf16 cast).
    ctx = jnp.dot(p.astype(bf16), v.astype(bf16),
                  preferred_element_type=f32)        # [H*S, D] f32
    ctx = (ctx * pl.reciprocal(denom, approx=True)).astype(bf16)

    # ----- dense projection: head-concat folded into accumulated per-head
    # matmuls (sublane slices of ctx / leading-dim slices of W_dense are free,
    # no lane concat).  First head assigns, rest accumulate — no zeros init.
    attn_output = None
    for h in range(NUM_Q_HEADS):
        part = jnp.dot(ctx[h * S:(h + 1) * S, :], wdense_ref[h],
                       preferred_element_type=f32)   # [S, HIDDEN]
        attn_output = part if attn_output is None else attn_output + part

    # ----- MLP branch -----
    g = jnp.dot(mlp_ln.astype(bf16), w_h4h_ref[...],
                preferred_element_type=f32)
    # tanh GELU routes the transcendental to the EUP slot (exact-erf parity
    # with PyTorch nn.GELU traded for VALU relief; |diff| « 1e-2 here).
    act = jax.nn.gelu(g, approximate=True)
    mlp_output = jnp.dot(act.astype(bf16), w_4hh_ref[...],
                         preferred_element_type=f32)

    # parallel-attn residual combine: mlp + attn + residual
    out_ref[...] = mlp_output + attn_output + x


# -------------------------------- wrapper ------------------------------------
def make_rot_matrix(dim):
    """[dim, dim] signed permutation R such that t @ R == rotate_half(t)."""
    half = dim // 2
    i = jnp.arange(dim)[:, None]      # input feature index
    j = jnp.arange(dim)[None, :]      # output feature index
    r = jnp.where((j < half) & (i == j + half), -1.0, 0.0)
    r = r + jnp.where((j >= half) & (i == j - half), 1.0, 0.0)
    return r.astype(jnp.float32)


def falcon_decoder_layer(x, cos, sin, params):
    assert SEQ & (SEQ - 1) == 0, "in-kernel causal mask uses iota & (S-1)"

    # Fold the 1/sqrt(head_dim) softmax scale into Q's cos/sin (RoPE is linear
    # in q, so this is exact); K keeps the unscaled cos/sin.
    scale = 1.0 / math.sqrt(HEAD_DIM)
    cos_q = jnp.tile(cos * scale, (NUM_Q_HEADS, 1))          # [H*S, D]
    sin_q = jnp.tile(sin * scale, (NUM_Q_HEADS, 1))
    rot = make_rot_matrix(HEAD_DIM).astype(jnp.bfloat16)     # +/-1/0, exact

    # Restructure the fused QKV weight: per-head Q weights stacked along a
    # leading (sublane) axis, separate lane-clean K and V weights.
    w_qkv = params["w_qkv"]                                  # [HIDDEN, QKV_OUT]
    k_off = NUM_Q_HEADS * HEAD_DIM
    v_off = k_off + NUM_KV_HEADS * HEAD_DIM
    w_q = jnp.stack(
        [w_qkv[:, h * HEAD_DIM:(h + 1) * HEAD_DIM] for h in range(NUM_Q_HEADS)],
        axis=0)                                              # [H, HIDDEN, D]
    w_k = w_qkv[:, k_off:k_off + HEAD_DIM]                   # [HIDDEN, D]
    w_v = w_qkv[:, v_off:v_off + HEAD_DIM]                   # [HIDDEN, D]
    w_dense = params["w_dense"].reshape(NUM_Q_HEADS, HEAD_DIM, HIDDEN)

    vmem_spec = pl.BlockSpec(memory_space=pltpu.MemorySpace.VMEM)
    inputs = (
        x, cos_q, sin_q, cos, sin, rot,
        params["ln_attn_w"], params["ln_attn_b"],
        params["ln_mlp_w"], params["ln_mlp_b"],
        w_q, w_k, w_v, w_dense,
        params["w_h_to_4h"], params["w_4h_to_h"],
    )

    flops = (
        2 * SEQ * HIDDEN * QKV_OUT                                  # q/k/v proj
        + 2 * (NUM_Q_HEADS + NUM_KV_HEADS) * SEQ * HEAD_DIM * HEAD_DIM  # rope
        + 2 * NUM_Q_HEADS * SEQ * SEQ * HEAD_DIM * 2                # qk^T + pv
        + 2 * SEQ * HIDDEN * HIDDEN                                 # dense
        + 2 * SEQ * HIDDEN * FFN_HIDDEN * 2                         # mlp
    )
    transcendentals = NUM_Q_HEADS * SEQ * SEQ + SEQ * FFN_HIDDEN + 2 * SEQ
    bytes_accessed = (sum(int(a.size) * a.dtype.itemsize for a in inputs)
                      + int(x.size) * x.dtype.itemsize)

    return pl.pallas_call(
        falcon_layer_kernel,
        out_shape=jax.ShapeDtypeStruct(x.shape, x.dtype),
        in_specs=[vmem_spec] * len(inputs),
        out_specs=vmem_spec,
        compiler_params=pltpu.CompilerParams(
            vmem_limit_bytes=16 * 1024 * 1024),      # working set is ~1 MiB
        cost_estimate=pl.CostEstimate(
            flops=int(flops),
            transcendentals=int(transcendentals),
            bytes_accessed=int(bytes_accessed)),
    )(*inputs)


# ------------------------ pure-JAX reference (check) -------------------------
def reference(x, cos, sin, p):
    bf16 = jnp.bfloat16

    def ln(v, w, b):
        mu = jnp.mean(v, -1, keepdims=True)
        var = jnp.mean((v - mu) ** 2, -1, keepdims=True)
        return (v - mu) * jax.lax.rsqrt(var + LN_EPS) * w + b

    attn_ln = ln(x, p["ln_attn_w"], p["ln_attn_b"])
    mlp_ln = ln(x, p["ln_mlp_w"], p["ln_mlp_b"])

    qkv = jnp.dot(attn_ln.astype(bf16), p["w_qkv"],
                  preferred_element_type=jnp.float32)
    half = HEAD_DIM // 2

    def rope(t):
        rot = jnp.concatenate([-t[:, half:], t[:, :half]], -1)
        return t * cos + rot * sin

    S = x.shape[0]
    causal = jnp.tril(jnp.ones((S, S), bool))
    k_off = NUM_Q_HEADS * HEAD_DIM
    v_off = k_off + NUM_KV_HEADS * HEAD_DIM
    group = NUM_Q_HEADS // NUM_KV_HEADS
    heads = []
    for h in range(NUM_Q_HEADS):
        kvh = h // group
        q_h = rope(qkv[:, h * HEAD_DIM:(h + 1) * HEAD_DIM])
        k_h = rope(qkv[:, k_off + kvh * HEAD_DIM:k_off + (kvh + 1) * HEAD_DIM])
        v_h = qkv[:, v_off + kvh * HEAD_DIM:v_off + (kvh + 1) * HEAD_DIM]
        s = jnp.dot(q_h.astype(bf16), k_h.astype(bf16).T,
                    preferred_element_type=jnp.float32) / math.sqrt(HEAD_DIM)
        s = jnp.where(causal, s, -1e30)
        pr = jax.nn.softmax(s, axis=-1)
        heads.append(jnp.dot(pr.astype(bf16), v_h.astype(bf16),
                             preferred_element_type=jnp.float32))
    attn_output = jnp.dot(jnp.concatenate(heads, -1).astype(bf16),
                          p["w_dense"], preferred_element_type=jnp.float32)

    g = jnp.dot(mlp_ln.astype(bf16), p["w_h_to_4h"],
                preferred_element_type=jnp.float32)
    mlp_output = jnp.dot(jax.nn.gelu(g, approximate=False).astype(bf16),
                         p["w_4h_to_h"], preferred_element_type=jnp.float32)
    return mlp_output + attn_output + x


# ---------------------------------- main -------------------------------------
def make_params(key):
    ks = jax.random.split(key, 8)
    std = 0.02
    bf16 = jnp.bfloat16
    return {
        "ln_attn_w": 1.0 + 0.1 * jax.random.normal(ks[0], (1, HIDDEN), jnp.float32),
        "ln_attn_b": 0.01 * jax.random.normal(ks[1], (1, HIDDEN), jnp.float32),
        "ln_mlp_w": 1.0 + 0.1 * jax.random.normal(ks[2], (1, HIDDEN), jnp.float32),
        "ln_mlp_b": 0.01 * jax.random.normal(ks[3], (1, HIDDEN), jnp.float32),
        "w_qkv": (std * jax.random.normal(ks[4], (HIDDEN, QKV_OUT), jnp.float32)).astype(bf16),
        "w_dense": (std * jax.random.normal(ks[5], (HIDDEN, HIDDEN), jnp.float32)).astype(bf16),
        "w_h_to_4h": (std * jax.random.normal(ks[6], (HIDDEN, FFN_HIDDEN), jnp.float32)).astype(bf16),
        "w_4h_to_h": (std * jax.random.normal(ks[7], (FFN_HIDDEN, HIDDEN), jnp.float32)).astype(bf16),
    }


def make_rope(seq, dim):
    inv_freq = 1.0 / (10000.0 ** (jnp.arange(0, dim, 2, dtype=jnp.float32) / dim))
    pos = jnp.arange(seq, dtype=jnp.float32)
    freqs = pos[:, None] * inv_freq[None, :]          # [S, dim/2]
    emb = jnp.concatenate([freqs, freqs], axis=-1)    # [S, dim]
    return jnp.cos(emb), jnp.sin(emb)


if __name__ == "__main__":
    key = jax.random.PRNGKey(0)
    k_x, k_p = jax.random.split(key)

    x = jax.random.normal(k_x, (SEQ, HIDDEN), jnp.float32)
    cos, sin = make_rope(SEQ, HEAD_DIM)
    params = make_params(k_p)

    out = falcon_decoder_layer(x, cos, sin, params)
    out = jax.block_until_ready(out)

    ref = reference(x, cos, sin, params)
    assert out.shape == (SEQ, HIDDEN)
    assert jnp.allclose(out, ref, rtol=1e-2, atol=1e-2), (
        float(jnp.max(jnp.abs(out - ref))))

    print("KERNEL_OK")
</pallas_src>

<mosaic_0001>
module attributes {stable_mosaic.version = 11 : i64} {
  func.func @falcon_layer_kernel(%arg0: memref<128x128xf32, #tpu.memory_space<vmem>>, %arg1: memref<512x32xf32, #tpu.memory_space<vmem>>, %arg2: memref<512x32xf32, #tpu.memory_space<vmem>>, %arg3: memref<128x32xf32, #tpu.memory_space<vmem>>, %arg4: memref<128x32xf32, #tpu.memory_space<vmem>>, %arg5: memref<32x32xbf16, #tpu.memory_space<vmem>>, %arg6: memref<1x128xf32, #tpu.memory_space<vmem>>, %arg7: memref<1x128xf32, #tpu.memory_space<vmem>>, %arg8: memref<1x128xf32, #tpu.memory_space<vmem>>, %arg9: memref<1x128xf32, #tpu.memory_space<vmem>>, %arg10: memref<4x128x32xbf16, #tpu.memory_space<vmem>>, %arg11: memref<128x32xbf16, #tpu.memory_space<vmem>>, %arg12: memref<128x32xbf16, #tpu.memory_space<vmem>>, %arg13: memref<4x32x128xbf16, #tpu.memory_space<vmem>>, %arg14: memref<128x512xbf16, #tpu.memory_space<vmem>>, %arg15: memref<512x128xbf16, #tpu.memory_space<vmem>>, %arg16: memref<128x128xf32, #tpu.memory_space<vmem>>) attributes {dimension_semantics = [], scalar_prefetch = 0 : i64, scratch_operands = 0 : i64, tpu.core_type = #tpu.core_type<tc>} {
    %c0 = arith.constant 0 : index
    %c0_0 = arith.constant 0 : index
    %0 = vector.load %arg0[%c0, %c0_0] : memref<128x128xf32, #tpu.memory_space<vmem>>, vector<128x128xf32>
    %cst = arith.constant dense<0.000000e+00> : vector<128xf32>
    %1 = vector.multi_reduction <add>, %0, %cst [1] : vector<128x128xf32> to vector<128xf32>
    %2 = vector.shape_cast %1 : vector<128xf32> to vector<128x1xf32>
    %cst_1 = arith.constant 1.280000e+02 : f32
    %3 = vector.broadcast %cst_1 : f32 to vector<128x1xf32>
    %4 = arith.divf %2, %3 : vector<128x1xf32>
    %5 = vector.broadcast %4 : vector<128x1xf32> to vector<128x128xf32>
    %6 = arith.subf %0, %5 : vector<128x128xf32>
    %7 = arith.mulf %6, %6 : vector<128x128xf32>
    %cst_2 = arith.constant dense<0.000000e+00> : vector<128xf32>
    %8 = vector.multi_reduction <add>, %7, %cst_2 [1] : vector<128x128xf32> to vector<128xf32>
    %9 = vector.shape_cast %8 : vector<128xf32> to vector<128x1xf32>
    %cst_3 = arith.constant 1.280000e+02 : f32
    %10 = vector.broadcast %cst_3 : f32 to vector<128x1xf32>
    %11 = arith.divf %9, %10 : vector<128x1xf32>
    %cst_4 = arith.constant 9.99999974E-6 : f32
    %12 = vector.broadcast %cst_4 : f32 to vector<128x1xf32>
    %13 = arith.addf %11, %12 : vector<128x1xf32>
    %14 = math.rsqrt %13 : vector<128x1xf32>
    %15 = vector.broadcast %14 : vector<128x1xf32> to vector<128x128xf32>
    %16 = arith.mulf %6, %15 : vector<128x128xf32>
    %c0_5 = arith.constant 0 : index
    %c0_6 = arith.constant 0 : index
    %17 = vector.load %arg6[%c0_5, %c0_6] : memref<1x128xf32, #tpu.memory_space<vmem>>, vector<1x128xf32>
    %18 = vector.broadcast %17 : vector<1x128xf32> to vector<128x128xf32>
    %19 = arith.mulf %16, %18 : vector<128x128xf32>
    %c0_7 = arith.constant 0 : index
    %c0_8 = arith.constant 0 : index
    %20 = vector.load %arg7[%c0_7, %c0_8] : memref<1x128xf32, #tpu.memory_space<vmem>>, vector<1x128xf32>
    %21 = vector.broadcast %20 : vector<1x128xf32> to vector<128x128xf32>
    %22 = arith.addf %19, %21 : vector<128x128xf32>
    %c0_9 = arith.constant 0 : index
    %c0_10 = arith.constant 0 : index
    %23 = vector.load %arg8[%c0_9, %c0_10] : memref<1x128xf32, #tpu.memory_space<vmem>>, vector<1x128xf32>
    %24 = vector.broadcast %23 : vector<1x128xf32> to vector<128x128xf32>
    %25 = arith.mulf %16, %24 : vector<128x128xf32>
    %c0_11 = arith.constant 0 : index
    %c0_12 = arith.constant 0 : index
    %26 = vector.load %arg9[%c0_11, %c0_12] : memref<1x128xf32, #tpu.memory_space<vmem>>, vector<1x128xf32>
    %27 = vector.broadcast %26 : vector<1x128xf32> to vector<128x128xf32>
    %28 = arith.addf %25, %27 : vector<128x128xf32>
    %29 = arith.truncf %22 : vector<128x128xf32> to vector<128x128xbf16>
    %c0_13 = arith.constant 0 : index
    %c0_14 = arith.constant 0 : index
    %c0_15 = arith.constant 0 : index
    %30 = vector.load %arg10[%c0_13, %c0_14, %c0_15] : memref<4x128x32xbf16, #tpu.memory_space<vmem>>, vector<1x128x32xbf16>
    %31 = vector.shape_cast %30 : vector<1x128x32xbf16> to vector<128x32xbf16>
    %cst_16 = arith.constant dense<0.000000e+00> : vector<128x32xf32>
    %32 = tpu.matmul %29, %31, %cst_16 {dimension_numbers = #tpu.dot_dimension_numbers<[1], [0], [0], [1], [0, 0, 1, 1], [], []>} : vector<128x128xbf16>, vector<128x32xbf16>, vector<128x32xf32> -> vector<128x32xf32>
    %c1 = arith.constant 1 : index
    %c0_17 = arith.constant 0 : index
    %c0_18 = arith.constant 0 : index
    %33 = vector.load %arg10[%c1, %c0_17, %c0_18] : memref<4x128x32xbf16, #tpu.memory_space<vmem>>, vector<1x128x32xbf16>
    %34 = vector.shape_cast %33 : vector<1x128x32xbf16> to vector<128x32xbf16>
    %cst_19 = arith.constant dense<0.000000e+00> : vector<128x32xf32>
    %35 = tpu.matmul %29, %34, %cst_19 {dimension_numbers = #tpu.dot_dimension_numbers<[1], [0], [0], [1], [0, 0, 1, 1], [], []>} : vector<128x128xbf16>, vector<128x32xbf16>, vector<128x32xf32> -> vector<128x32xf32>
    %c2 = arith.constant 2 : index
    %c0_20 = arith.constant 0 : index
    %c0_21 = arith.constant 0 : index
    %36 = vector.load %arg10[%c2, %c0_20, %c0_21] : memref<4x128x32xbf16, #tpu.memory_space<vmem>>, vector<1x128x32xbf16>
    %37 = vector.shape_cast %36 : vector<1x128x32xbf16> to vector<128x32xbf16>
    %cst_22 = arith.constant dense<0.000000e+00> : vector<128x32xf32>
    %38 = tpu.matmul %29, %37, %cst_22 {dimension_numbers = #tpu.dot_dimension_numbers<[1], [0], [0], [1], [0, 0, 1, 1], [], []>} : vector<128x128xbf16>, vector<128x32xbf16>, vector<128x32xf32> -> vector<128x32xf32>
    %c3 = arith.constant 3 : index
    %c0_23 = arith.constant 0 : index
    %c0_24 = arith.constant 0 : index
    %39 = vector.load %arg10[%c3, %c0_23, %c0_24] : memref<4x128x32xbf16, #tpu.memory_space<vmem>>, vector<1x128x32xbf16>
    %40 = vector.shape_cast %39 : vector<1x128x32xbf16> to vector<128x32xbf16>
    %cst_25 = arith.constant dense<0.000000e+00> : vector<128x32xf32>
    %41 = tpu.matmul %29, %40, %cst_25 {dimension_numbers = #tpu.dot_dimension_numbers<[1], [0], [0], [1], [0, 0, 1, 1], [], []>} : vector<128x128xbf16>, vector<128x32xbf16>, vector<128x32xf32> -> vector<128x32xf32>
    %42 = tpu.concatenate %32, %35, %38, %41 in 0 : vector<128x32xf32>, vector<128x32xf32>, vector<128x32xf32>, vector<128x32xf32> -> vector<512x32xf32>
    %c0_26 = arith.constant 0 : index
    %c0_27 = arith.constant 0 : index
    %43 = vector.load %arg11[%c0_26, %c0_27] : memref<128x32xbf16, #tpu.memory_space<vmem>>, vector<128x32xbf16>
    %cst_28 = arith.constant dense<0.000000e+00> : vector<128x32xf32>
    %44 = tpu.matmul %29, %43, %cst_28 {dimension_numbers = #tpu.dot_dimension_numbers<[1], [0], [0], [1], [0, 0, 1, 1], [], []>} : vector<128x128xbf16>, vector<128x32xbf16>, vector<128x32xf32> -> vector<128x32xf32>
    %c0_29 = arith.constant 0 : index
    %c0_30 = arith.constant 0 : index
    %45 = vector.load %arg12[%c0_29, %c0_30] : memref<128x32xbf16, #tpu.memory_space<vmem>>, vector<128x32xbf16>
    %cst_31 = arith.constant dense<0.000000e+00> : vector<128x32xf32>
    %46 = tpu.matmul %29, %45, %cst_31 {dimension_numbers = #tpu.dot_dimension_numbers<[1], [0], [0], [1], [0, 0, 1, 1], [], []>} : vector<128x128xbf16>, vector<128x32xbf16>, vector<128x32xf32> -> vector<128x32xf32>
    %c0_32 = arith.constant 0 : index
    %c0_33 = arith.constant 0 : index
    %47 = vector.load %arg5[%c0_32, %c0_33] : memref<32x32xbf16, #tpu.memory_space<vmem>>, vector<32x32xbf16>
    %c0_34 = arith.constant 0 : index
    %c0_35 = arith.constant 0 : index
    %48 = vector.load %arg1[%c0_34, %c0_35] : memref<512x32xf32, #tpu.memory_space<vmem>>, vector<512x32xf32>
    %c0_36 = arith.constant 0 : index
    %c0_37 = arith.constant 0 : index
    %49 = vector.load %arg2[%c0_36, %c0_37] : memref<512x32xf32, #tpu.memory_space<vmem>>, vector<512x32xf32>
    %50 = arith.truncf %42 : vector<512x32xf32> to vector<512x32xbf16>
    %cst_38 = arith.constant dense<0.000000e+00> : vector<512x32xf32>
    %51 = tpu.matmul %50, %47, %cst_38 {dimension_numbers = #tpu.dot_dimension_numbers<[1], [0], [0], [1], [0, 0, 1, 1], [], []>} : vector<512x32xbf16>, vector<32x32xbf16>, vector<512x32xf32> -> vector<512x32xf32>
    %52 = arith.mulf %42, %48 : vector<512x32xf32>
    %53 = arith.mulf %51, %49 : vector<512x32xf32>
    %54 = arith.addf %52, %53 : vector<512x32xf32>
    %c0_39 = arith.constant 0 : index
    %c0_40 = arith.constant 0 : index
    %55 = vector.load %arg3[%c0_39, %c0_40] : memref<128x32xf32, #tpu.memory_space<vmem>>, vector<128x32xf32>
    %c0_41 = arith.constant 0 : index
    %c0_42 = arith.constant 0 : index
    %56 = vector.load %arg4[%c0_41, %c0_42] : memref<128x32xf32, #tpu.memory_space<vmem>>, vector<128x32xf32>
    %57 = arith.truncf %44 : vector<128x32xf32> to vector<128x32xbf16>
    %cst_43 = arith.constant dense<0.000000e+00> : vector<128x32xf32>
    %58 = tpu.matmul %57, %47, %cst_43 {dimension_numbers = #tpu.dot_dimension_numbers<[1], [0], [0], [1], [0, 0, 1, 1], [], []>} : vector<128x32xbf16>, vector<32x32xbf16>, vector<128x32xf32> -> vector<128x32xf32>
    %59 = arith.mulf %44, %55 : vector<128x32xf32>
    %60 = arith.mulf %58, %56 : vector<128x32xf32>
    %61 = arith.addf %59, %60 : vector<128x32xf32>
    %62 = arith.truncf %54 : vector<512x32xf32> to vector<512x32xbf16>
    %63 = arith.truncf %61 : vector<128x32xf32> to vector<128x32xbf16>
    %cst_44 = arith.constant dense<0.000000e+00> : vector<512x128xf32>
    %64 = tpu.matmul %62, %63, %cst_44 {dimension_numbers = #tpu.dot_dimension_numbers<[1], [1], [0], [0], [0, 0, 1, 0], [], []>} : vector<512x32xbf16>, vector<128x32xbf16>, vector<512x128xf32> -> vector<512x128xf32>
    %65 = tpu.iota {dimensions = array<i32: 0>} : vector<512x128xi32>
    %c127_i32 = arith.constant 127 : i32
    %66 = vector.broadcast %c127_i32 : i32 to vector<512x128xi32>
    %67 = arith.andi %65, %66 : vector<512x128xi32>
    %68 = tpu.iota {dimensions = array<i32: 1>} : vector<512x128xi32>
    %69 = arith.cmpi sge, %67, %68 : vector<512x128xi32>
    %cst_45 = arith.constant -1.000000e+30 : f32
    %70 = vector.broadcast %cst_45 : f32 to vector<512x128xf32>
    %71 = arith.select %69, %64, %70 : vector<512x128xi1>, vector<512x128xf32>
    %cst_46 = arith.constant dense<0xFF800000> : vector<512xf32>
    %72 = vector.multi_reduction <maximumf>, %71, %cst_46 [1] : vector<512x128xf32> to vector<512xf32>
    %73 = vector.shape_cast %72 : vector<512xf32> to vector<512x1xf32>
    %74 = vector.broadcast %73 : vector<512x1xf32> to vector<512x128xf32>
    %75 = arith.subf %71, %74 : vector<512x128xf32>
    %76 = math.exp %75 : vector<512x128xf32>
    %cst_47 = arith.constant dense<0.000000e+00> : vector<512xf32>
    %77 = vector.multi_reduction <add>, %76, %cst_47 [1] : vector<512x128xf32> to vector<512xf32>
    %78 = vector.shape_cast %77 : vector<512xf32> to vector<512x1xf32>
    %79 = arith.truncf %76 : vector<512x128xf32> to vector<512x128xbf16>
    %80 = arith.truncf %46 : vector<128x32xf32> to vector<128x32xbf16>
    %cst_48 = arith.constant dense<0.000000e+00> : vector<512x32xf32>
    %81 = tpu.matmul %79, %80, %cst_48 {dimension_numbers = #tpu.dot_dimension_numbers<[1], [0], [0], [1], [0, 0, 1, 1], [], []>} : vector<512x128xbf16>, vector<128x32xbf16>, vector<512x32xf32> -> vector<512x32xf32>
    %82 = tpu.reciprocal %78 {approx = true} : vector<512x1xf32> -> vector<512x1xf32>
    %83 = vector.broadcast %82 : vector<512x1xf32> to vector<512x32xf32>
    %84 = arith.mulf %81, %83 : vector<512x32xf32>
    %85 = arith.truncf %84 : vector<512x32xf32> to vector<512x32xbf16>
    %86 = vector.extract_strided_slice %85 {offsets = [0, 0], sizes = [128, 32], strides = [1, 1]} : vector<512x32xbf16> to vector<128x32xbf16>
    %c0_49 = arith.constant 0 : index
    %c0_50 = arith.constant 0 : index
    %c0_51 = arith.constant 0 : index
    %87 = vector.load %arg13[%c0_49, %c0_50, %c0_51] : memref<4x32x128xbf16, #tpu.memory_space<vmem>>, vector<1x32x128xbf16>
    %88 = vector.shape_cast %87 : vector<1x32x128xbf16> to vector<32x128xbf16>
    %cst_52 = arith.constant dense<0.000000e+00> : vector<128x128xf32>
    %89 = tpu.matmul %86, %88, %cst_52 {dimension_numbers = #tpu.dot_dimension_numbers<[1], [0], [0], [1], [0, 0, 1, 1], [], []>} : vector<128x32xbf16>, vector<32x128xbf16>, vector<128x128xf32> -> vector<128x128xf32>
    %90 = vector.extract_strided_slice %85 {offsets = [128, 0], sizes = [128, 32], strides = [1, 1]} : vector<512x32xbf16> to vector<128x32xbf16>
    %c1_53 = arith.constant 1 : index
    %c0_54 = arith.constant 0 : index
    %c0_55 = arith.constant 0 : index
    %91 = vector.load %arg13[%c1_53, %c0_54, %c0_55] : memref<4x32x128xbf16, #tpu.memory_space<vmem>>, vector<1x32x128xbf16>
    %92 = vector.shape_cast %91 : vector<1x32x128xbf16> to vector<32x128xbf16>
    %cst_56 = arith.constant dense<0.000000e+00> : vector<128x128xf32>
    %93 = tpu.matmul %90, %92, %cst_56 {dimension_numbers = #tpu.dot_dimension_numbers<[1], [0], [0], [1], [0, 0, 1, 1], [], []>} : vector<128x32xbf16>, vector<32x128xbf16>, vector<128x128xf32> -> vector<128x128xf32>
    %94 = arith.addf %89, %93 : vector<128x128xf32>
    %95 = vector.extract_strided_slice %85 {offsets = [256, 0], sizes = [128, 32], strides = [1, 1]} : vector<512x32xbf16> to vector<128x32xbf16>
    %c2_57 = arith.constant 2 : index
    %c0_58 = arith.constant 0 : index
    %c0_59 = arith.constant 0 : index
    %96 = vector.load %arg13[%c2_57, %c0_58, %c0_59] : memref<4x32x128xbf16, #tpu.memory_space<vmem>>, vector<1x32x128xbf16>
    %97 = vector.shape_cast %96 : vector<1x32x128xbf16> to vector<32x128xbf16>
    %cst_60 = arith.constant dense<0.000000e+00> : vector<128x128xf32>
    %98 = tpu.matmul %95, %97, %cst_60 {dimension_numbers = #tpu.dot_dimension_numbers<[1], [0], [0], [1], [0, 0, 1, 1], [], []>} : vector<128x32xbf16>, vector<32x128xbf16>, vector<128x128xf32> -> vector<128x128xf32>
    %99 = arith.addf %94, %98 : vector<128x128xf32>
    %100 = vector.extract_strided_slice %85 {offsets = [384, 0], sizes = [128, 32], strides = [1, 1]} : vector<512x32xbf16> to vector<128x32xbf16>
    %c3_61 = arith.constant 3 : index
    %c0_62 = arith.constant 0 : index
    %c0_63 = arith.constant 0 : index
    %101 = vector.load %arg13[%c3_61, %c0_62, %c0_63] : memref<4x32x128xbf16, #tpu.memory_space<vmem>>, vector<1x32x128xbf16>
    %102 = vector.shape_cast %101 : vector<1x32x128xbf16> to vector<32x128xbf16>
    %cst_64 = arith.constant dense<0.000000e+00> : vector<128x128xf32>
    %103 = tpu.matmul %100, %102, %cst_64 {dimension_numbers = #tpu.dot_dimension_numbers<[1], [0], [0], [1], [0, 0, 1, 1], [], []>} : vector<128x32xbf16>, vector<32x128xbf16>, vector<128x128xf32> -> vector<128x128xf32>
    %104 = arith.addf %99, %103 : vector<128x128xf32>
    %105 = arith.truncf %28 : vector<128x128xf32> to vector<128x128xbf16>
    %c0_65 = arith.constant 0 : index
    %c0_66 = arith.constant 0 : index
    %106 = vector.load %arg14[%c0_65, %c0_66] : memref<128x512xbf16, #tpu.memory_space<vmem>>, vector<128x512xbf16>
    %cst_67 = arith.constant dense<0.000000e+00> : vector<128x512xf32>
    %107 = tpu.matmul %105, %106, %cst_67 {dimension_numbers = #tpu.dot_dimension_numbers<[1], [0], [0], [1], [0, 0, 1, 1], [], []>} : vector<128x128xbf16>, vector<128x512xbf16>, vector<128x512xf32> -> vector<128x512xf32>
    %108 = arith.mulf %107, %107 : vector<128x512xf32>
    %109 = arith.mulf %107, %108 : vector<128x512xf32>
    %cst_68 = arith.constant 4.471500e-02 : f32
    %110 = vector.broadcast %cst_68 : f32 to vector<128x512xf32>
    %111 = arith.mulf %110, %109 : vector<128x512xf32>
    %112 = arith.addf %107, %111 : vector<128x512xf32>
    %cst_69 = arith.constant 0.797884583 : f32
    %113 = vector.broadcast %cst_69 : f32 to vector<128x512xf32>
    %114 = arith.mulf %113, %112 : vector<128x512xf32>
    %115 = math.tanh %114 : vector<128x512xf32>
    %cst_70 = arith.constant 1.000000e+00 : f32
    %116 = vector.broadcast %cst_70 : f32 to vector<128x512xf32>
    %117 = arith.addf %116, %115 : vector<128x512xf32>
    %cst_71 = arith.constant 5.000000e-01 : f32
    %118 = vector.broadcast %cst_71 : f32 to vector<128x512xf32>
    %119 = arith.mulf %118, %117 : vector<128x512xf32>
    %120 = arith.mulf %107, %119 : vector<128x512xf32>
    %121 = arith.truncf %120 : vector<128x512xf32> to vector<128x512xbf16>
    %c0_72 = arith.constant 0 : index
    %c0_73 = arith.constant 0 : index
    %122 = vector.load %arg15[%c0_72, %c0_73] : memref<512x128xbf16, #tpu.memory_space<vmem>>, vector<512x128xbf16>
    %cst_74 = arith.constant dense<0.000000e+00> : vector<128x128xf32>
    %123 = tpu.matmul %121, %122, %cst_74 {dimension_numbers = #tpu.dot_dimension_numbers<[1], [0], [0], [1], [0, 0, 1, 1], [], []>} : vector<128x512xbf16>, vector<512x128xbf16>, vector<128x128xf32> -> vector<128x128xf32>
    %124 = arith.addf %123, %104 : vector<128x128xf32>
    %125 = arith.addf %124, %0 : vector<128x128xf32>
    %c0_75 = arith.constant 0 : index
    %c0_76 = arith.constant 0 : index
    %126 = vector.load %arg16[%c0_75, %c0_76] : memref<128x128xf32, #tpu.memory_space<vmem>>, vector<128x128xf32>
    tpu.vector_store %arg16[%c0_75, %c0_76], %125 {strides = array<i32>} : memref<128x128xf32, #tpu.memory_space<vmem>>, vector<128x128xf32>,
    return
  }
}

</mosaic_0001>

<bundles_post_ra>
// kernel: tpu_custom_call.1
= control target key start
LH: loop header
LB: loop body
LE: loop exit
PB: predicated region body
PF: predicated region fallthrough
CT: control target
= control target key end

     0   :  { %s11472_s0 = inlined_call_operand.vmem [shape: f32[128,128], index: 0, kind: input, shape index: {}]   ;;  %s11473_s1 = inlined_call_operand.vmem [shape: f32[512,32], index: 1, kind: input, shape index: {}]   ;;  %s11474_s2 = inlined_call_operand.vmem [shape: f32[512,32], index: 2, kind: input, shape index: {}]   ;;  %s11475_s3 = inlined_call_operand.vmem [shape: f32[128,32], index: 3, kind: input, shape index: {}]   ;;  %s11476_s4 = inlined_call_operand.vmem [shape: f32[128,32], index: 4, kind: input, shape index: {}]   ;;  %s11477_s5 = inlined_call_operand.vmem [shape: bf16[32,32], index: 5, kind: input, shape index: {}]   ;;  %s11478_s6 = inlined_call_operand.vmem [shape: f32[1,128], index: 6, kind: input, shape index: {}]   ;;  %s11479_s7 = inlined_call_operand.vmem [shape: f32[1,128], index: 7, kind: input, shape index: {}]   ;;  %s11480_s8 = inlined_call_operand.vmem [shape: f32[1,128], index: 8, kind: input, shape index: {}]   ;;  %s11481_s9 = inlined_call_operand.vmem [shape: f32[1,128], index: 9, kind: input, shape index: {}]   ;;  %s11482_s10 = inlined_call_operand.vmem [shape: bf16[4,128,32], index: 10, kind: input, shape index: {}]   ;;  %s11483_s11 = inlined_call_operand.vmem [shape: bf16[128,32], index: 11, kind: input, shape index: {}]   ;;  %s11484_s12 = inlined_call_operand.vmem [shape: bf16[128,32], index: 12, kind: input, shape index: {}]   ;;  %s11485_s13 = inlined_call_operand.vmem [shape: bf16[4,32,128], index: 13, kind: input, shape index: {}]   ;;  %s11486_s14 = inlined_call_operand.vmem [shape: bf16[128,512], index: 14, kind: input, shape index: {}]   ;;  %s11487_s15 = inlined_call_operand.vmem [shape: bf16[512,128], index: 15, kind: input, shape index: {}]   ;;  %s11488_s16 = inlined_call_operand.hbm [shape: f32[128,128], index: 16, kind: output, shape index: {}]  }
   0x1   :  { %11557 = sst [smem:[#allocation52_spill]] %s11472_s0 }
   0x2   :  { %s11558_s23 = sld [smem:[#allocation52_spill]]  ;;  %v7298_v16 = vld [vmem:[%s11482_s10 + $0x80] sm:$0xff]  }
   0x3   :  { %v7299_v17 = vld [vmem:[%s11482_s10] sm:$0xff]   ;;  %6782 = vmatprep.subr.bf16.mxu0 %v7298_v16 }
   0x4   :  { %6718 = vmatprep.subr.bf16.mxu1 %v7299_v17  ;;  %6783 = vmatpush3.bf16.msra.mxu0 %v7298_v16 }
   0x5   :  { %6719 = vmatpush3.bf16.msra.mxu1 %v7299_v17 }
   0x8   :  { %v55_v0 = vld [vmem:[%s11558_s23] sm:$0xff]  ;;  %v57_v1 = vld [vmem:[%s11558_s23 + $0x10] sm:$0xff]  ;;  %v56_v2 = vld [vmem:[%s11558_s23 + $0x8] sm:$0xff] }
   0x9   :  { %71 = vadd.xlane.f32.xlu0 %v55_v0  ;;  %75 = vadd.xlane.f32.xlu1 %v57_v1  ;;  %v58_v3 = vld [vmem:[%s11558_s23 + $0x18] sm:$0xff]  ;;  %v59_v4 = vld [vmem:[%s11558_s23 + $0x20] sm:$0xff]  ;;  %v60_v5 = vld [vmem:[%s11558_s23 + $0x28] sm:$0xff] }
   0xa   :  { %v61_v6 = vld [vmem:[%s11558_s23 + $0x30] sm:$0xff]  ;;  %v62_v7 = vld [vmem:[%s11558_s23 + $0x38] sm:$0xff]  ;;  %v8008_v8 = vld [vmem:[%s11558_s23 + $0x40] sm:$0xff] }
   0xb   :  { %v8013_v9 = vld [vmem:[%s11558_s23 + $0x48] sm:$0xff]  ;;  %v8018_v10 = vld [vmem:[%s11558_s23 + $0x50] sm:$0xff]  ;;  %v8023_v11 = vld [vmem:[%s11558_s23 + $0x58] sm:$0xff] }
   0xc   :  { %v8030_v12 = vld [vmem:[%s11558_s23 + $0x60] sm:$0xff]  ;;  %v8035_v13 = vld [vmem:[%s11558_s23 + $0x68] sm:$0xff]  ;;  %v8042_v14 = vld [vmem:[%s11558_s23 + $0x70] sm:$0xff] }
   0xd   :  { %73 = vadd.xlane.f32.xlu0 %v56_v2  ;;  %77 = vadd.xlane.f32.xlu1 %v58_v3  ;;  %v8047_v15 = vld [vmem:[%s11558_s23 + $0x78] sm:$0xff] }
  0x11   :  { %79 = vadd.xlane.f32.xlu0 %v59_v4  ;;  %81 = vadd.xlane.f32.xlu1 %v60_v5 }
  0x15   :  { %83 = vadd.xlane.f32.xlu0 %v61_v6  ;;  %85 = vadd.xlane.f32.xlu1 %v62_v7 }
  0x19   :  { %87 = vadd.xlane.f32.xlu0 %v8008_v8  ;;  %89 = vadd.xlane.f32.xlu1 %v8013_v9 }
  0x1d   :  { %91 = vadd.xlane.f32.xlu0 %v8018_v10  ;;  %93 = vadd.xlane.f32.xlu1 %v8023_v11 }
  0x21   :  { %95 = vadd.xlane.f32.xlu0 %v8030_v12  ;;  %97 = vadd.xlane.f32.xlu1 %v8035_v13 }
  0x25   :  { %99 = vadd.xlane.f32.xlu0 %v8042_v14  ;;  %101 = vadd.xlane.f32.xlu1 %v8047_v15 }
  0x26   :  { %21 = vsyncpa [#allocation3], 0  ;;  %v7300_v61 = vld [vmem:[%s11482_s10 + $0x88] sm:$0xff]   ;;  %vm1493_vm0 = vcmask 261120   ;;  %s7893_s20 = smov [#allocation2]  }
  0x27   :  { %v7301_v62 = vld [vmem:[%s11482_s10 + $0x8] sm:$0xff]   ;;  %6784 = vmatprep.subr.bf16.mxu0 %v7300_v61 }
  0x28   :  { %6720 = vmatprep.subr.bf16.mxu1 %v7301_v62  ;;  %6785 = vmatpush3.bf16.msra.mxu0 %v7300_v61 }
  0x29   :  { %6721 = vmatpush3.bf16.msra.mxu1 %v7301_v62 }
  0x96   :  { %v72_v18 = vpop.xlane.xlu0 %71  ;;  %v76_v19 = vpop.xlane.xlu1 %75 }
  0x97   :  { %v104_v20 = vmul.f32 0.0078125, %v72_v18  ;;  %v106_v21 = vmul.f32 0.0078125, %v76_v19 }
  0x99   :  { %v8059_v22 = vsub.f32 %v55_v0, %v104_v20  ;;  %v8061_v23 = vsub.f32 %v57_v1, %v106_v21 }
  0x9a   :  { %v74_v24 = vpop.xlane.xlu0 %73  ;;  %v78_v25 = vpop.xlane.xlu1 %77 }
  0x9b   :  { %v105_v26 = vmul.f32 0.0078125, %v74_v24  ;;  %v136_v27 = vmul.f32 %v8059_v22, %v8059_v22  ;;  %v107_v28 = vmul.f32 0.0078125, %v78_v25  ;;  %v138_v29 = vmul.f32 %v8061_v23, %v8061_v23  ;;  %v7304_v24 = vld [vmem:[%s11482_s10 + $0x98] sm:$0xff]  }
  0x9c   :  { %v7305_v25 = vld [vmem:[%s11482_s10 + $0x18] sm:$0xff]  }
  0x9d   :  { %152 = vadd.xlane.f32.xlu0 %v136_v27  ;;  %v8067_v30 = vsub.f32 %v56_v2, %v105_v26  ;;  %v8069_v31 = vsub.f32 %v58_v3, %v107_v28  ;;  %v7307_v27 = vld [vmem:[%s11482_s10 + $0x20] sm:$0xff]   ;;  %v7308_v28 = vld [vmem:[%s11482_s10 + $0xa8] sm:$0xff]  }
  0x9e   :  { %v80_v32 = vpop.xlane.xlu0 %79  ;;  %v82_v33 = vpop.xlane.xlu1 %81 }
  0x9f   :  { %v108_v34 = vmul.f32 0.0078125, %v80_v32  ;;  %v137_v35 = vmul.f32 %v8067_v30, %v8067_v30  ;;  %v109_v36 = vmul.f32 0.0078125, %v82_v33  ;;  %v139_v37 = vmul.f32 %v8069_v31, %v8069_v31  ;;  %v7310_v32 = vld [vmem:[%s11482_s10 + $0xb0] sm:$0xff]  }
  0xa0   :  { %v7311_v33 = vld [vmem:[%s11482_s10 + $0x30] sm:$0xff]  }
  0xa1   :  { %156 = vadd.xlane.f32.xlu0 %v138_v29  ;;  %154 = vadd.xlane.f32.xlu1 %v137_v35  ;;  %v8075_v38 = vsub.f32 %v59_v4, %v108_v34  ;;  %v8077_v39 = vsub.f32 %v60_v5, %v109_v36  ;;  %v7309_v29 = vld [vmem:[%s11482_s10 + $0x28] sm:$0xff]   ;;  %v7312_v34 = vld [vmem:[%s11482_s10 + $0xb8] sm:$0xff]   ;;  %v8176_v36 = vld [vmem:[%s11483_s11] sm:$0xff]  }
  0xa2   :  { %v84_v40 = vpop.xlane.xlu0 %83  ;;  %v86_v41 = vpop.xlane.xlu1 %85  ;;  %v7313_v35 = vld [vmem:[%s11482_s10 + $0x38] sm:$0xff]  }
  0xa3   :  { %v110_v42 = vmul.f32 0.0078125, %v84_v40  ;;  %v140_v43 = vmul.f32 %v8075_v38, %v8075_v38  ;;  %v111_v44 = vmul.f32 0.0078125, %v86_v41  ;;  %v141_v45 = vmul.f32 %v8077_v39, %v8077_v39 }
  0xa5   :  { %158 = vadd.xlane.f32.xlu1 %v139_v37  ;;  %160 = vadd.xlane.f32.xlu0 %v140_v43  ;;  %v8083_v46 = vsub.f32 %v61_v6, %v110_v42  ;;  %v8085_v47 = vsub.f32 %v62_v7, %v111_v44  ;;  %v8181_v37 = vld [vmem:[%s11482_s10 + $0x40] sm:$0xff]  }
  0xa6   :  { %v88_v48 = vpop.xlane.xlu0 %87  ;;  %v90_v49 = vpop.xlane.xlu1 %89 }
  0xa7   :  { %v112_v50 = vmul.f32 0.0078125, %v88_v48  ;;  %v142_v51 = vmul.f32 %v8083_v46, %v8083_v46  ;;  %v113_v52 = vmul.f32 0.0078125, %v90_v49  ;;  %v143_v53 = vmul.f32 %v8085_v47, %v8085_v47 }
  0xa9   :  { %162 = vadd.xlane.f32.xlu1 %v141_v45  ;;  %164 = vadd.xlane.f32.xlu0 %v142_v51  ;;  %v8092_v54 = vsub.f32 %v8008_v8, %v112_v50  ;;  %v8095_v55 = vsub.f32 %v8013_v9, %v113_v52 }
  0xaa   :  { %v92_v56 = vpop.xlane.xlu0 %91  ;;  %v94_v57 = vpop.xlane.xlu1 %93 }
  0xab   :  { %v114_v58 = vmul.f32 0.0078125, %v92_v56  ;;  %v144_v59 = vmul.f32 %v8092_v54, %v8092_v54  ;;  %v115_v60 = vmul.f32 0.0078125, %v94_v57  ;;  %v145_v63 = vmul.f32 %v8095_v55, %v8095_v55 }
  0xad   :  { %166 = vadd.xlane.f32.xlu1 %v143_v53  ;;  %168 = vadd.xlane.f32.xlu0 %v144_v59  ;;  %v8108_v0 = vsub.f32 %v8018_v10, %v114_v58  ;;  %v8111_v1 = vsub.f32 %v8023_v11, %v115_v60  ;;  %v7302_v10 = vld [vmem:[%s11482_s10 + $0x90] sm:$0xff]  }
  0xae   :  { %v96_v2 = vpop.xlane.xlu0 %95  ;;  %v98_v3 = vpop.xlane.xlu1 %97  ;;  %v7303_v11 = vld [vmem:[%s11482_s10 + $0x10] sm:$0xff]   ;;  %6786 = vmatprep.subr.bf16.mxu0 %v7302_v10 }
  0xaf   :  { %v116_v4 = vmul.f32 0.0078125, %v96_v2  ;;  %v146_v5 = vmul.f32 %v8108_v0, %v8108_v0  ;;  %v117_v6 = vmul.f32 0.0078125, %v98_v3  ;;  %v147_v7 = vmul.f32 %v8111_v1, %v8111_v1  ;;  %6722 = vmatprep.subr.bf16.mxu1 %v7303_v11  ;;  %6787 = vmatpush3.bf16.msra.mxu0 %v7302_v10  ;;  %v8188_v2 = vld [vmem:[%s11478_s6] ss:$0 sm:$0xff] }
  0xb0   :  { %6723 = vmatpush3.bf16.msra.mxu1 %v7303_v11  ;;  %6788 = vmatprep.subr.bf16.mxu0 %v7304_v24 }
  0xb1   :  { %170 = vadd.xlane.f32.xlu1 %v145_v63  ;;  %172 = vadd.xlane.f32.xlu0 %v146_v5  ;;  %v8118_v8 = vsub.f32 %v8030_v12, %v116_v4  ;;  %v8121_v9 = vsub.f32 %v8035_v13, %v117_v6  ;;  %v8193_v5 = vld [vmem:[%s11480_s8] ss:$0 sm:$0xff] }
  0xb2   :  { %v100_v16 = vpop.xlane.xlu0 %99  ;;  %v102_v17 = vpop.xlane.xlu1 %101  ;;  %6724 = vmatprep.subr.bf16.mxu1 %v7305_v25 }
  0xb3   :  { %v118_v18 = vmul.f32 0.0078125, %v100_v16  ;;  %v148_v19 = vmul.f32 %v8118_v8, %v8118_v8  ;;  %v119_v20 = vmul.f32 0.0078125, %v102_v17  ;;  %v149_v12 = vmul.f32 %v8121_v9, %v8121_v9  ;;  %6789 = vmatpush3.bf16.msra.mxu0 %v7304_v24 }
  0xb4   :  { %6725 = vmatpush3.bf16.msra.mxu1 %v7305_v25 }
  0xb5   :  { %174 = vadd.xlane.f32.xlu1 %v147_v7  ;;  %176 = vadd.xlane.f32.xlu0 %v148_v19  ;;  %v8134_v13 = vsub.f32 %v8042_v14, %v118_v18  ;;  %v8137_v21 = vsub.f32 %v8047_v15, %v119_v20  ;;  %v7306_v15 = vld [vmem:[%s11482_s10 + $0xa0] sm:$0xff]  }
  0xb6   :  { %6790 = vmatprep.subr.bf16.mxu0 %v7306_v15  ;;  %6726 = vmatprep.subr.bf16.mxu1 %v7307_v27  ;;  %v8200_v19 = vld [vmem:[%s11479_s7] ss:$0 sm:$0xff] }
  0xb7   :  { %v150_v26 = vmul.f32 %v8134_v13, %v8134_v13  ;;  %v151_v14 = vmul.f32 %v8137_v21, %v8137_v21  ;;  %6791 = vmatpush3.bf16.msra.mxu0 %v7306_v15  ;;  %v8207_v15 = vld [vmem:[%s11481_s9] ss:$0 sm:$0xff] }
  0xb8   :  { %6727 = vmatpush3.bf16.msra.mxu1 %v7307_v27  ;;  %6792 = vmatprep.subr.bf16.mxu0 %v7308_v28 }
  0xb9   :  { %178 = vadd.xlane.f32.xlu1 %v149_v12  ;;  %180 = vadd.xlane.f32.xlu0 %v150_v26 }
  0xba   :  { %6728 = vmatprep.subr.bf16.mxu1 %v7309_v29 }
  0xbb   :  { %6793 = vmatpush3.bf16.msra.mxu0 %v7308_v28 }
  0xbc   :  { %6729 = vmatpush3.bf16.msra.mxu1 %v7309_v29  ;;  %6794 = vmatprep.subr.bf16.mxu0 %v7310_v32 }
  0xbd   :  { %182 = vadd.xlane.f32.xlu1 %v151_v14  ;;  %6730 = vmatprep.subr.bf16.mxu1 %v7311_v33 }
  0xbf   :  { %6795 = vmatpush3.bf16.msra.mxu0 %v7310_v32 }
  0xc0   :  { %6731 = vmatpush3.bf16.msra.mxu1 %v7311_v33  ;;  %6796 = vmatprep.subr.bf16.mxu0 %v7312_v34 }
  0xc1   :  { %6732 = vmatprep.subr.bf16.mxu1 %v7313_v35 }
  0xc3   :  { %6797 = vmatpush3.bf16.msra.mxu0 %v7312_v34 }
  0xc4   :  { %6733 = vmatpush3.bf16.msra.mxu1 %v7313_v35  ;;  %6846 = vmatprep.subr.bf16.mxu0 %v8176_v36 }
  0xc5   :  { %6750 = vmatprep.subr.bf16.mxu1 %v8181_v37 }
 0x12a   :  { %v153_v40 = vpop.xlane.xlu0 %152 }
 0x12b   :  { %v184_v41 = vmul.f32 0.0078125, %v153_v40 }
 0x12d   :  { %v200_v42 = vadd.f32 1e-05, %v184_v41 }
 0x12e   :  { %v155_v43 = vpop.xlane.xlu1 %154  ;;  %v157_v44 = vpop.xlane.xlu0 %156 }
 0x12f   :  { %7436 = vrsqrt.f32 %v200_v42  ;;  %v185_v45 = vmul.f32 0.0078125, %v155_v43  ;;  %v186_v48 = vmul.f32 0.0078125, %v157_v44 }
 0x131   :  { %v201_v49 = vadd.f32 1e-05, %v185_v45  ;;  %v202_v50 = vadd.f32 1e-05, %v186_v48 }
 0x132   :  { %v159_v51 = vpop.xlane.xlu1 %158  ;;  %v161_v52 = vpop.xlane.xlu0 %160 }
 0x133   :  { %7438 = vrsqrt.f32 %v201_v49  ;;  %v187_v53 = vmul.f32 0.0078125, %v159_v51  ;;  %v188_v56 = vmul.f32 0.0078125, %v161_v52 }
 0x134   :  { %7440 = vrsqrt.f32 %v202_v50 }
 0x135   :  { %v203_v57 = vadd.f32 1e-05, %v187_v53  ;;  %v204_v58 = vadd.f32 1e-05, %v188_v56 }
 0x136   :  { %v163_v59 = vpop.xlane.xlu1 %162  ;;  %v165_v60 = vpop.xlane.xlu0 %164 }
 0x137   :  { %7442 = vrsqrt.f32 %v203_v57  ;;  %v189_v61 = vmul.f32 0.0078125, %v163_v59  ;;  %v190_v62 = vmul.f32 0.0078125, %v165_v60 }
 0x138   :  { %7444 = vrsqrt.f32 %v204_v58 }
 0x139   :  { %v7437_v63 = vpop.eup %7436  ;;  %v205_v3 = vadd.f32 1e-05, %v189_v61  ;;  %v206_v4 = vadd.f32 1e-05, %v190_v62 }
 0x13a   :  { %v232_v6 = vmul.f32 %v7437_v63, %v8059_v22  ;;  %v167_v7 = vpop.xlane.xlu1 %166  ;;  %v169_v10 = vpop.xlane.xlu0 %168 }
 0x13b   :  { %7446 = vrsqrt.f32 %v205_v3  ;;  %v191_v11 = vmul.f32 0.0078125, %v167_v7  ;;  %v192_v16 = vmul.f32 0.0078125, %v169_v10 }
 0x13c   :  { %v255_v17 = vmul.f32 %v8188_v2, %v232_v6  ;;  %7448 = vrsqrt.f32 %v206_v4  ;;  %v301_v20 = vmul.f32 %v8193_v5, %v232_v6 }
 0x13d   :  { %v7439_v18 = vpop.eup %7438  ;;  %v207_v12 = vadd.f32 1e-05, %v191_v11  ;;  %v208_v24 = vadd.f32 1e-05, %v192_v16 }
 0x13e   :  { %v7441_v25 = vpop.eup %7440  ;;  %v233_v22 = vmul.f32 %v7439_v18, %v8067_v30  ;;  %v171_v26 = vpop.xlane.xlu1 %170  ;;  %v278_v32 = vadd.f32 %v8200_v19, %v255_v17  ;;  %v324_v42 = vadd.f32 %v8207_v15, %v301_v20 }
 0x13f   :  { %v173_v14 = vpop.xlane.xlu0 %172  ;;  %v234_v27 = vmul.f32 %v7441_v25, %v8061_v23  ;;  %7450 = vrsqrt.f32 %v207_v12  ;;  %v193_v28 = vmul.f32 0.0078125, %v171_v26  ;;  %v7316_v12 = vld [vmem:[%s11483_s11 + $0x8] sm:$0xff]  }
 0x140   :  { %v194_v29 = vmul.f32 0.0078125, %v173_v14  ;;  %v256_v33 = vmul.f32 %v8188_v2, %v233_v22  ;;  %v302_v34 = vmul.f32 %v8193_v5, %v233_v22  ;;  %7452 = vrsqrt.f32 %v208_v24  ;;  %v7317_v24 = vld [vmem:[%s11482_s10 + $0x48] sm:$0xff]  }
 0x141   :  { %v7443_v30 = vpop.eup %7442  ;;  %v257_v35 = vmul.f32 %v8188_v2, %v234_v27  ;;  %v209_v40 = vadd.f32 1e-05, %v193_v28  ;;  %v303_v50 = vmul.f32 %v8193_v5, %v234_v27 }
 0x142   :  { %v210_v41 = vadd.f32 1e-05, %v194_v29  ;;  %v7445_v43 = vpop.eup %7444  ;;  %v279_v23 = vadd.f32 %v8200_v19, %v256_v33  ;;  %v235_v44 = vmul.f32 %v7443_v30, %v8069_v31  ;;  %v175_v45 = vpop.xlane.xlu1 %174  ;;  %v325_v49 = vadd.f32 %v8207_v15, %v302_v34 }
 0x143   :  { %v177_v48 = vpop.xlane.xlu0 %176  ;;  %v280_v51 = vadd.f32 %v8200_v19, %v257_v35  ;;  %v236_v52 = vmul.f32 %v7445_v43, %v8075_v38  ;;  %7454 = vrsqrt.f32 %v209_v40  ;;  %v195_v53 = vmul.f32 0.0078125, %v175_v45 }
 0x144   :  { %v258_v56 = vmul.f32 %v8188_v2, %v235_v44  ;;  %7456 = vrsqrt.f32 %v210_v41  ;;  %v196_v57 = vmul.f32 0.0078125, %v177_v48  ;;  %v8222_v58 = vpack.c.bf16 %v279_v23, %v278_v32 }
 0x145   :  { %v7447_v59 = vpop.eup %7446  ;;  %v259_v31 = vmul.f32 %v8188_v2, %v236_v52  ;;  %v211_v60 = vadd.f32 1e-05, %v195_v53  ;;  %v8225_v61 = vpack.c.bf16 %v325_v49, %v324_v42  ;;  %v304_v62 = vmul.f32 %v8193_v5, %v235_v44  ;;  %v7318_v42 = vld [vmem:[%s11483_s11 + $0x10] sm:$0xff]  }
 0x146   :  { %v7449_v63 = vpop.eup %7448  ;;  %v281_v3 = vadd.f32 %v8200_v19, %v258_v56  ;;  %v237_v38 = vmul.f32 %v7447_v59, %v8077_v39  ;;  %v212_v4 = vadd.f32 1e-05, %v196_v57  ;;  %v179_v6 = vpop.xlane.xlu1 %178  ;;  %6734 = vmatprep.mubr.bf16.mxu1 %v8222_v58  ;;  %6798 = vmatprep.mubr.bf16.mxu0 %v8222_v58  ;;  %v326_v10 = vadd.f32 %v8207_v15, %v303_v50 }
 0x147   :  { %11559 = vst [vmem:[#allocation5_spill] sm:$0xff] %v8225_v61  ;;  %v181_v7 = vpop.xlane.xlu0 %180  ;;  %v282_v11 = vadd.f32 %v8200_v19, %v259_v31  ;;  %v238_v16 = vmul.f32 %v7449_v63, %v8083_v46  ;;  %7458 = vrsqrt.f32 %v211_v60  ;;  %v197_v17 = vmul.f32 0.0078125, %v179_v6  ;;  %v7321_v31 = vld [vmem:[%s11482_s10 + $0x58] sm:$0xff]  }
 0x148   :  { %v260_v18 = vmul.f32 %v8188_v2, %v237_v38  ;;  %7460 = vrsqrt.f32 %v212_v4  ;;  %v198_v20 = vmul.f32 0.0078125, %v181_v7  ;;  %v8236_v39 = vpack.c.bf16 %v281_v3, %v280_v51 }
 0x149   :  { %v7451_v25 = vpop.eup %7450  ;;  %v261_v22 = vmul.f32 %v8188_v2, %v238_v16  ;;  %v213_v46 = vadd.f32 1e-05, %v197_v17  ;;  %v327_v26 = vadd.f32 %v8207_v15, %v304_v62  ;;  %v305_v14 = vmul.f32 %v8193_v5, %v236_v52 }
 0x14a   :  { %v7453_v27 = vpop.eup %7452  ;;  %v283_v28 = vadd.f32 %v8200_v19, %v260_v18  ;;  %v239_v29 = vmul.f32 %v7451_v25, %v8085_v47  ;;  %v214_v32 = vadd.f32 1e-05, %v198_v20  ;;  %v183_v33 = vpop.xlane.xlu1 %182  ;;  %6735 = vmatmul.mubr.bf16.vlgmr.msra.gmra.mrb[0].mxu1 %v8236_v39  ;;  %6799 = vmatmul.mubr.bf16.vlgmr.msra.gmra.mrb[0].mxu0 %v8236_v39  ;;  %v306_v34 = vmul.f32 %v8193_v5, %v237_v38  ;;  %v7323_v20 = vld [vmem:[%s11482_s10 + $0x60] sm:$0xff]  }
 0x14b   :  { %v284_v30 = vadd.f32 %v8200_v19, %v261_v22  ;;  %v240_v35 = vmul.f32 %v7453_v27, %v8092_v54  ;;  %7462 = vrsqrt.f32 %v213_v46  ;;  %v199_v40 = vmul.f32 0.0078125, %v183_v33  ;;  %6847 = vmatpush3.bf16.msra.mxu0 %v8176_v36  ;;  %6751 = vmatpush3.bf16.msra.mxu1 %v8181_v37  ;;  %v7319_v54 = vld [vmem:[%s11482_s10 + $0x50] sm:$0xff]  }
 0x14c   :  { %v262_v47 = vmul.f32 %v8188_v2, %v239_v29  ;;  %7464 = vrsqrt.f32 %v214_v32  ;;  %6848 = vmatprep.subr.bf16.mxu0 %v7316_v12  ;;  %v8257_v41 = vpack.c.bf16 %v283_v28, %v282_v11  ;;  %6752 = vmatprep.subr.bf16.mxu1 %v7317_v24  ;;  %v8265_v43 = vpack.c.bf16 %v327_v26, %v326_v10 }
 0x14d   :  { %v7455_v36 = vpop.eup %7454  ;;  %v263_v37 = vmul.f32 %v8188_v2, %v240_v35  ;;  %v215_v23 = vadd.f32 1e-05, %v199_v40  ;;  %v328_v44 = vadd.f32 %v8207_v15, %v305_v14  ;;  %v329_v45 = vadd.f32 %v8207_v15, %v306_v34 }
 0x14e   :  { %11560 = vst [vmem:[#allocation6_spill] sm:$0xff] %v8265_v43  ;;  %v7457_v48 = vpop.eup %7456  ;;  %v285_v49 = vadd.f32 %v8200_v19, %v262_v47  ;;  %v241_v50 = vmul.f32 %v7455_v36, %v8095_v55  ;;  %6738 = vmatprep.mubr.bf16.mxu1 %v8257_v41  ;;  %6802 = vmatprep.mubr.bf16.mxu0 %v8257_v41  ;;  %v7320_v55 = vld [vmem:[%s11483_s11 + $0x18] sm:$0xff]  }
 0x14f   :  { %v307_v51 = vmul.f32 %v8193_v5, %v238_v16  ;;  %v286_v52 = vadd.f32 %v8200_v19, %v263_v37  ;;  %v242_v53 = vmul.f32 %v7457_v48, %v8108_v0  ;;  %7466 = vrsqrt.f32 %v215_v23  ;;  %6849 = vmatpush3.bf16.msra.mxu0 %v7316_v12  ;;  %6753 = vmatpush3.bf16.msra.mxu1 %v7317_v24 }
 0x150   :  { %v8277_v56 = vpack.c.bf16 %v329_v45, %v328_v44  ;;  %v264_v57 = vmul.f32 %v8188_v2, %v241_v50  ;;  %6850 = vmatprep.subr.bf16.mxu0 %v7318_v42  ;;  %v8280_v59 = vpack.c.bf16 %v285_v49, %v284_v30  ;;  %6754 = vmatprep.subr.bf16.mxu1 %v7319_v54 }
 0x151   :  { %v308_v0 = vmul.f32 %v8193_v5, %v239_v29  ;;  %v7459_v60 = vpop.eup %7458  ;;  %v265_v62 = vmul.f32 %v8188_v2, %v242_v53  ;;  %v330_v63 = vadd.f32 %v8207_v15, %v307_v51  ;;  %v309_v3 = vmul.f32 %v8193_v5, %v240_v35 }
 0x152   :  { %11561 = vst [vmem:[#allocation7_spill] sm:$0xff] %v8277_v56  ;;  %v310_v38 = vmul.f32 %v8193_v5, %v241_v50  ;;  %v7461_v4 = vpop.eup %7460  ;;  %v287_v6 = vadd.f32 %v8200_v19, %v264_v57  ;;  %v243_v7 = vmul.f32 %v7459_v60, %v8111_v1  ;;  %6739 = vmatmul.mubr.bf16.gmra.mrb[4].mxu1 %v8280_v59  ;;  %v7322_v1 = vld [vmem:[%s11483_s11 + $0x20] sm:$0xff]  }
 0x153   :  { %6803 = vmatmul.mubr.bf16.gmra.mrb[4].mxu0 %v8280_v59  ;;  %v331_v10 = vadd.f32 %v8207_v15, %v308_v0  ;;  %v244_v11 = vmul.f32 %v7461_v4, %v8118_v8  ;;  %6755 = vmatpush3.bf16.msra.mxu1 %v7319_v54  ;;  %v332_v16 = vadd.f32 %v8207_v15, %v309_v3  ;;  %v7331_v3 = vld [vmem:[%s11482_s10 + $0xc8] sm:$0xff]   ;;  %v7333_v4 = vld [vmem:[%s11482_s10 + $0xd8] sm:$0xff]  }
 0x154   :  { %6851 = vmatpush3.bf16.msra.mxu0 %v7318_v42  ;;  %v266_v17 = vmul.f32 %v8188_v2, %v243_v7  ;;  %v8301_v18 = vpack.c.bf16 %v287_v6, %v286_v52  ;;  %6756 = vmatprep.subr.bf16.mxu1 %v7321_v31  ;;  %v333_v25 = vadd.f32 %v8207_v15, %v310_v38  ;;  %v7327_v52 = vld [vmem:[%s11482_s10 + $0x70] sm:$0xff]   ;;  %v7334_v6 = vld [vmem:[%s11482_s10 + $0xe0] sm:$0xff]  }
 0x155   :  { %6852 = vmatprep.subr.bf16.mxu0 %v7320_v55  ;;  %v8309_v12 = vpack.c.bf16 %v331_v10, %v330_v63  ;;  %v7463_v8 = vpop.eup %7462  ;;  %v267_v24 = vmul.f32 %v8188_v2, %v244_v11  ;;  %v311_v22 = vmul.f32 %v8193_v5, %v242_v53  ;;  %v312_v46 = vmul.f32 %v8193_v5, %v243_v7  ;;  %v8385_v63 = vld [vmem:[%s11477_s5] sm:$0xff]   ;;  %v7332_v38 = vld [vmem:[%s11482_s10 + $0xd0] sm:$0xff]   ;;  %v7335_v7 = vld [vmem:[%s11482_s10 + $0xe8] sm:$0xff]  }
 0x156   :  { %v7465_v26 = vpop.eup %7464  ;;  %v288_v14 = vadd.f32 %v8200_v19, %v265_v62  ;;  %v289_v27 = vadd.f32 %v8200_v19, %v266_v17  ;;  %v245_v28 = vmul.f32 %v7463_v8, %v8121_v9  ;;  %6742 = vmatprep.mubr.bf16.mxu1 %v8301_v18  ;;  %6806 = vmatprep.mubr.bf16.mxu0 %v8301_v18  ;;  %v7324_v9 = vld [vmem:[%s11483_s11 + $0x28] sm:$0xff]   ;;  %v7329_v62 = vld [vmem:[%s11482_s10 + $0x78] sm:$0xff]   ;;  %v7336_v10 = vld [vmem:[%s11482_s10 + $0xf0] sm:$0xff]  }
 0x157   :  { %11562 = vst [vmem:[#allocation8_spill] sm:$0xff] %v8309_v12  ;;  %v246_v29 = vmul.f32 %v7465_v26, %v8134_v13  ;;  %6757 = vmatpush3.bf16.msra.mxu1 %v7321_v31  ;;  %v8321_v32 = vpack.c.bf16 %v333_v25, %v332_v16  ;;  %v313_v33 = vmul.f32 %v8193_v5, %v244_v11  ;;  %v7325_v13 = vld [vmem:[%s11482_s10 + $0x68] sm:$0xff]   ;;  %v7337_v11 = vld [vmem:[%s11482_s10 + $0xf8] sm:$0xff]   ;;  %v7338_v16 = vld [vmem:[%s11484_s12] sm:$0xff]  }
 0x158   :  { %6853 = vmatpush3.bf16.msra.mxu0 %v7320_v55  ;;  %v290_v34 = vadd.f32 %v8200_v19, %v267_v24  ;;  %v268_v30 = vmul.f32 %v8188_v2, %v245_v28  ;;  %v8326_v35 = vpack.c.bf16 %v289_v27, %v288_v14  ;;  %6758 = vmatprep.subr.bf16.mxu1 %v7323_v20  ;;  %v7339_v17 = vld [vmem:[%s11484_s12 + $0x8] sm:$0xff]   ;;  %v7342_v8 = vld [vmem:[%s11484_s12 + $0x20] sm:$0xff]   ;;  %v7344_v25 = vld [vmem:[%s11484_s12 + $0x30] sm:$0xff]  }
 0x159   :  { %11563 = vst [vmem:[#allocation9_spill] sm:$0xff] %v8321_v32  ;;  %6854 = vmatprep.subr.bf16.mxu0 %v7322_v1  ;;  %v7467_v40 = vpop.eup %7466  ;;  %v269_v47 = vmul.f32 %v8188_v2, %v246_v29  ;;  %v334_v42 = vadd.f32 %v8207_v15, %v311_v22  ;;  %v335_v54 = vadd.f32 %v8207_v15, %v312_v46  ;;  %v7343_v24 = vld [vmem:[%s11484_s12 + $0x28] sm:$0xff]   ;;  %v7345_v46 = vld [vmem:[%s11484_s12 + $0x38] sm:$0xff]  }
 0x15a   :  { %v314_v36 = vmul.f32 %v8193_v5, %v245_v28  ;;  %v291_v37 = vadd.f32 %v8200_v19, %v268_v30  ;;  %v247_v23 = vmul.f32 %v7467_v40, %v8137_v21  ;;  %6743 = vmatmul.mubr.bf16.gmra.mrb[8].mxu1 %v8326_v35  ;;  %v315_v44 = vmul.f32 %v8193_v5, %v246_v29  ;;  %v7326_v21 = vld [vmem:[%s11483_s11 + $0x30] sm:$0xff]   ;;  %v7347_v22 = vld [vmem:[%s11477_s5 + $0x8] sm:$0xff]  }
 0x15b   :  { %6807 = vmatmul.mubr.bf16.gmra.mrb[8].mxu0 %v8326_v35  ;;  %6759 = vmatpush3.bf16.msra.mxu1 %v7323_v20  ;;  %v8343_v45 = vpack.c.bf16 %v335_v54, %v334_v42  ;;  %v336_v48 = vadd.f32 %v8207_v15, %v313_v33  ;;  %v292_v57 = vadd.f32 %v8200_v19, %v269_v47  ;;  %v7341_v20 = vld [vmem:[%s11484_s12 + $0x18] sm:$0xff]  }
 0x15c   :  { %6855 = vmatpush3.bf16.msra.mxu0 %v7322_v1  ;;  %v337_v49 = vadd.f32 %v8207_v15, %v314_v36  ;;  %v270_v50 = vmul.f32 %v8188_v2, %v247_v23  ;;  %v8348_v51 = vpack.c.bf16 %v291_v37, %v290_v34  ;;  %6760 = vmatprep.subr.bf16.mxu1 %v7325_v13  ;;  %v7340_v1 = vld [vmem:[%s11484_s12 + $0x10] sm:$0xff]  }
 0x15d   :  { %11564 = vst [vmem:[#allocation10_spill] sm:$0xff] %v8343_v45  ;;  %6856 = vmatprep.subr.bf16.mxu0 %v7324_v9  ;;  %v316_v53 = vmul.f32 %v8193_v5, %v247_v23  ;;  %v338_v31 = vadd.f32 %v8207_v15, %v315_v44 }
 0x15e   :  { %v8358_v55 = vpack.c.bf16 %v337_v49, %v336_v48  ;;  %v293_v2 = vadd.f32 %v8200_v19, %v270_v50  ;;  %6746 = vmatprep.mubr.bf16.mxu1 %v8348_v51  ;;  %6810 = vmatprep.mubr.bf16.mxu0 %v8348_v51  ;;  %v7328_v19 = vld [vmem:[%s11483_s11 + $0x38] sm:$0xff]  }
 0x15f   :  { %v339_v0 = vadd.f32 %v8207_v15, %v316_v53  ;;  %6761 = vmatpush3.bf16.msra.mxu1 %v7325_v13  ;;  %v7330_v15 = vld [vmem:[%s11482_s10 + $0xc0] sm:$0xff]  }
 0x160   :  { %11565 = vst [vmem:[#allocation11_spill] sm:$0xff] %v8358_v55  ;;  %6857 = vmatpush3.bf16.msra.mxu0 %v7324_v9  ;;  %v8365_v60 = vpack.c.bf16 %v293_v2, %v292_v57  ;;  %6762 = vmatprep.subr.bf16.mxu1 %v7327_v52 }
 0x161   :  { %6858 = vmatprep.subr.bf16.mxu0 %v7326_v21  ;;  %v8367_v5 = vpack.c.bf16 %v339_v0, %v338_v31 }
 0x162   :  { %6747 = vmatmul.mubr.bf16.gmra.mrb[12].mxu1 %v8365_v60 }
 0x163   :  { %11566 = vst [vmem:[#allocation12_spill] sm:$0xff] %v8367_v5  ;;  %6811 = vmatmul.mubr.bf16.gmra.mrb[12].mxu0 %v8365_v60  ;;  %6763 = vmatpush3.bf16.msra.mxu1 %v7327_v52 }
 0x164   :  { %6859 = vmatpush3.bf16.msra.mxu0 %v7326_v21  ;;  %6766 = vmatprep.mubr.bf16.mxu1 %v8222_v58 }
 0x165   :  { %6862 = vmatprep.mubr.bf16.mxu0 %v8222_v58  ;;  %6860 = vmatprep.subr.bf16.mxu0 %v7328_v19 }
 0x166   :  { %6764 = vmatprep.subr.bf16.mxu1 %v7329_v62 }
 0x167   :  { %6765 = vmatpush3.bf16.msra.mxu1 %v7329_v62 }
 0x168   :  { %6861 = vmatpush3.bf16.msra.mxu0 %v7328_v19  ;;  %6814 = vmatprep.subr.bf16.mxu1 %v7330_v15 }
 0x169   :  { %6910 = vmatprep.subr.bf16.mxu0 %v8385_v63 }
 0x16a   :  { %6767 = vmatmul.mubr.bf16.vlgmr.msra.gmra.mrb[16].mxu1 %v8236_v39 }
 0x16b   :  { %6863 = vmatmul.mubr.bf16.vlgmr.msra.gmra.mrb[16].mxu0 %v8236_v39  ;;  %6770 = vmatprep.mubr.bf16.mxu1 %v8257_v41 }
 0x16c   :  { %6815 = vmatpush3.bf16.msra.mxu1 %v7330_v15  ;;  %6866 = vmatprep.mubr.bf16.mxu0 %v8257_v41 }
 0x16d   :  { %6816 = vmatprep.subr.bf16.mxu1 %v7331_v3  ;;  %6911 = vmatpush3.bf16.msra.mxu0 %v8385_v63 }
 0x16e   :  { %6912 = vmatprep.subr.bf16.mxu0 %v7347_v22 }
 0x170   :  { %6817 = vmatpush3.bf16.msra.mxu1 %v7331_v3 }
 0x171   :  { %6818 = vmatprep.subr.bf16.mxu1 %v7332_v38  ;;  %6913 = vmatpush3.bf16.msra.mxu0 %v7347_v22 }
 0x172   :  { %6771 = vmatmul.mubr.bf16.gmra.mrb[20].mxu1 %v8280_v59 }
 0x173   :  { %6867 = vmatmul.mubr.bf16.gmra.mrb[20].mxu0 %v8280_v59  ;;  %6774 = vmatprep.mubr.bf16.mxu1 %v8301_v18 }
 0x174   :  { %6819 = vmatpush3.bf16.msra.mxu1 %v7332_v38  ;;  %6870 = vmatprep.mubr.bf16.mxu0 %v8301_v18 }
 0x175   :  { %6820 = vmatprep.subr.bf16.mxu1 %v7333_v4 }
 0x178   :  { %6821 = vmatpush3.bf16.msra.mxu1 %v7333_v4 }
 0x179   :  { %6822 = vmatprep.subr.bf16.mxu1 %v7334_v6 }
 0x17a   :  { %6775 = vmatmul.mubr.bf16.gmra.mrb[24].mxu1 %v8326_v35 }
 0x17b   :  { %6871 = vmatmul.mubr.bf16.gmra.mrb[24].mxu0 %v8326_v35  ;;  %6778 = vmatprep.mubr.bf16.mxu1 %v8348_v51 }
 0x17c   :  { %6823 = vmatpush3.bf16.msra.mxu1 %v7334_v6  ;;  %6874 = vmatprep.mubr.bf16.mxu0 %v8348_v51 }
 0x17d   :  { %6824 = vmatprep.subr.bf16.mxu1 %v7335_v7 }
 0x180   :  { %6825 = vmatpush3.bf16.msra.mxu1 %v7335_v7 }
 0x181   :  { %6826 = vmatprep.subr.bf16.mxu1 %v7336_v10 }
 0x182   :  { %6779 = vmatmul.mubr.bf16.gmra.mrb[28].mxu1 %v8365_v60 }
 0x183   :  { %6875 = vmatmul.mubr.bf16.gmra.mrb[28].mxu0 %v8365_v60  ;;  %6830 = vmatprep.mubr.bf16.mxu1 %v8222_v58 }
 0x184   :  { %6827 = vmatpush3.bf16.msra.mxu1 %v7336_v10 }
 0x185   :  { %6828 = vmatprep.subr.bf16.mxu1 %v7337_v11 }
 0x188   :  { %6829 = vmatpush3.bf16.msra.mxu1 %v7337_v11 }
 0x189   :  { %6878 = vmatprep.subr.bf16.mxu1 %v7338_v16 }
 0x18b   :  { %6831 = vmatmul.mubr.bf16.vlgmr.msra.gmra.mrb[32].mxu1 %v8236_v39 }
 0x18c   :  { %6834 = vmatprep.mubr.bf16.mxu1 %v8257_v41  ;;  %6879 = vmatpush3.bf16.msra.mxu1 %v7338_v16 }
 0x18d   :  { %6880 = vmatprep.subr.bf16.mxu1 %v7339_v17 }
 0x190   :  { %6881 = vmatpush3.bf16.msra.mxu1 %v7339_v17 }
 0x191   :  { %6882 = vmatprep.subr.bf16.mxu1 %v7340_v1 }
 0x193   :  { %6835 = vmatmul.mubr.bf16.gmra.mrb[36].mxu1 %v8280_v59 }
 0x194   :  { %6838 = vmatprep.mubr.bf16.mxu1 %v8301_v18  ;;  %6883 = vmatpush3.bf16.msra.mxu1 %v7340_v1 }
 0x195   :  { %6884 = vmatprep.subr.bf16.mxu1 %v7341_v20 }
 0x198   :  { %6885 = vmatpush3.bf16.msra.mxu1 %v7341_v20 }
 0x199   :  { %6886 = vmatprep.subr.bf16.mxu1 %v7342_v8 }
 0x19b   :  { %6839 = vmatmul.mubr.bf16.gmra.mrb[40].mxu1 %v8326_v35 }
 0x19c   :  { %6842 = vmatprep.mubr.bf16.mxu1 %v8348_v51  ;;  %6887 = vmatpush3.bf16.msra.mxu1 %v7342_v8 }
 0x19d   :  { %6888 = vmatprep.subr.bf16.mxu1 %v7343_v24 }
 0x1a0   :  { %6889 = vmatpush3.bf16.msra.mxu1 %v7343_v24 }
 0x1a1   :  { %6890 = vmatprep.subr.bf16.mxu1 %v7344_v25 }
 0x1a3   :  { %6843 = vmatmul.mubr.bf16.gmra.mrb[44].mxu1 %v8365_v60 }
 0x1a4   :  { %6891 = vmatpush3.bf16.msra.mxu1 %v7344_v25  ;;  %6894 = vmatprep.mubr.bf16.mxu1 %v8222_v58 }
 0x1a5   :  { %6892 = vmatprep.subr.bf16.mxu1 %v7345_v46 }
 0x1a8   :  { %6893 = vmatpush3.bf16.msra.mxu1 %v7345_v46 }
 0x1a9   :  { %6978 = vmatprep.subr.bf16.mxu1 %v8385_v63 }
 0x1ab   :  { %6895 = vmatmul.mubr.bf16.vlgmr.msra.gmra.mrb[48].mxu1 %v8236_v39 }
 0x1ac   :  { %6898 = vmatprep.mubr.bf16.mxu1 %v8257_v41  ;;  %6979 = vmatpush3.bf16.msra.mxu1 %v8385_v63 }
 0x1ad   :  { %6980 = vmatprep.subr.bf16.mxu1 %v7347_v22 }
 0x1b0   :  { %6981 = vmatpush3.bf16.msra.mxu1 %v7347_v22 }
 0x1b3   :  { %6899 = vmatmul.mubr.bf16.gmra.mrb[52].mxu1 %v8280_v59 }
 0x1b4   :  { %6902 = vmatprep.mubr.bf16.mxu1 %v8301_v18 }
 0x1bb   :  { %6903 = vmatmul.mubr.bf16.gmra.mrb[56].mxu1 %v8326_v35 }
 0x1bc   :  { %6906 = vmatprep.mubr.bf16.mxu1 %v8348_v51 }
 0x1c3   :  { %6907 = vmatmul.mubr.bf16.gmra.mrb[60].mxu1 %v8365_v60 }
 0x21d   :  { %v8469_v58 = vpop.f32.mrb[0].mxu1  ;;  %v8471_v26 = vpop.f32.mrb[0].mxu0 }
 0x21e   :  { %v8473_v39 = vpop.f32.mrb[1].mxu1  ;;  %v8475_v41 = vpop.f32.mrb[1].mxu0 }
 0x21f   :  { %v8477_v14 = vpop.f32.mrb[2].mxu1  ;;  %v8479_v27 = vpop.f32.mrb[2].mxu0 }
 0x220   :  { %v1450_v59 = vpack.c.bf16 %v8477_v14, %v8469_v58  ;;  %v8485_v28 = vpop.f32.mrb[3].mxu1  ;;  %v8487_v29 = vpop.f32.mrb[3].mxu0 }
 0x221   :  { %11567 = vst [vmem:[#allocation13_spill] sm:$0xff] %v8487_v29  ;;  %v1449_v33 = vpack.c.bf16 %v8485_v28, %v8473_v39 }
 0x223   :  { %6914 = vmatprep.mubr.msk.bf16.mxu0 %vm1493_vm0, %v1449_v33 }
 0x224   :  { %6915 = vmatmul.mubr.msk.bf16.vlgmr.msra.gmra.mrb[32].mxu0 %vm1493_vm0, %v1450_v59 }
 0x225   :  { %v8495_v30 = vpop.f32.mrb[4].mxu1 }
 0x226   :  { %v8497_v35 = vpop.f32.mrb[4].mxu0  ;;  %v8499_v9 = vpop.f32.mrb[5].mxu1 }
 0x227   :  { %v8501_v13 = vpop.f32.mrb[5].mxu0  ;;  %v8503_v40 = vpop.f32.mrb[6].mxu1 }
 0x228   :  { %11568 = vst [vmem:[#allocation14_spill] sm:$0xff] %v8501_v13  ;;  %v8505_v47 = vpop.f32.mrb[6].mxu0  ;;  %v1452_v42 = vpack.c.bf16 %v8503_v40, %v8495_v30  ;;  %v8511_v36 = vpop.f32.mrb[7].mxu1 }
 0x229   :  { %11569 = vst [vmem:[#allocation15_spill] sm:$0xff] %v8505_v47  ;;  %v8513_v37 = vpop.f32.mrb[7].mxu0  ;;  %v1451_v23 = vpack.c.bf16 %v8511_v36, %v8499_v9 }
 0x22a   :  { %11570 = vst [vmem:[#allocation16_spill] sm:$0xff] %v8513_v37 }
 0x22b   :  { %6918 = vmatprep.mubr.msk.bf16.mxu0 %vm1493_vm0, %v1451_v23 }
 0x22c   :  { %6919 = vmatmul.mubr.msk.bf16.gmra.mrb[36].mxu0 %vm1493_vm0, %v1452_v42 }
 0x22d   :  { %v8521_v48 = vpop.f32.mrb[8].mxu1 }
 0x22e   :  { %v8523_v49 = vpop.f32.mrb[8].mxu0  ;;  %v8525_v50 = vpop.f32.mrb[9].mxu1 }
 0x22f   :  { %11571 = vst [vmem:[#allocation17_spill] sm:$0xff] %v8523_v49  ;;  %v8527_v51 = vpop.f32.mrb[9].mxu0  ;;  %v8529_v21 = vpop.f32.mrb[10].mxu1 }
 0x230   :  { %11572 = vst [vmem:[#allocation18_spill] sm:$0xff] %v8527_v51  ;;  %v8531_v52 = vpop.f32.mrb[10].mxu0  ;;  %v1454_v53 = vpack.c.bf16 %v8529_v21, %v8521_v48  ;;  %v8537_v2 = vpop.f32.mrb[11].mxu1 }
 0x231   :  { %11573 = vst [vmem:[#allocation19_spill] sm:$0xff] %v8531_v52  ;;  %v8539_v31 = vpop.f32.mrb[11].mxu0  ;;  %v1453_v0 = vpack.c.bf16 %v8537_v2, %v8525_v50 }
 0x232   :  { %11574 = vst [vmem:[#allocation20_spill] sm:$0xff] %v8539_v31 }
 0x233   :  { %6922 = vmatprep.mubr.msk.bf16.mxu0 %vm1493_vm0, %v1453_v0 }
 0x234   :  { %6923 = vmatmul.mubr.msk.bf16.gmra.mrb[40].mxu0 %vm1493_vm0, %v1454_v53 }
 0x235   :  { %v8547_v19 = vpop.f32.mrb[12].mxu1 }
 0x236   :  { %v8549_v62 = vpop.f32.mrb[12].mxu0  ;;  %v8551_v15 = vpop.f32.mrb[13].mxu1 }
 0x237   :  { %11575 = vst [vmem:[#allocation21_spill] sm:$0xff] %v8549_v62  ;;  %v8553_v63 = vpop.f32.mrb[13].mxu0  ;;  %v8555_v3 = vpop.f32.mrb[14].mxu1 }
 0x238   :  { %11576 = vst [vmem:[#allocation22_spill] sm:$0xff] %v8553_v63  ;;  %v8557_v38 = vpop.f32.mrb[14].mxu0  ;;  %v1456_v4 = vpack.c.bf16 %v8555_v3, %v8547_v19  ;;  %v8563_v7 = vpop.f32.mrb[15].mxu1 }
 0x239   :  { %11577 = vst [vmem:[#allocation23_spill] sm:$0xff] %v8557_v38  ;;  %v8565_v10 = vpop.f32.mrb[15].mxu0  ;;  %v1455_v11 = vpack.c.bf16 %v8563_v7, %v8551_v15 }
 0x23a   :  { %11578 = vst [vmem:[#allocation24_spill] sm:$0xff] %v8565_v10 }
 0x23b   :  { %6926 = vmatprep.mubr.msk.bf16.mxu0 %vm1493_vm0, %v1455_v11 }
 0x23c   :  { %6927 = vmatmul.mubr.msk.bf16.gmra.mrb[44].mxu0 %vm1493_vm0, %v1456_v4 }
 0x23d   :  { %v8573_v17 = vpop.f32.mrb[16].mxu1 }
 0x23e   :  { %v8575_v1 = vpop.f32.mrb[16].mxu0  ;;  %v8577_v20 = vpop.f32.mrb[17].mxu1 }
 0x23f   :  { %v8579_v8 = vpop.f32.mrb[17].mxu0  ;;  %v8581_v24 = vpop.f32.mrb[18].mxu1 }
 0x240   :  { %v8583_v25 = vpop.f32.mrb[18].mxu0  ;;  %v1458_v22 = vpack.c.bf16 %v8581_v24, %v8573_v17  ;;  %v8589_v59 = vpop.f32.mrb[19].mxu1 }
 0x241   :  { %v2104_v46 = vpack.c.bf16 %v8583_v25, %v8575_v1  ;;  %v8591_v33 = vpop.f32.mrb[19].mxu0  ;;  %v1457_v42 = vpack.c.bf16 %v8589_v59, %v8577_v20 }
 0x242   :  { %v2103_v23 = vpack.c.bf16 %v8591_v33, %v8579_v8 }
 0x243   :  { %6930 = vmatprep.mubr.msk.bf16.mxu0 %vm1493_vm0, %v1457_v42 }
 0x244   :  { %6982 = vmatprep.mubr.msk.bf16.mxu1 %vm1493_vm0, %v2103_v23  ;;  %6931 = vmatmul.mubr.msk.bf16.gmra.mrb[48].mxu0 %vm1493_vm0, %v1458_v22 }
 0x245   :  { %6983 = vmatmul.mubr.msk.bf16.vlgmr.msra.gmra.mrb[64].mxu1 %vm1493_vm0, %v2104_v46  ;;  %v8601_v53 = vpop.f32.mrb[20].mxu1 }
 0x246   :  { %v8603_v0 = vpop.f32.mrb[20].mxu0  ;;  %v8605_v4 = vpop.f32.mrb[21].mxu1 }
 0x247   :  { %v8607_v11 = vpop.f32.mrb[21].mxu0  ;;  %v8609_v6 = vpop.f32.mrb[22].mxu1 }
 0x248   :  { %v8611_v16 = vpop.f32.mrb[22].mxu0  ;;  %v1460_v42 = vpack.c.bf16 %v8609_v6, %v8601_v53  ;;  %v8617_v23 = vpop.f32.mrb[23].mxu1 }
 0x249   :  { %v2106_v22 = vpack.c.bf16 %v8611_v16, %v8603_v0  ;;  %v8619_v46 = vpop.f32.mrb[23].mxu0  ;;  %v1459_v57 = vpack.c.bf16 %v8617_v23, %v8605_v4 }
 0x24a   :  { %v2105_v60 = vpack.c.bf16 %v8619_v46, %v8607_v11 }
 0x24b   :  { %6934 = vmatprep.mubr.msk.bf16.mxu0 %vm1493_vm0, %v1459_v57 }
 0x24c   :  { %6986 = vmatprep.mubr.msk.bf16.mxu1 %vm1493_vm0, %v2105_v60  ;;  %6935 = vmatmul.mubr.msk.bf16.gmra.mrb[52].mxu0 %vm1493_vm0, %v1460_v42 }
 0x24d   :  { %6987 = vmatmul.mubr.msk.bf16.gmra.mrb[68].mxu1 %vm1493_vm0, %v2106_v22  ;;  %v8629_v54 = vpop.f32.mrb[24].mxu1 }
 0x24e   :  { %v8631_v44 = vpop.f32.mrb[24].mxu0  ;;  %v8633_v18 = vpop.f32.mrb[25].mxu1 }
 0x24f   :  { %v8635_v34 = vpop.f32.mrb[25].mxu0  ;;  %v8637_v5 = vpop.f32.mrb[26].mxu1 }
 0x250   :  { %11579 = vst [vmem:[#allocation25_spill] sm:$0xff] %v8637_v5  ;;  %v8639_v55 = vpop.f32.mrb[26].mxu0  ;;  %v1462_v57 = vpack.c.bf16 %v8637_v5, %v8629_v54  ;;  %v8645_v42 = vpop.f32.mrb[27].mxu1 }
 0x251   :  { %11580 = vst [vmem:[#allocation26_spill] sm:$0xff] %v8639_v55  ;;  %v2108_v60 = vpack.c.bf16 %v8639_v55, %v8631_v44  ;;  %11581 = vst [vmem:[#allocation27_spill] sm:$0xff] %v8645_v42  ;;  %v8647_v22 = vpop.f32.mrb[27].mxu0  ;;  %v1461_v45 = vpack.c.bf16 %v8645_v42, %v8633_v18 }
 0x252   :  { %11582 = vst [vmem:[#allocation28_spill] sm:$0xff] %v8647_v22  ;;  %v2107_v32 = vpack.c.bf16 %v8647_v22, %v8635_v34 }
 0x253   :  { %6938 = vmatprep.mubr.msk.bf16.mxu0 %vm1493_vm0, %v1461_v45 }
 0x254   :  { %6990 = vmatprep.mubr.msk.bf16.mxu1 %vm1493_vm0, %v2107_v32  ;;  %6939 = vmatmul.mubr.msk.bf16.gmra.mrb[56].mxu0 %vm1493_vm0, %v1462_v57 }
 0x255   :  { %6991 = vmatmul.mubr.msk.bf16.gmra.mrb[72].mxu1 %vm1493_vm0, %v2108_v60  ;;  %v8657_v12 = vpop.f32.mrb[28].mxu1 }
 0x256   :  { %v8659_v56 = vpop.f32.mrb[28].mxu0  ;;  %v8661_v43 = vpop.f32.mrb[29].mxu1 }
 0x257   :  { %11583 = vst [vmem:[#allocation29_spill] sm:$0xff] %v8659_v56  ;;  %v8663_v61 = vpop.f32.mrb[29].mxu0  ;;  %v8665_v42 = vpop.f32.mrb[30].mxu1 }
 0x258   :  { %11584 = vst [vmem:[#allocation30_spill] sm:$0xff] %v8665_v42  ;;  %v8667_v55 = vpop.f32.mrb[30].mxu0  ;;  %v1464_v45 = vpack.c.bf16 %v8665_v42, %v8657_v12  ;;  %v8673_v57 = vpop.f32.mrb[31].mxu1 }
 0x259   :  { %11585 = vst [vmem:[#allocation31_spill] sm:$0xff] %v8667_v55  ;;  %v2110_v32 = vpack.c.bf16 %v8667_v55, %v8659_v56  ;;  %11586 = vst [vmem:[#allocation32_spill] sm:$0xff] %v8673_v57  ;;  %v8675_v60 = vpop.f32.mrb[31].mxu0  ;;  %v1463_v22 = vpack.c.bf16 %v8673_v57, %v8661_v43  ;;  %v11589_v55 = vpack.c.bf16 %v8487_v29, %v8475_v41 }
 0x25a   :  { %11587 = vst [vmem:[#allocation33_spill] sm:$0xff] %v8675_v60  ;;  %v2109_v5 = vpack.c.bf16 %v8675_v60, %v8663_v61 }
 0x25b   :  { %6942 = vmatprep.mubr.msk.bf16.mxu0 %vm1493_vm0, %v1463_v22 }
 0x25c   :  { %6994 = vmatprep.mubr.msk.bf16.mxu1 %vm1493_vm0, %v2109_v5  ;;  %6943 = vmatmul.mubr.msk.bf16.gmra.mrb[60].mxu0 %vm1493_vm0, %v1464_v45  ;;  %v11593_v45 = vpack.c.bf16 %v8479_v27, %v8471_v26 }
 0x25d   :  { %6995 = vmatmul.mubr.msk.bf16.gmra.mrb[76].mxu1 %vm1493_vm0, %v2110_v32  ;;  %6946 = vmatprep.mubr.msk.bf16.mxu0 %vm1493_vm0, %v11589_v55  ;;  %v11595_v55 = vpack.c.bf16 %v8513_v37, %v8501_v13 }
 0x25e   :  { %v8685_v42 = vpop.f32.mrb[32].mxu1 }
 0x25f   :  { %11588 = vst [vmem:[#allocation34_spill] sm:$0xff] %v8685_v42  ;;  %v8691_v56 = vpop.f32.mrb[33].mxu1 }
 0x260   :  { %11590 = vst [vmem:[#allocation35_spill] sm:$0xff] %v8691_v56  ;;  %v8693_v57 = vpop.f32.mrb[34].mxu1 }
 0x261   :  { %11591 = vst [vmem:[#allocation36_spill] sm:$0xff] %v8693_v57  ;;  %v1474_v22 = vpack.c.bf16 %v8693_v57, %v8685_v42  ;;  %v8697_v60 = vpop.f32.mrb[35].mxu1 }
 0x262   :  { %11592 = vst [vmem:[#allocation37_spill] sm:$0xff] %v8697_v60  ;;  %v1473_v5 = vpack.c.bf16 %v8697_v60, %v8691_v56 }
 0x264   :  { %6947 = vmatmul.mubr.msk.bf16.gmra.mrb[64].mxu0 %vm1493_vm0, %v11593_v45  ;;  %v11599_v45 = vpack.c.bf16 %v8505_v47, %v8497_v35 }
 0x265   :  { %6950 = vmatprep.mubr.msk.bf16.mxu0 %vm1493_vm0, %v11595_v55  ;;  %v11601_v55 = vpack.c.bf16 %v8539_v31, %v8527_v51 }
 0x266   :  { %v8705_v32 = vpop.f32.mrb[36].mxu1 }
 0x267   :  { %11594 = vst [vmem:[#allocation38_spill] sm:$0xff] %v8705_v32  ;;  %v8711_v29 = vpop.f32.mrb[37].mxu1 }
 0x268   :  { %11596 = vst [vmem:[#allocation39_spill] sm:$0xff] %v8711_v29  ;;  %v8713_v57 = vpop.f32.mrb[38].mxu1 }
 0x269   :  { %11597 = vst [vmem:[#allocation40_spill] sm:$0xff] %v8713_v57  ;;  %v1476_v42 = vpack.c.bf16 %v8713_v57, %v8705_v32  ;;  %v8717_v60 = vpop.f32.mrb[39].mxu1 }
 0x26a   :  { %11598 = vst [vmem:[#allocation41_spill] sm:$0xff] %v8717_v60  ;;  %v1475_v56 = vpack.c.bf16 %v8717_v60, %v8711_v29 }
 0x26c   :  { %6951 = vmatmul.mubr.msk.bf16.gmra.mrb[68].mxu0 %vm1493_vm0, %v11599_v45  ;;  %v11605_v45 = vpack.c.bf16 %v8531_v52, %v8523_v49 }
 0x26d   :  { %6954 = vmatprep.mubr.msk.bf16.mxu0 %vm1493_vm0, %v11601_v55  ;;  %v11607_v55 = vpack.c.bf16 %v8565_v10, %v8553_v63 }
 0x26e   :  { %v8725_v37 = vpop.f32.mrb[40].mxu1 }
 0x26f   :  { %11600 = vst [vmem:[#allocation42_spill] sm:$0xff] %v8725_v37  ;;  %v8731_v13 = vpop.f32.mrb[41].mxu1 }
 0x270   :  { %11602 = vst [vmem:[#allocation43_spill] sm:$0xff] %v8731_v13  ;;  %v8733_v57 = vpop.f32.mrb[42].mxu1 }
 0x271   :  { %11603 = vst [vmem:[#allocation44_spill] sm:$0xff] %v8733_v57  ;;  %v1478_v32 = vpack.c.bf16 %v8733_v57, %v8725_v37  ;;  %v8737_v60 = vpop.f32.mrb[43].mxu1 }
 0x272   :  { %11604 = vst [vmem:[#allocation45_spill] sm:$0xff] %v8737_v60  ;;  %v1477_v29 = vpack.c.bf16 %v8737_v60, %v8731_v13 }
 0x274   :  { %6955 = vmatmul.mubr.msk.bf16.gmra.mrb[72].mxu0 %vm1493_vm0, %v11605_v45  ;;  %v11611_v45 = vpack.c.bf16 %v8557_v38, %v8549_v62 }
 0x275   :  { %6958 = vmatprep.mubr.msk.bf16.mxu0 %vm1493_vm0, %v11607_v55 }
 0x276   :  { %v8745_v31 = vpop.f32.mrb[44].mxu1 }
 0x277   :  { %11606 = vst [vmem:[#allocation46_spill] sm:$0xff] %v8745_v31  ;;  %v8751_v51 = vpop.f32.mrb[45].mxu1 }
 0x278   :  { %11608 = vst [vmem:[#allocation47_spill] sm:$0xff] %v8751_v51  ;;  %v8753_v57 = vpop.f32.mrb[46].mxu1 }
 0x279   :  { %11609 = vst [vmem:[#allocation48_spill] sm:$0xff] %v8753_v57  ;;  %v1480_v37 = vpack.c.bf16 %v8753_v57, %v8745_v31  ;;  %v8757_v60 = vpop.f32.mrb[47].mxu1 }
 0x27a   :  { %11610 = vst [vmem:[#allocation49_spill] sm:$0xff] %v8757_v60  ;;  %v1479_v13 = vpack.c.bf16 %v8757_v60, %v8751_v51 }
 0x27c   :  { %6959 = vmatmul.mubr.msk.bf16.gmra.mrb[76].mxu0 %vm1493_vm0, %v11611_v45 }
 0x27d   :  { %6962 = vmatprep.mubr.msk.bf16.mxu0 %vm1493_vm0, %v1473_v5  ;;  %v1385_v5 = vld [vmem:[%s11474_s2] sm:$0xff] }
 0x27e   :  { %v6896_v10 = vpop.f32.mrb[48].mxu1 }
 0x27f   :  { %v1254_v55 = vpop.f32.mrb[49].mxu1 }
 0x280   :  { %v6897_v63 = vpop.f32.mrb[50].mxu1 }
 0x281   :  { %v3469_v52 = vpack.c.bf16 %v6897_v63, %v6896_v10  ;;  %v1257_v49 = vpop.f32.mrb[51].mxu1 }
 0x282   :  { %v3468_v47 = vpack.c.bf16 %v1257_v49, %v1254_v55  ;;  %v1388_v55 = vld [vmem:[%s11474_s2 + $0x18] sm:$0xff] }
 0x284   :  { %7078 = vmatprep.subr.bf16.mxu0 %v3468_v47  ;;  %6963 = vmatmul.mubr.msk.bf16.gmra.mrb[80].mxu0 %vm1493_vm0, %v1474_v22 }
 0x285   :  { %7079 = vmatpush3.bf16.msra.mxu0 %v3468_v47  ;;  %6966 = vmatprep.mubr.msk.bf16.mxu0 %vm1493_vm0, %v1475_v56 }
 0x286   :  { %v6900_v57 = vpop.f32.mrb[52].mxu1  ;;  %7080 = vmatprep.subr.bf16.mxu0 %v3469_v52 }
 0x287   :  { %v1270_v60 = vpop.f32.mrb[53].mxu1 }
 0x288   :  { %v6901_v51 = vpop.f32.mrb[54].mxu1 }
 0x289   :  { %v3471_v31 = vpack.c.bf16 %v6901_v51, %v6900_v57  ;;  %v1273_v45 = vpop.f32.mrb[55].mxu1  ;;  %7081 = vmatpush3.bf16.msra.mxu0 %v3469_v52 }
 0x28a   :  { %v3470_v38 = vpack.c.bf16 %v1273_v45, %v1270_v60  ;;  %v1321_v60 = vld [vmem:[%s11473_s1] sm:$0xff] }
 0x28c   :  { %7082 = vmatprep.subr.bf16.mxu0 %v3470_v38  ;;  %6967 = vmatmul.mubr.msk.bf16.gmra.mrb[84].mxu0 %vm1493_vm0, %v1476_v42 }
 0x28d   :  { %7083 = vmatpush3.bf16.msra.mxu0 %v3470_v38  ;;  %6970 = vmatprep.mubr.msk.bf16.mxu0 %vm1493_vm0, %v1477_v29 }
 0x28e   :  { %v6904_v63 = vpop.f32.mrb[56].mxu1  ;;  %7084 = vmatprep.subr.bf16.mxu0 %v3471_v31 }
 0x28f   :  { %v1286_v49 = vpop.f32.mrb[57].mxu1 }
 0x290   :  { %v6905_v47 = vpop.f32.mrb[58].mxu1 }
 0x291   :  { %v3473_v10 = vpack.c.bf16 %v6905_v47, %v6904_v63  ;;  %v1289_v22 = vpop.f32.mrb[59].mxu1  ;;  %7085 = vmatpush3.bf16.msra.mxu0 %v3471_v31  ;;  %v1323_v31 = vld [vmem:[%s11473_s1 + $0x10] sm:$0xff]  ;;  %v1322_v63 = vld [vmem:[%s11473_s1 + $0x8] sm:$0xff] }
 0x292   :  { %v3472_v56 = vpack.c.bf16 %v1289_v22, %v1286_v49  ;;  %v1881_v45 = vmul.f32 %v8469_v58, %v1323_v31  ;;  %v1879_v22 = vmul.f32 %v1321_v60, %v8473_v39  ;;  %v1391_v39 = vld [vmem:[%s11474_s2 + $0x30] sm:$0xff]  ;;  %v1389_v60 = vld [vmem:[%s11474_s2 + $0x20] sm:$0xff] }
 0x294   :  { %7086 = vmatprep.subr.bf16.mxu0 %v3472_v56  ;;  %6971 = vmatmul.mubr.msk.bf16.gmra.mrb[88].mxu0 %vm1493_vm0, %v1478_v32 }
 0x295   :  { %7087 = vmatpush3.bf16.msra.mxu0 %v3472_v56  ;;  %6974 = vmatprep.mubr.msk.bf16.mxu0 %vm1493_vm0, %v1479_v13  ;;  %v1387_v13 = vld [vmem:[%s11474_s2 + $0x10] sm:$0xff] }
 0x296   :  { %v6908_v51 = vpop.f32.mrb[60].mxu1  ;;  %7088 = vmatprep.subr.bf16.mxu0 %v3473_v10 }
 0x297   :  { %v1302_v52 = vpop.f32.mrb[61].mxu1 }
 0x298   :  { %v6909_v38 = vpop.f32.mrb[62].mxu1 }
 0x299   :  { %v3475_v42 = vpack.c.bf16 %v6909_v38, %v6908_v51  ;;  %v1305_v57 = vpop.f32.mrb[63].mxu1  ;;  %7089 = vmatpush3.bf16.msra.mxu0 %v3473_v10  ;;  %v1386_v10 = vld [vmem:[%s11474_s2 + $0x8] sm:$0xff] }
 0x29a   :  { %v3474_v29 = vpack.c.bf16 %v1305_v57, %v1302_v52  ;;  %v1880_v57 = vmul.f32 %v1322_v63, %v8485_v28 }
 0x29c   :  { %7090 = vmatprep.subr.bf16.mxu0 %v3474_v29  ;;  %6975 = vmatmul.mubr.msk.bf16.gmra.mrb[92].mxu0 %vm1493_vm0, %v1480_v37  ;;  %v1324_v37 = vld [vmem:[%s11473_s1 + $0x18] sm:$0xff] }
 0x29d   :  { %7091 = vmatpush3.bf16.msra.mxu0 %v3474_v29  ;;  %v1882_v52 = vmul.f32 %v8477_v14, %v1324_v37  ;;  %v1325_v14 = vld [vmem:[%s11473_s1 + $0x20] sm:$0xff] }
 0x29e   :  { %7092 = vmatprep.subr.bf16.mxu0 %v3475_v42 }
 0x2a1   :  { %7093 = vmatpush3.bf16.msra.mxu0 %v3475_v42 }
 0x2f7   :  { %v6916_v32 = vpop.f32.mrb[32].mxu0 }
 0x2f8   :  { %v1945_v49 = vmul.f32 %v6916_v32, %v1387_v13  ;;  %v1624_v47 = vpop.f32.mrb[33].mxu0  ;;  %v1327_v32 = vld [vmem:[%s11473_s1 + $0x30] sm:$0xff] }
 0x2f9   :  { %v1943_v56 = vmul.f32 %v1624_v47, %v1385_v5  ;;  %v6917_v51 = vpop.f32.mrb[34].mxu0  ;;  %v1328_v5 = vld [vmem:[%s11473_s1 + $0x38] sm:$0xff]  ;;  %v1885_v63 = vmul.f32 %v8495_v30, %v1327_v32 }
 0x2fa   :  { %v8800_v38 = vadd.f32 %v1945_v49, %v1881_v45  ;;  %v1946_v42 = vmul.f32 %v6917_v51, %v1388_v55  ;;  %v1627_v58 = vpop.f32.mrb[35].mxu0  ;;  %v1392_v45 = vld [vmem:[%s11474_s2 + $0x38] sm:$0xff]  ;;  %v1326_v49 = vld [vmem:[%s11473_s1 + $0x28] sm:$0xff] }
 0x2fb   :  { %v2007_v29 = vadd.f32 %v1943_v56, %v1879_v22  ;;  %v1944_v31 = vmul.f32 %v1627_v58, %v1386_v10  ;;  %v1390_v22 = vld [vmem:[%s11474_s2 + $0x28] sm:$0xff]  ;;  %v1883_v56 = vmul.f32 %v1325_v14, %v8499_v9  ;;  %v1331_v9 = vld [vmem:[%s11473_s1 + $0x50] sm:$0xff]  ;;  %v1329_v14 = vld [vmem:[%s11473_s1 + $0x40] sm:$0xff] }
 0x2fc   :  { %v8803_v13 = vadd.f32 %v1946_v42, %v1882_v52  ;;  %v1886_v52 = vmul.f32 %v8503_v40, %v1328_v5  ;;  %v1395_v40 = vld [vmem:[%s11474_s2 + $0x50] sm:$0xff]  ;;  %v1332_v5 = vld [vmem:[%s11473_s1 + $0x58] sm:$0xff] }
 0x2fd   :  { %v2008_v62 = vadd.f32 %v1944_v31, %v1880_v57  ;;  %v1884_v57 = vmul.f32 %v1326_v49, %v8511_v36  ;;  %v1330_v49 = vld [vmem:[%s11473_s1 + $0x48] sm:$0xff] }
 0x2ff   :  { %v2280_v37 = vpack.c.bf16 %v2008_v62, %v2007_v29  ;;  %v6920_v55 = vpop.f32.mrb[36].mxu0 }
 0x300   :  { %v1949_v47 = vmul.f32 %v6920_v55, %v1391_v39  ;;  %v1640_v10 = vpop.f32.mrb[37].mxu0 }
 0x301   :  { %v1947_v62 = vmul.f32 %v1640_v10, %v1389_v60  ;;  %v6921_v51 = vpop.f32.mrb[38].mxu0  ;;  %7014 = vmatprep.mubr.msk.bf16.mxu1 %vm1493_vm0, %v2280_v37  ;;  %v1393_v60 = vld [vmem:[%s11474_s2 + $0x40] sm:$0xff] }
 0x302   :  { %v8835_v42 = vadd.f32 %v1949_v47, %v1885_v63  ;;  %v1950_v30 = vmul.f32 %v6921_v51, %v1392_v45  ;;  %v1643_v58 = vpop.f32.mrb[39].mxu0  ;;  %v1396_v45 = vld [vmem:[%s11474_s2 + $0x58] sm:$0xff]  ;;  %v1889_v63 = vmul.f32 %v8521_v48, %v1331_v9 }
 0x303   :  { %v8838_v29 = vadd.f32 %v1947_v62, %v1883_v56  ;;  %v1948_v31 = vmul.f32 %v1643_v58, %v1390_v22  ;;  %v1394_v22 = vld [vmem:[%s11474_s2 + $0x48] sm:$0xff]  ;;  %v1887_v56 = vmul.f32 %v1329_v14, %v8525_v50  ;;  %v1333_v14 = vld [vmem:[%s11473_s1 + $0x60] sm:$0xff] }
 0x304   :  { %v8840_v32 = vadd.f32 %v1950_v30, %v1886_v52  ;;  %v1890_v52 = vmul.f32 %v8529_v21, %v1332_v5  ;;  %v1399_v21 = vld [vmem:[%s11474_s2 + $0x70] sm:$0xff]  ;;  %v1336_v5 = vld [vmem:[%s11473_s1 + $0x78] sm:$0xff] }
 0x305   :  { %v8845_v39 = vadd.f32 %v1948_v31, %v1884_v57  ;;  %v1888_v57 = vmul.f32 %v1330_v49, %v8537_v2  ;;  %v1400_v49 = vld [vmem:[%s11474_s2 + $0x78] sm:$0xff] }
 0x306   :  { %v2090_v2 = vld [vmem:[%s11476_s4 + $0x18] sm:$0xff] }
 0x307   :  { %v6924_v55 = vpop.f32.mrb[40].mxu0 }
 0x308   :  { %v1953_v47 = vmul.f32 %v6924_v55, %v1395_v40  ;;  %v1656_v10 = vpop.f32.mrb[41].mxu0  ;;  %v1335_v55 = vld [vmem:[%s11473_s1 + $0x70] sm:$0xff] }
 0x309   :  { %v1951_v62 = vmul.f32 %v1656_v10, %v1393_v60  ;;  %v6925_v51 = vpop.f32.mrb[42].mxu0  ;;  %v1397_v60 = vld [vmem:[%s11474_s2 + $0x60] sm:$0xff]  ;;  %v1334_v10 = vld [vmem:[%s11473_s1 + $0x68] sm:$0xff] }
 0x30a   :  { %v8875_v30 = vadd.f32 %v1953_v47, %v1889_v63  ;;  %v1954_v58 = vmul.f32 %v6925_v51, %v1396_v45  ;;  %v1659_v48 = vpop.f32.mrb[43].mxu0  ;;  %v1893_v47 = vmul.f32 %v8547_v19, %v1335_v55  ;;  %v1891_v51 = vmul.f32 %v1333_v14, %v8551_v15  ;;  %v1337_v15 = vld [vmem:[%s11473_s1 + $0x80] sm:$0xff] }
 0x30b   :  { %v8878_v31 = vadd.f32 %v1951_v62, %v1887_v56  ;;  %v1952_v9 = vmul.f32 %v1659_v48, %v1394_v22  ;;  %v1398_v62 = vld [vmem:[%s11474_s2 + $0x68] sm:$0xff]  ;;  %v1894_v48 = vmul.f32 %v8555_v3, %v1336_v5  ;;  %v1892_v55 = vmul.f32 %v1334_v10, %v8563_v7  ;;  %v1340_v7 = vld [vmem:[%s11473_s1 + $0x98] sm:$0xff] }
 0x30c   :  { %v8880_v40 = vadd.f32 %v1954_v58, %v1890_v52  ;;  %v2074_v5 = vld [vmem:[%s11475_s3 + $0x18] sm:$0xff]  ;;  %v1898_v45 = vmul.f32 %v8581_v24, %v1340_v7 }
 0x30d   :  { %v8885_v50 = vadd.f32 %v1952_v9, %v1888_v57 }
 0x30f   :  { %v6928_v63 = vpop.f32.mrb[44].mxu0 }
 0x310   :  { %v1957_v22 = vmul.f32 %v6928_v63, %v1399_v21  ;;  %v1672_v56 = vpop.f32.mrb[45].mxu0  ;;  %v1339_v21 = vld [vmem:[%s11473_s1 + $0x90] sm:$0xff] }
 0x311   :  { %v1955_v52 = vmul.f32 %v1672_v56, %v1397_v60  ;;  %v6929_v58 = vpop.f32.mrb[46].mxu0  ;;  %v2073_v63 = vld [vmem:[%s11475_s3 + $0x10] sm:$0xff]  ;;  %v2071_v60 = vld [vmem:[%s11475_s3] sm:$0xff] }
 0x312   :  { %v8915_v57 = vadd.f32 %v1957_v22, %v1893_v47  ;;  %v1958_v9 = vmul.f32 %v6929_v58, %v1400_v49  ;;  %v1675_v19 = vpop.f32.mrb[47].mxu0  ;;  %v1338_v47 = vld [vmem:[%s11473_s1 + $0x88] sm:$0xff]  ;;  %v1403_v22 = vld [vmem:[%s11474_s2 + $0x90] sm:$0xff]  ;;  %v1401_v58 = vld [vmem:[%s11474_s2 + $0x80] sm:$0xff] }
 0x313   :  { %v8927_v14 = vadd.f32 %v1955_v52, %v1891_v51  ;;  %v1956_v3 = vmul.f32 %v1675_v19, %v1398_v62  ;;  %v2089_v56 = vld [vmem:[%s11476_s4 + $0x10] sm:$0xff]  ;;  %v1897_v62 = vmul.f32 %v8573_v17, %v1339_v21  ;;  %v2072_v51 = vld [vmem:[%s11475_s3 + $0x8] sm:$0xff]  ;;  %v1895_v19 = vmul.f32 %v1337_v15, %v8577_v20  ;;  %v1404_v52 = vld [vmem:[%s11474_s2 + $0x98] sm:$0xff] }
 0x314   :  { %11612 = vst [vmem:[#allocation50_spill] sm:$0xff] %v8915_v57  ;;  %v8938_v49 = vadd.f32 %v1958_v9, %v1894_v48  ;;  %v2087_v48 = vld [vmem:[%s11476_s4] sm:$0xff]  ;;  %v2234_v9 = vmul.f32 %v8575_v1, %v2073_v63  ;;  %v2232_v17 = vmul.f32 %v2071_v60, %v8579_v8  ;;  %v2235_v1 = vmul.f32 %v8583_v25, %v2074_v5  ;;  %v1402_v60 = vld [vmem:[%s11474_s2 + $0x88] sm:$0xff]  ;;  %v1343_v5 = vld [vmem:[%s11473_s1 + $0xb0] sm:$0xff] }
 0x315   :  { %v8943_v10 = vadd.f32 %v1956_v3, %v1892_v55  ;;  %v2088_v55 = vld [vmem:[%s11476_s4 + $0x8] sm:$0xff]  ;;  %v1896_v36 = vmul.f32 %v1338_v47, %v8589_v59  ;;  %v2233_v37 = vmul.f32 %v2072_v51, %v8591_v33  ;;  %v2077_v59 = vld [vmem:[%s11475_s3 + $0x30] sm:$0xff]  ;;  %v1341_v33 = vld [vmem:[%s11473_s1 + $0xa0] sm:$0xff] }
 0x316   :  { %11613 = vst [vmem:[#allocation51_spill] sm:$0xff] %v8938_v49 }
 0x317   :  { %v6932_v21 = vpop.f32.mrb[48].mxu0 }
 0x318   :  { %v6984_v3 = vpop.f32.mrb[64].mxu1  ;;  %v1961_v20 = vmul.f32 %v6932_v21, %v1403_v22  ;;  %v1688_v8 = vpop.f32.mrb[49].mxu0 }
 0x319   :  { %v2250_v63 = vmul.f32 %v6984_v3, %v2089_v56  ;;  %v2169_v15 = vpop.f32.mrb[65].mxu1  ;;  %v1959_v28 = vmul.f32 %v1688_v8, %v1401_v58  ;;  %v6933_v7 = vpop.f32.mrb[50].mxu0  ;;  %v2091_v8 = vld [vmem:[%s11476_s4 + $0x20] sm:$0xff] }
 0x31a   :  { %v2248_v24 = vmul.f32 %v2169_v15, %v2087_v48  ;;  %v6985_v25 = vpop.f32.mrb[66].mxu1  ;;  %v8987_v22 = vadd.f32 %v1961_v20, %v1897_v62  ;;  %v1962_v21 = vmul.f32 %v6933_v7, %v1404_v52  ;;  %v1691_v57 = vpop.f32.mrb[51].mxu0  ;;  %v2075_v62 = vld [vmem:[%s11475_s3 + $0x20] sm:$0xff]  ;;  %v2078_v52 = vld [vmem:[%s11475_s3 + $0x38] sm:$0xff] }
 0x31b   :  { %v2266_v56 = vadd.f32 %v2250_v63, %v2234_v9  ;;  %v2251_v3 = vmul.f32 %v6985_v25, %v2090_v2  ;;  %v2172_v49 = vpop.f32.mrb[67].mxu1  ;;  %v8995_v47 = vadd.f32 %v1959_v28, %v1895_v19  ;;  %v1960_v58 = vmul.f32 %v1691_v57, %v1402_v60  ;;  %v1344_v2 = vld [vmem:[%s11473_s1 + $0xb8] sm:$0xff]  ;;  %v1342_v57 = vld [vmem:[%s11473_s1 + $0xa8] sm:$0xff]  ;;  %v1405_v63 = vld [vmem:[%s11474_s2 + $0xa0] sm:$0xff] }
 0x31c   :  { %v2264_v51 = vadd.f32 %v2248_v24, %v2232_v17  ;;  %v2249_v48 = vmul.f32 %v2172_v49, %v2088_v55  ;;  %v9006_v9 = vadd.f32 %v1962_v21, %v1898_v45  ;;  %v1901_v28 = vmul.f32 %v8601_v53, %v1343_v5  ;;  %v1407_v17 = vld [vmem:[%s11474_s2 + $0xb0] sm:$0xff]  ;;  %v2076_v53 = vld [vmem:[%s11475_s3 + $0x28] sm:$0xff]  ;;  %v1408_v25 = vld [vmem:[%s11474_s2 + $0xb8] sm:$0xff] }
 0x31d   :  { %v2267_v20 = vadd.f32 %v2251_v3, %v2235_v1  ;;  %v9012_v49 = vadd.f32 %v1960_v58, %v1896_v36  ;;  %v2093_v55 = vld [vmem:[%s11476_s4 + $0x30] sm:$0xff]  ;;  %v2238_v45 = vmul.f32 %v8603_v0, %v2077_v59  ;;  %v1899_v1 = vmul.f32 %v1341_v33, %v8605_v4  ;;  %v2094_v5 = vld [vmem:[%s11476_s4 + $0x38] sm:$0xff]  ;;  %v1406_v33 = vld [vmem:[%s11474_s2 + $0xa8] sm:$0xff] }
 0x31e   :  { %v2265_v19 = vadd.f32 %v2249_v48, %v2233_v37  ;;  %v2236_v0 = vmul.f32 %v2075_v62, %v8607_v11  ;;  %v1902_v4 = vmul.f32 %v8609_v6, %v1344_v2  ;;  %v1900_v11 = vmul.f32 %v1342_v57, %v8617_v23 }
 0x31f   :  { %v9027_v37 = vpack.c.bf16 %v2267_v20, %v2266_v56  ;;  %v6936_v24 = vpop.f32.mrb[52].mxu0  ;;  %v2239_v56 = vmul.f32 %v8611_v16, %v2078_v52  ;;  %v2237_v58 = vmul.f32 %v2076_v53, %v8619_v46  ;;  %v1347_v52 = vld [vmem:[%s11473_s1 + $0xd0] sm:$0xff]  ;;  %v1345_v53 = vld [vmem:[%s11473_s1 + $0xc0] sm:$0xff] }
 0x320   :  { %v2312_v60 = vpack.c.bf16 %v2265_v19, %v2264_v51  ;;  %v6988_v7 = vpop.f32.mrb[68].mxu1  ;;  %v1965_v21 = vmul.f32 %v6936_v24, %v1407_v17  ;;  %v1704_v3 = vpop.f32.mrb[53].mxu0  ;;  %v2092_v51 = vld [vmem:[%s11476_s4 + $0x28] sm:$0xff]  ;;  %v2081_v46 = vld [vmem:[%s11475_s3 + $0x50] sm:$0xff] }
 0x321   :  { %v2254_v6 = vmul.f32 %v6988_v7, %v2093_v55  ;;  %v2185_v59 = vpop.f32.mrb[69].mxu1  ;;  %v1963_v48 = vmul.f32 %v1704_v3, %v1405_v63  ;;  %v6937_v2 = vpop.f32.mrb[54].mxu0  ;;  %v1348_v7 = vld [vmem:[%s11473_s1 + $0xd8] sm:$0xff] }
 0x322   :  { %v2252_v62 = vmul.f32 %v2185_v59, %v2091_v8  ;;  %v6989_v16 = vpop.f32.mrb[70].mxu1  ;;  %7286 = vmatprep.subr.msk.bf16.mxu1 %vm1493_vm0, %v2312_v60  ;;  %v2417_v23 = vsel %vm1493_vm0, %v2312_v60, 0  ;;  %v9059_v20 = vadd.f32 %v1965_v21, %v1901_v28  ;;  %v1966_v19 = vmul.f32 %v6937_v2, %v1408_v25  ;;  %v1707_v55 = vpop.f32.mrb[55].mxu0  ;;  %v2082_v25 = vld [vmem:[%s11475_s3 + $0x58] sm:$0xff]  ;;  %v1346_v21 = vld [vmem:[%s11473_s1 + $0xc8] sm:$0xff]  ;;  %v1411_v59 = vld [vmem:[%s11474_s2 + $0xd0] sm:$0xff] }
 0x323   :  { %v2270_v57 = vadd.f32 %v2254_v6, %v2238_v45  ;;  %v2255_v17 = vmul.f32 %v6989_v16, %v2094_v5  ;;  %v2188_v24 = vpop.f32.mrb[71].mxu1  ;;  %6999 = vmatpush3.bf16.xpose.msra.mxu1 %v2417_v23  ;;  %v9067_v63 = vadd.f32 %v1963_v48, %v1899_v1  ;;  %v1964_v60 = vmul.f32 %v1707_v55, %v1406_v33  ;;  %v2079_v45 = vld [vmem:[%s11475_s3 + $0x40] sm:$0xff]  ;;  %v2097_v33 = vld [vmem:[%s11476_s4 + $0x50] sm:$0xff] }
 0x324   :  { %v2268_v8 = vadd.f32 %v2252_v62, %v2236_v0  ;;  %v2253_v28 = vmul.f32 %v2188_v24, %v2092_v51  ;;  %7287 = vmatprep.subr.msk.bf16.mxu1 %vm1493_vm0, %v9027_v37  ;;  %v9080_v1 = vadd.f32 %v1966_v19, %v1902_v4  ;;  %v1905_v5 = vmul.f32 %v8629_v54, %v1347_v52  ;;  %v2080_v54 = vld [vmem:[%s11475_s3 + $0x48] sm:$0xff]  ;;  %v2095_v48 = vld [vmem:[%s11476_s4 + $0x40] sm:$0xff]  ;;  %v2098_v19 = vld [vmem:[%s11476_s4 + $0x58] sm:$0xff] }
 0x325   :  { %v2271_v0 = vadd.f32 %v2255_v17, %v2239_v56  ;;  %v9086_v6 = vadd.f32 %v1964_v60, %v1900_v11  ;;  %v2242_v4 = vmul.f32 %v8631_v44, %v2081_v46  ;;  %v1903_v56 = vmul.f32 %v1345_v53, %v8633_v18  ;;  %v11614_v18 = vld [vmem:[#allocation25_spill] sm:$0xff]  ;;  %v11615_v17 = vld [vmem:[#allocation26_spill] sm:$0xff] }
 0x326   :  { %v2269_v3 = vadd.f32 %v2253_v28, %v2237_v58  ;;  %v1409_v58 = vld [vmem:[%s11474_s2 + $0xc0] sm:$0xff]  ;;  %v2240_v44 = vmul.f32 %v2079_v45, %v8635_v34  ;;  %v1906_v62 = vmul.f32 %v11614_v18, %v1348_v7  ;;  %v2243_v55 = vmul.f32 %v11615_v17, %v2082_v25  ;;  %v11616_v34 = vld [vmem:[#allocation27_spill] sm:$0xff]  ;;  %v2096_v45 = vld [vmem:[%s11476_s4 + $0x48] sm:$0xff] }
 0x327   :  { %v9101_v51 = vpack.c.bf16 %v2271_v0, %v2270_v57  ;;  %v6940_v23 = vpop.f32.mrb[56].mxu0  ;;  %v1412_v57 = vld [vmem:[%s11474_s2 + $0xd8] sm:$0xff]  ;;  %v1904_v24 = vmul.f32 %v1346_v21, %v11616_v34  ;;  %v2420_v21 = vsel %vm1493_vm0, %v9027_v37, 0  ;;  %v1349_v37 = vld [vmem:[%s11473_s1 + $0xe0] sm:$0xff] }
 0x328   :  { %v9113_v16 = vpack.c.bf16 %v2269_v3, %v2268_v8  ;;  %v6992_v52 = vpop.f32.mrb[72].mxu1  ;;  %v1969_v46 = vmul.f32 %v6940_v23, %v1411_v59  ;;  %v1720_v60 = vpop.f32.mrb[57].mxu0  ;;  %v1410_v8 = vld [vmem:[%s11474_s2 + $0xc8] sm:$0xff]  ;;  %v11617_v7 = vld [vmem:[#allocation28_spill] sm:$0xff]  ;;  %v1351_v59 = vld [vmem:[%s11473_s1 + $0xf0] sm:$0xff] }
 0x329   :  { %v2258_v53 = vmul.f32 %v6992_v52, %v2097_v33  ;;  %v2201_v28 = vpop.f32.mrb[73].mxu1  ;;  %v2241_v0 = vmul.f32 %v2080_v54, %v11617_v7  ;;  %v1967_v3 = vmul.f32 %v1720_v60, %v1409_v58  ;;  %v6941_v11 = vpop.f32.mrb[58].mxu0  ;;  %v2085_v54 = vld [vmem:[%s11475_s3 + $0x70] sm:$0xff] }
 0x32a   :  { %v2256_v18 = vmul.f32 %v2201_v28, %v2095_v48  ;;  %v6993_v25 = vpop.f32.mrb[74].mxu1  ;;  %v9135_v33 = vadd.f32 %v1969_v46, %v1905_v5  ;;  %v1970_v52 = vmul.f32 %v6941_v11, %v1412_v57  ;;  %v1723_v34 = vpop.f32.mrb[59].mxu0  ;;  %v1352_v11 = vld [vmem:[%s11473_s1 + $0xf8] sm:$0xff]  ;;  %v1415_v28 = vld [vmem:[%s11474_s2 + $0xf0] sm:$0xff] }
 0x32b   :  { %v2274_v23 = vadd.f32 %v2258_v53, %v2242_v4  ;;  %v2259_v17 = vmul.f32 %v6993_v25, %v2098_v19  ;;  %v2204_v2 = vpop.f32.mrb[75].mxu1  ;;  %7001 = vmatpush3.bf16.xpose.msra.mxu1 %v2420_v21  ;;  %v9143_v58 = vadd.f32 %v1967_v3, %v1903_v56  ;;  %v1968_v60 = vmul.f32 %v1723_v34, %v1410_v8  ;;  %v2083_v4 = vld [vmem:[%s11475_s3 + $0x60] sm:$0xff]  ;;  %v2086_v57 = vld [vmem:[%s11475_s3 + $0x78] sm:$0xff]  ;;  %v1350_v19 = vld [vmem:[%s11473_s1 + $0xe8] sm:$0xff] }
 0x32c   :  { %11618 = vst [vmem:[#allocation25_spill] sm:$0xff] %v9135_v33  ;;  %v2272_v48 = vadd.f32 %v2256_v18, %v2240_v44  ;;  %v2257_v5 = vmul.f32 %v2204_v2, %v2096_v45  ;;  %7288 = vmatprep.subr.msk.bf16.mxu1 %vm1493_vm0, %v9113_v16  ;;  %v9156_v56 = vadd.f32 %v1970_v52, %v1906_v62  ;;  %v2101_v8 = vld [vmem:[%s11476_s4 + $0x70] sm:$0xff]  ;;  %v11620_v62 = vld [vmem:[#allocation29_spill] sm:$0xff]  ;;  %v2102_v34 = vld [vmem:[%s11476_s4 + $0x78] sm:$0xff] }
 0x32d   :  { %v2275_v44 = vadd.f32 %v2259_v17, %v2243_v55  ;;  %v1909_v2 = vmul.f32 %v8657_v12, %v1351_v59  ;;  %v9162_v46 = vadd.f32 %v1968_v60, %v1904_v24  ;;  %v2246_v45 = vmul.f32 %v11620_v62, %v2085_v54  ;;  %v2084_v12 = vld [vmem:[%s11475_s3 + $0x68] sm:$0xff]  ;;  %v2099_v3 = vld [vmem:[%s11476_s4 + $0x60] sm:$0xff]  ;;  %v1416_v17 = vld [vmem:[%s11474_s2 + $0xf8] sm:$0xff] }
 0x32e   :  { %11619 = vst [vmem:[#allocation26_spill] sm:$0xff] %v9156_v56  ;;  %v2273_v53 = vadd.f32 %v2257_v5, %v2241_v0  ;;  %v1907_v55 = vmul.f32 %v1349_v37, %v8661_v43  ;;  %v1413_v0 = vld [vmem:[%s11474_s2 + $0xe0] sm:$0xff]  ;;  %v2244_v18 = vmul.f32 %v2083_v4, %v8663_v61  ;;  %v11621_v43 = vld [vmem:[#allocation30_spill] sm:$0xff]  ;;  %v11622_v54 = vld [vmem:[#allocation31_spill] sm:$0xff] }
 0x32f   :  { %v9177_v7 = vpack.c.bf16 %v2275_v44, %v2274_v23  ;;  %v1910_v25 = vmul.f32 %v11621_v43, %v1352_v11  ;;  %v6944_v52 = vpop.f32.mrb[60].mxu0  ;;  %v2247_v37 = vmul.f32 %v11622_v54, %v2086_v57  ;;  %v11623_v61 = vld [vmem:[#allocation32_spill] sm:$0xff]  ;;  %v11624_v62 = vld [vmem:[#allocation33_spill] sm:$0xff] }
 0x330   :  { %v9189_v59 = vpack.c.bf16 %v2273_v53, %v2272_v48  ;;  %v6996_v23 = vpop.f32.mrb[76].mxu1  ;;  %v1908_v60 = vmul.f32 %v1350_v19, %v11623_v61  ;;  %v1973_v5 = vmul.f32 %v6944_v52, %v1415_v28  ;;  %v1736_v11 = vpop.f32.mrb[61].mxu0  ;;  %v1414_v48 = vld [vmem:[%s11474_s2 + $0xe8] sm:$0xff]  ;;  %v2245_v43 = vmul.f32 %v2084_v12, %v11624_v62 }
 0x331   :  { %v2262_v4 = vmul.f32 %v6996_v23, %v2101_v8  ;;  %v2217_v44 = vpop.f32.mrb[77].mxu1  ;;  %v2100_v53 = vld [vmem:[%s11476_s4 + $0x68] sm:$0xff]  ;;  %v1971_v24 = vmul.f32 %v1736_v11, %v1413_v0  ;;  %v6945_v36 = vpop.f32.mrb[62].mxu0  ;;  %v2423_v19 = vsel %vm1493_vm0, %v9113_v16, 0  ;;  %v1355_v16 = vld [vmem:[%s11473_s1 + $0x110] sm:$0xff]  ;;  %v2426_v62 = vsel %vm1493_vm0, %v9101_v51, 0 }
 0x332   :  { %v2260_v21 = vmul.f32 %v2217_v44, %v2099_v3  ;;  %v6997_v57 = vpop.f32.mrb[78].mxu1  ;;  %v9208_v28 = vadd.f32 %v1973_v5, %v1909_v2  ;;  %v1974_v52 = vmul.f32 %v6945_v36, %v1416_v17  ;;  %v1739_v54 = vpop.f32.mrb[63].mxu0  ;;  %v1354_v5 = vld [vmem:[%s11473_s1 + $0x108] sm:$0xff] }
 0x333   :  { %v2278_v8 = vadd.f32 %v2262_v4, %v2246_v45  ;;  %v2263_v23 = vmul.f32 %v6997_v57, %v2102_v34  ;;  %v2220_v61 = vpop.f32.mrb[79].mxu1  ;;  %7003 = vmatpush3.bf16.xpose.msra.mxu1 %v2423_v19  ;;  %v9210_v15 = vadd.f32 %v1971_v24, %v1907_v55  ;;  %v1972_v56 = vmul.f32 %v1739_v54, %v1414_v48  ;;  %v1419_v45 = vld [vmem:[%s11474_s2 + $0x110] sm:$0xff]  ;;  %v1353_v55 = vld [vmem:[%s11473_s1 + $0x100] sm:$0xff]  ;;  %v1418_v44 = vld [vmem:[%s11474_s2 + $0x108] sm:$0xff] }
 0x334   :  { %v2276_v33 = vadd.f32 %v2260_v21, %v2244_v18  ;;  %v2261_v12 = vmul.f32 %v2220_v61, %v2100_v53  ;;  %7289 = vmatprep.subr.msk.bf16.mxu1 %vm1493_vm0, %v9101_v51  ;;  %v9214_v0 = vadd.f32 %v1974_v52, %v1910_v25  ;;  %v1417_v25 = vld [vmem:[%s11474_s2 + $0x100] sm:$0xff]  ;;  %v1359_v51 = vld [vmem:[%s11473_s1 + $0x130] sm:$0xff] }
 0x335   :  { %v2279_v3 = vadd.f32 %v2263_v23, %v2247_v37  ;;  %v9219_v36 = vadd.f32 %v1972_v56, %v1908_v60  ;;  %v1356_v56 = vld [vmem:[%s11473_s1 + $0x118] sm:$0xff]  ;;  %v1913_v60 = vmul.f32 %v8471_v26, %v1355_v16  ;;  %v1423_v61 = vld [vmem:[%s11474_s2 + $0x130] sm:$0xff]  ;;  %v1421_v16 = vld [vmem:[%s11474_s2 + $0x120] sm:$0xff] }
 0x336   :  { %v2277_v2 = vadd.f32 %v2261_v12, %v2245_v43  ;;  %v1420_v37 = vld [vmem:[%s11474_s2 + $0x118] sm:$0xff]  ;;  %v1914_v43 = vmul.f32 %v8479_v27, %v1356_v56  ;;  %v1357_v12 = vld [vmem:[%s11473_s1 + $0x120] sm:$0xff]  ;;  %v1917_v56 = vmul.f32 %v8497_v35, %v1359_v51 }
 0x337   :  { %v9229_v18 = vpack.c.bf16 %v2279_v3, %v2278_v8  ;;  %v6948_v34 = vpop.f32.mrb[64].mxu0  ;;  %v11625_v8 = vld [vmem:[#allocation13_spill] sm:$0xff] }
 0x338   :  { %v9239_v17 = vpack.c.bf16 %v2277_v2, %v2276_v33  ;;  %v1977_v4 = vmul.f32 %v6948_v34, %v1419_v45  ;;  %v1752_v11 = vpop.f32.mrb[65].mxu0  ;;  %v1911_v33 = vmul.f32 %v1353_v55, %v8475_v41  ;;  %v1912_v52 = vmul.f32 %v1354_v5, %v11625_v8  ;;  %v1360_v2 = vld [vmem:[%s11473_s1 + $0x138] sm:$0xff]  ;;  %v1358_v34 = vld [vmem:[%s11473_s1 + $0x128] sm:$0xff] }
 0x339   :  { %v1975_v48 = vmul.f32 %v1752_v11, %v1417_v25  ;;  %v6949_v53 = vpop.f32.mrb[66].mxu0  ;;  %v1424_v25 = vld [vmem:[%s11474_s2 + $0x138] sm:$0xff]  ;;  %v1422_v5 = vld [vmem:[%s11474_s2 + $0x128] sm:$0xff] }
 0x33a   :  { %v9255_v26 = vadd.f32 %v1977_v4, %v1913_v60  ;;  %v1978_v57 = vmul.f32 %v6949_v53, %v1420_v37  ;;  %v1755_v19 = vpop.f32.mrb[67].mxu0  ;;  %v11626_v4 = vld [vmem:[#allocation14_spill] sm:$0xff]  ;;  %v11627_v53 = vld [vmem:[#allocation15_spill] sm:$0xff] }
 0x33b   :  { %7005 = vmatpush3.bf16.xpose.msra.mxu1 %v2426_v62  ;;  %v9258_v23 = vadd.f32 %v1975_v48, %v1911_v33  ;;  %v1976_v54 = vmul.f32 %v1755_v19, %v1418_v44  ;;  %v1915_v11 = vmul.f32 %v1357_v12, %v11626_v4  ;;  %v2429_v48 = vsel %vm1493_vm0, %v9189_v59, 0  ;;  %v11628_v19 = vld [vmem:[#allocation16_spill] sm:$0xff]  ;;  %v1427_v12 = vld [vmem:[%s11474_s2 + $0x150] sm:$0xff]  ;;  %v1362_v4 = vld [vmem:[%s11473_s1 + $0x148] sm:$0xff] }
 0x33c   :  { %7290 = vmatprep.subr.msk.bf16.mxu1 %vm1493_vm0, %v9189_v59  ;;  %v9262_v41 = vadd.f32 %v1978_v57, %v1914_v43  ;;  %v1918_v62 = vmul.f32 %v11627_v53, %v1360_v2  ;;  %v1916_v8 = vmul.f32 %v1358_v34, %v11628_v19  ;;  %v1363_v59 = vld [vmem:[%s11473_s1 + $0x150] sm:$0xff] }
 0x33d   :  { %v9267_v27 = vadd.f32 %v1976_v54, %v1912_v52  ;;  %v11631_v19 = vld [vmem:[#allocation19_spill] sm:$0xff] }
 0x33f   :  { %v6952_v55 = vpop.f32.mrb[68].mxu0 }
 0x340   :  { %v1981_v37 = vmul.f32 %v6952_v55, %v1423_v61  ;;  %v1768_v60 = vpop.f32.mrb[69].mxu0  ;;  %v1425_v55 = vld [vmem:[%s11474_s2 + $0x140] sm:$0xff] }
 0x341   :  { %v1979_v44 = vmul.f32 %v1768_v60, %v1421_v16  ;;  %v6953_v33 = vpop.f32.mrb[70].mxu0  ;;  %v1361_v16 = vld [vmem:[%s11473_s1 + $0x140] sm:$0xff] }
 0x342   :  { %v9299_v35 = vadd.f32 %v1981_v37, %v1917_v56  ;;  %v1982_v43 = vmul.f32 %v6953_v33, %v1424_v25  ;;  %v1771_v57 = vpop.f32.mrb[71].mxu0  ;;  %v1364_v25 = vld [vmem:[%s11473_s1 + $0x158] sm:$0xff]  ;;  %v11629_v60 = vld [vmem:[#allocation17_spill] sm:$0xff]  ;;  %v1426_v33 = vld [vmem:[%s11474_s2 + $0x148] sm:$0xff] }
 0x343   :  { %7007 = vmatpush3.bf16.xpose.msra.mxu1 %v2429_v48  ;;  %v9302_v52 = vadd.f32 %v1979_v44, %v1915_v11  ;;  %v1980_v54 = vmul.f32 %v1771_v57, %v1422_v5  ;;  %v1428_v37 = vld [vmem:[%s11474_s2 + $0x158] sm:$0xff]  ;;  %v1921_v5 = vmul.f32 %v11629_v60, %v1363_v59  ;;  %v11630_v48 = vld [vmem:[#allocation18_spill] sm:$0xff]  ;;  %v2432_v57 = vsel %vm1493_vm0, %v9177_v7, 0 }
 0x344   :  { %7291 = vmatprep.subr.msk.bf16.mxu1 %vm1493_vm0, %v9177_v7  ;;  %v9306_v51 = vadd.f32 %v1982_v43, %v1918_v62  ;;  %v1919_v53 = vmul.f32 %v1361_v16, %v11630_v48  ;;  %v1367_v7 = vld [vmem:[%s11473_s1 + $0x170] sm:$0xff]  ;;  %v11633_v48 = vld [vmem:[#allocation21_spill] sm:$0xff] }
 0x345   :  { %v9311_v61 = vadd.f32 %v1980_v54, %v1916_v8  ;;  %v1922_v8 = vmul.f32 %v11631_v19, %v1364_v25  ;;  %v1431_v25 = vld [vmem:[%s11474_s2 + $0x170] sm:$0xff]  ;;  %v1430_v19 = vld [vmem:[%s11474_s2 + $0x168] sm:$0xff] }
 0x347   :  { %v6956_v34 = vpop.f32.mrb[72].mxu0 }
 0x348   :  { %v1985_v11 = vmul.f32 %v6956_v34, %v1427_v12  ;;  %v1784_v44 = vpop.f32.mrb[73].mxu0  ;;  %v11632_v12 = vld [vmem:[#allocation20_spill] sm:$0xff] }
 0x349   :  { %v1983_v62 = vmul.f32 %v1784_v44, %v1425_v55  ;;  %v6957_v43 = vpop.f32.mrb[74].mxu0  ;;  %v1920_v34 = vmul.f32 %v1362_v4, %v11632_v12  ;;  %v1429_v4 = vld [vmem:[%s11474_s2 + $0x160] sm:$0xff] }
 0x34a   :  { %v9343_v54 = vadd.f32 %v1985_v11, %v1921_v5  ;;  %v1986_v59 = vmul.f32 %v6957_v43, %v1428_v37  ;;  %v1787_v60 = vpop.f32.mrb[75].mxu0  ;;  %v1365_v37 = vld [vmem:[%s11473_s1 + $0x160] sm:$0xff]  ;;  %v11635_v5 = vld [vmem:[#allocation23_spill] sm:$0xff] }
 0x34b   :  { %7009 = vmatpush3.bf16.xpose.msra.mxu1 %v2432_v57  ;;  %v9346_v2 = vadd.f32 %v1983_v62, %v1919_v53  ;;  %v1984_v56 = vmul.f32 %v1787_v60, %v1426_v33  ;;  %v1432_v33 = vld [vmem:[%s11474_s2 + $0x178] sm:$0xff]  ;;  %v1925_v53 = vmul.f32 %v11633_v48, %v1367_v7  ;;  %v1366_v62 = vld [vmem:[%s11473_s1 + $0x168] sm:$0xff] }
 0x34c   :  { %7292 = vmatprep.subr.msk.bf16.mxu1 %vm1493_vm0, %v9239_v17  ;;  %v9350_v16 = vadd.f32 %v1986_v59, %v1922_v8  ;;  %v11634_v8 = vld [vmem:[#allocation22_spill] sm:$0xff] }
 0x34d   :  { %v9355_v55 = vadd.f32 %v1984_v56, %v1920_v34  ;;  %v1368_v56 = vld [vmem:[%s11473_s1 + $0x178] sm:$0xff]  ;;  %v1923_v59 = vmul.f32 %v1365_v37, %v11634_v8  ;;  %v2435_v34 = vsel %vm1493_vm0, %v9239_v17, 0  ;;  %v1371_v17 = vld [vmem:[%s11473_s1 + $0x190] sm:$0xff] }
 0x34e   :  { %v1926_v11 = vmul.f32 %v11635_v5, %v1368_v56  ;;  %v1369_v56 = vld [vmem:[%s11473_s1 + $0x180] sm:$0xff] }
 0x34f   :  { %v6960_v44 = vpop.f32.mrb[76].mxu0 }
 0x350   :  { %v1989_v43 = vmul.f32 %v6960_v44, %v1431_v25  ;;  %v1800_v57 = vpop.f32.mrb[77].mxu0  ;;  %v11637_v25 = vld [vmem:[#allocation24_spill] sm:$0xff] }
 0x351   :  { %v1987_v60 = vmul.f32 %v1800_v57, %v1429_v4  ;;  %v6961_v12 = vpop.f32.mrb[78].mxu0  ;;  %v1924_v44 = vmul.f32 %v1366_v62, %v11637_v25  ;;  %v1435_v4 = vld [vmem:[%s11474_s2 + $0x190] sm:$0xff]  ;;  %v1436_v62 = vld [vmem:[%s11474_s2 + $0x198] sm:$0xff] }
 0x352   :  { %v9387_v7 = vadd.f32 %v1989_v43, %v1925_v53  ;;  %v1990_v48 = vmul.f32 %v6961_v12, %v1432_v33  ;;  %v1803_v3 = vpop.f32.mrb[79].mxu0  ;;  %v11640_v43 = vld [vmem:[#allocation34_spill] sm:$0xff]  ;;  %v11641_v12 = vld [vmem:[#allocation35_spill] sm:$0xff] }
 0x353   :  { %7011 = vmatpush3.bf16.xpose.msra.mxu1 %v2435_v34  ;;  %v9390_v45 = vadd.f32 %v1987_v60, %v1923_v59  ;;  %v1988_v24 = vmul.f32 %v1803_v3, %v1430_v19  ;;  %v1929_v57 = vmul.f32 %v11640_v43, %v1371_v17  ;;  %v1370_v19 = vld [vmem:[%s11473_s1 + $0x188] sm:$0xff]  ;;  %v1927_v34 = vmul.f32 %v1369_v56, %v11641_v12  ;;  %v11642_v3 = vld [vmem:[#allocation36_spill] sm:$0xff]  ;;  %v1375_v56 = vld [vmem:[%s11473_s1 + $0x1b0] sm:$0xff] }
 0x354   :  { %11636 = vst [vmem:[#allocation27_spill] sm:$0xff] %v9387_v7  ;;  %7293 = vmatprep.subr.msk.bf16.mxu1 %vm1493_vm0, %v9229_v18  ;;  %v9394_v37 = vadd.f32 %v1990_v48, %v1926_v11  ;;  %v1433_v11 = vld [vmem:[%s11474_s2 + $0x180] sm:$0xff]  ;;  %v1434_v60 = vld [vmem:[%s11474_s2 + $0x188] sm:$0xff] }
 0x355   :  { %11638 = vst [vmem:[#allocation28_spill] sm:$0xff] %v9390_v45  ;;  %v9399_v5 = vadd.f32 %v1988_v24, %v1924_v44  ;;  %v1372_v24 = vld [vmem:[%s11473_s1 + $0x198] sm:$0xff]  ;;  %v2438_v44 = vsel %vm1493_vm0, %v9229_v18, 0  ;;  %v1439_v18 = vld [vmem:[%s11474_s2 + $0x1b0] sm:$0xff] }
 0x356   :  { %11639 = vst [vmem:[#allocation29_spill] sm:$0xff] %v9394_v37  ;;  %v1930_v33 = vmul.f32 %v11642_v3, %v1372_v24  ;;  %v1373_v3 = vld [vmem:[%s11473_s1 + $0x1a0] sm:$0xff] }
 0x357   :  { %v6964_v53 = vpop.f32.mrb[80].mxu0 }
 0x358   :  { %v1993_v8 = vmul.f32 %v6964_v53, %v1435_v4  ;;  %v1816_v59 = vpop.f32.mrb[81].mxu0  ;;  %v11643_v4 = vld [vmem:[#allocation37_spill] sm:$0xff] }
 0x359   :  { %v1991_v48 = vmul.f32 %v1816_v59, %v1433_v11  ;;  %v6965_v25 = vpop.f32.mrb[82].mxu0  ;;  %v1928_v53 = vmul.f32 %v1370_v19, %v11643_v4  ;;  %v11644_v19 = vld [vmem:[#allocation38_spill] sm:$0xff]  ;;  %v11646_v4 = vpack.c.bf16 %v8803_v13, %v8800_v38  ;;  %v1379_v38 = vld [vmem:[%s11473_s1 + $0x1d0] sm:$0xff] }
 0x35a   :  { %v9431_v17 = vadd.f32 %v1993_v8, %v1929_v57  ;;  %v1994_v43 = vmul.f32 %v6965_v25, %v1436_v62  ;;  %v1819_v21 = vpop.f32.mrb[83].mxu0  ;;  %v1440_v57 = vld [vmem:[%s11474_s2 + $0x1b8] sm:$0xff]  ;;  %v1933_v8 = vmul.f32 %v11644_v19, %v1375_v56  ;;  %v1374_v59 = vld [vmem:[%s11473_s1 + $0x1a8] sm:$0xff] }
 0x35b   :  { %7013 = vmatpush3.bf16.xpose.msra.mxu1 %v2438_v44  ;;  %v9434_v7 = vadd.f32 %v1991_v48, %v1927_v34  ;;  %v1992_v37 = vmul.f32 %v1819_v21, %v1434_v60  ;;  %v1437_v21 = vld [vmem:[%s11474_s2 + $0x1a0] sm:$0xff]  ;;  %v1438_v34 = vld [vmem:[%s11474_s2 + $0x1a8] sm:$0xff]  ;;  %v11645_v48 = vld [vmem:[#allocation39_spill] sm:$0xff] }
 0x35c   :  { %v9436_v45 = vadd.f32 %v1994_v43, %v1930_v33  ;;  %v1931_v25 = vmul.f32 %v1373_v3, %v11645_v48  ;;  %v11650_v33 = vld [vmem:[#allocation41_spill] sm:$0xff] }
 0x35d   :  { %v9441_v11 = vadd.f32 %v1992_v37, %v1928_v53  ;;  %v1376_v37 = vld [vmem:[%s11473_s1 + $0x1b8] sm:$0xff]  ;;  %v1932_v3 = vmul.f32 %v1374_v59, %v11650_v33 }
 0x35e   :  { %v11647_v53 = vld [vmem:[#allocation40_spill] sm:$0xff] }
 0x35f   :  { %v6968_v62 = vpop.f32.mrb[84].mxu0  ;;  %v1934_v56 = vmul.f32 %v11647_v53, %v1376_v37  ;;  %v1443_v37 = vld [vmem:[%s11474_s2 + $0x1d0] sm:$0xff]  ;;  %v1380_v33 = vld [vmem:[%s11473_s1 + $0x1d8] sm:$0xff] }
 0x360   :  { %v1997_v60 = vmul.f32 %v6968_v62, %v1439_v18  ;;  %v1832_v12 = vpop.f32.mrb[85].mxu0  ;;  %v11649_v62 = vpack.c.bf16 %v8845_v39, %v8838_v29  ;;  %v1377_v29 = vld [vmem:[%s11473_s1 + $0x1c0] sm:$0xff]  ;;  %v1444_v59 = vld [vmem:[%s11474_s2 + $0x1d8] sm:$0xff]  ;;  %v11652_v53 = vld [vmem:[#allocation43_spill] sm:$0xff] }
 0x361   :  { %v1995_v44 = vmul.f32 %v1832_v12, %v1437_v21  ;;  %v6969_v43 = vpop.f32.mrb[86].mxu0 }
 0x362   :  { %7015 = vmatmul.mubr.msk.bf16.vlgmr.msra.gmra.mrb[80].mxu1 %vm1493_vm0, %v11646_v4  ;;  %v9475_v19 = vadd.f32 %v1997_v60, %v1933_v8  ;;  %v1998_v24 = vmul.f32 %v6969_v43, %v1440_v57  ;;  %v1835_v18 = vpop.f32.mrb[87].mxu0  ;;  %v11651_v60 = vld [vmem:[#allocation42_spill] sm:$0xff] }
 0x363   :  { %7018 = vmatprep.mubr.msk.bf16.mxu1 %vm1493_vm0, %v11649_v62  ;;  %v9482_v21 = vadd.f32 %v1995_v44, %v1931_v25  ;;  %v1996_v12 = vmul.f32 %v1835_v18, %v1438_v34  ;;  %v1937_v34 = vmul.f32 %v11651_v60, %v1379_v38  ;;  %v1378_v25 = vld [vmem:[%s11473_s1 + $0x1c8] sm:$0xff] }
 0x364   :  { %11648 = vst [vmem:[#allocation30_spill] sm:$0xff] %v9475_v19  ;;  %v9484_v48 = vadd.f32 %v1998_v24, %v1934_v56  ;;  %v1441_v24 = vld [vmem:[%s11474_s2 + $0x1c0] sm:$0xff]  ;;  %v1442_v4 = vld [vmem:[%s11474_s2 + $0x1c8] sm:$0xff]  ;;  %v1935_v56 = vmul.f32 %v1377_v29, %v11652_v53 }
 0x365   :  { %v9489_v13 = vadd.f32 %v1996_v12, %v1932_v3  ;;  %v11653_v3 = vpack.c.bf16 %v8840_v32, %v8835_v42  ;;  %v11654_v12 = vld [vmem:[#allocation44_spill] sm:$0xff]  ;;  %v1383_v42 = vld [vmem:[%s11473_s1 + $0x1f0] sm:$0xff] }
 0x366   :  { %v1938_v38 = vmul.f32 %v11654_v12, %v1380_v33  ;;  %v1447_v33 = vld [vmem:[%s11474_s2 + $0x1f0] sm:$0xff] }
 0x367   :  { %v6972_v8 = vpop.f32.mrb[88].mxu0 }
 0x368   :  { %v2001_v44 = vmul.f32 %v6972_v8, %v1443_v37  ;;  %v1848_v43 = vpop.f32.mrb[89].mxu0  ;;  %v11655_v37 = vpack.c.bf16 %v8885_v50, %v8878_v31  ;;  %v11656_v8 = vld [vmem:[#allocation45_spill] sm:$0xff] }
 0x369   :  { %v1999_v18 = vmul.f32 %v1848_v43, %v1441_v24  ;;  %v6973_v62 = vpop.f32.mrb[90].mxu0  ;;  %v1936_v19 = vmul.f32 %v1378_v25, %v11656_v8  ;;  %v1381_v31 = vld [vmem:[%s11473_s1 + $0x1e0] sm:$0xff]  ;;  %v11657_v25 = vld [vmem:[#allocation46_spill] sm:$0xff] }
 0x36a   :  { %7019 = vmatmul.mubr.msk.bf16.gmra.mrb[84].mxu1 %vm1493_vm0, %v11653_v3  ;;  %v2065_v60 = vadd.f32 %v2001_v44, %v1937_v34  ;;  %v2002_v39 = vmul.f32 %v6973_v62, %v1444_v59  ;;  %v1851_v57 = vpop.f32.mrb[91].mxu0  ;;  %v1445_v59 = vld [vmem:[%s11474_s2 + $0x1e0] sm:$0xff]  ;;  %v1941_v44 = vmul.f32 %v11657_v25, %v1383_v42  ;;  %v11658_v62 = vld [vmem:[#allocation47_spill] sm:$0xff]  ;;  %v11661_v42 = vpack.c.bf16 %v8943_v10, %v8927_v14 }
 0x36b   :  { %7022 = vmatprep.mubr.msk.bf16.mxu1 %vm1493_vm0, %v11655_v37  ;;  %v2063_v29 = vadd.f32 %v1999_v18, %v1935_v56  ;;  %v2000_v24 = vmul.f32 %v1851_v57, %v1442_v4  ;;  %v1382_v4 = vld [vmem:[%s11473_s1 + $0x1e8] sm:$0xff]  ;;  %v1939_v3 = vmul.f32 %v1381_v31, %v11658_v62  ;;  %v11660_v37 = vld [vmem:[#allocation48_spill] sm:$0xff]  ;;  %v11667_v14 = vpack.c.bf16 %v9006_v9, %v8987_v22 }
 0x36c   :  { %v2066_v43 = vadd.f32 %v2002_v39, %v1938_v38  ;;  %v1384_v39 = vld [vmem:[%s11473_s1 + $0x1f8] sm:$0xff]  ;;  %v1446_v18 = vld [vmem:[%s11474_s2 + $0x1e8] sm:$0xff]  ;;  %v11668_v10 = vpack.c.bf16 %v9086_v6, %v9067_v63  ;;  %v11674_v9 = vpack.c.bf16 %v9219_v36, %v9210_v15  ;;  %v11676_v63 = vpack.c.bf16 %v9267_v27, %v9258_v23  ;;  %v11684_v36 = vld [vmem:[#allocation29_spill] sm:$0xff] }
 0x36d   :  { %v2064_v32 = vadd.f32 %v2000_v24, %v1936_v19  ;;  %v1448_v19 = vld [vmem:[%s11474_s2 + $0x1f8] sm:$0xff]  ;;  %v1942_v8 = vmul.f32 %v11660_v37, %v1384_v39  ;;  %v11664_v62 = vld [vmem:[#allocation50_spill] sm:$0xff]  ;;  %v11666_v39 = vpack.c.bf16 %v9012_v49, %v8995_v47  ;;  %v11670_v47 = vpack.c.bf16 %v9162_v46, %v9143_v58 }
 0x36e   :  { %v2309_v50 = vpack.c.bf16 %v2066_v43, %v2065_v60  ;;  %v11659_v60 = vpack.c.bf16 %v8880_v40, %v8875_v30  ;;  %v11663_v40 = vld [vmem:[#allocation51_spill] sm:$0xff]  ;;  %v11671_v49 = vld [vmem:[#allocation26_spill] sm:$0xff]  ;;  %v11678_v15 = vpack.c.bf16 %v9311_v61, %v9302_v52  ;;  %v11679_v6 = vpack.c.bf16 %v9306_v51, %v9299_v35 }
 0x36f   :  { %v2308_v57 = vpack.c.bf16 %v2064_v32, %v2063_v29  ;;  %v6976_v34 = vpop.f32.mrb[92].mxu0  ;;  %v11662_v32 = vld [vmem:[#allocation49_spill] sm:$0xff]  ;;  %v11680_v58 = vpack.c.bf16 %v9355_v55, %v9346_v2  ;;  %v11681_v46 = vpack.c.bf16 %v9350_v16, %v9343_v54  ;;  %v11688_v27 = vpack.c.bf16 %v9436_v45, %v9431_v17  ;;  %v11690_v52 = vld [vmem:[#allocation30_spill] sm:$0xff] }
 0x370   :  { %v2005_v53 = vmul.f32 %v6976_v34, %v1447_v33  ;;  %v1864_v56 = vpop.f32.mrb[93].mxu0  ;;  %v1940_v33 = vmul.f32 %v1382_v4, %v11662_v32  ;;  %v11689_v35 = vpack.c.bf16 %v9489_v13, %v9482_v21  ;;  %v11691_v51 = vpack.c.bf16 %v9484_v48, %v11690_v52 }
 0x371   :  { %v2003_v12 = vmul.f32 %v1864_v56, %v1445_v59  ;;  %v6977_v38 = vpop.f32.mrb[94].mxu0  ;;  %v2729_v45 = vlaneseq }
 0x372   :  { %7023 = vmatmul.mubr.msk.bf16.gmra.mrb[88].mxu1 %vm1493_vm0, %v11659_v60  ;;  %v2069_v29 = vadd.f32 %v2005_v53, %v1941_v44  ;;  %v2006_v24 = vmul.f32 %v6977_v38, %v1448_v19  ;;  %v1867_v43 = vpop.f32.mrb[95].mxu0  ;;  %v11665_v60 = vpack.c.bf16 %v11663_v40, %v11664_v62  ;;  %v11669_v19 = vpack.c.bf16 %v9080_v1, %v9059_v20  ;;  %v11672_v44 = vld [vmem:[#allocation25_spill] sm:$0xff] }
 0x373   :  { %7026 = vmatprep.mubr.msk.bf16.mxu1 %vm1493_vm0, %v11661_v42  ;;  %v2067_v31 = vadd.f32 %v2003_v12, %v1939_v3  ;;  %v2004_v59 = vmul.f32 %v1867_v43, %v1446_v18  ;;  %v11673_v22 = vpack.c.bf16 %v11671_v49, %v11672_v44  ;;  %v11675_v20 = vpack.c.bf16 %v9214_v0, %v9208_v28  ;;  %v11682_v28 = vld [vmem:[#allocation28_spill] sm:$0xff] }
 0x374   :  { %v2070_v34 = vadd.f32 %v2006_v24, %v1942_v8  ;;  %v11677_v1 = vpack.c.bf16 %v9262_v41, %v9255_v26  ;;  %v11683_v0 = vpack.c.bf16 %v9399_v5, %v11682_v28  ;;  %v11685_v26 = vld [vmem:[#allocation27_spill] sm:$0xff]  ;;  %v11687_v41 = vpack.c.bf16 %v9441_v11, %v9434_v7 }
 0x375   :  { %v2068_v25 = vadd.f32 %v2004_v59, %v1940_v33  ;;  %v11686_v23 = vpack.c.bf16 %v11684_v36, %v11685_v26  ;;  %v9652_v61 = vshrl.u32 %v2729_v45, 7  ;;  %v9656_v16 = vand.u32 127, %v2729_v45 }
 0x376   :  { %v2311_v56 = vpack.c.bf16 %v2070_v34, %v2069_v29 }
 0x377   :  { %v2310_v30 = vpack.c.bf16 %v2068_v25, %v2067_v31  ;;  %v2731_v2 = vadd.s32 8, %v9652_v61  ;;  %v2794_v54 = vand.u32 127, %v9652_v61  ;;  %v2732_v55 = vadd.s32 16, %v9652_v61 }
 0x378   :  { %v2733_v5 = vadd.s32 24, %v9652_v61  ;;  %v2734_v11 = vadd.s32 32, %v9652_v61  ;;  %v2736_v3 = vadd.s32 48, %v9652_v61  ;;  %v2737_v37 = vadd.s32 56, %v9652_v61 }
 0x379   :  { %v2795_v7 = vand.u32 127, %v2731_v2  ;;  %vm2860_vm1 = vcmp.ge.s32.totalorder %v2794_v54, %v9656_v16  ;;  %v2796_v17 = vand.u32 127, %v2732_v55  ;;  %v2738_v24 = vadd.s32 64, %v9652_v61 }
 0x37a   :  { %7027 = vmatmul.mubr.msk.bf16.gmra.mrb[92].mxu1 %vm1493_vm0, %v11665_v60  ;;  %v2797_v13 = vand.u32 127, %v2733_v5  ;;  %v2798_v18 = vand.u32 127, %v2734_v11  ;;  %v2800_v29 = vand.u32 127, %v2736_v3  ;;  %v2801_v33 = vand.u32 127, %v2737_v37 }
 0x37b   :  { %7030 = vmatprep.mubr.msk.bf16.mxu1 %vm1493_vm0, %v11666_v39  ;;  %vm2861_vm2 = vcmp.ge.s32.totalorder %v2795_v7, %v9656_v16  ;;  %vm2862_vm3 = vcmp.ge.s32.totalorder %v2796_v17, %v9656_v16  ;;  %v2739_v31 = vadd.s32 72, %v9652_v61  ;;  %v2741_v60 = vadd.s32 88, %v9652_v61 }
 0x37c   :  { %vm2863_vm4 = vcmp.ge.s32.totalorder %v2797_v13, %v9656_v16  ;;  %vm2864_vm5 = vcmp.ge.s32.totalorder %v2798_v18, %v9656_v16  ;;  %vm2866_vm7 = vcmp.ge.s32.totalorder %v2800_v29, %v9656_v16  ;;  %vm2867_vm8 = vcmp.ge.s32.totalorder %v2801_v33, %v9656_v16 }
 0x37d   :  { %v2803_v62 = vand.u32 127, %v2739_v31  ;;  %v2805_v44 = vand.u32 127, %v2741_v60  ;;  %v2746_v36 = vadd.s32 128, %v9652_v61  ;;  %v2748_v54 = vadd.s32 144, %v9652_v61 }
 0x37e   :  { %v2749_v5 = vadd.s32 152, %v9652_v61  ;;  %v2752_v29 = vadd.s32 176, %v9652_v61  ;;  %v2755_v60 = vadd.s32 200, %v9652_v61 }
 0x37f   :  { %vm2869_vm10 = vcmp.ge.s32.totalorder %v2803_v62, %v9656_v16  ;;  %vm2871_vm12 = vcmp.ge.s32.totalorder %v2805_v44, %v9656_v16  ;;  %v2810_v2 = vand.u32 127, %v2746_v36  ;;  %v2812_v11 = vand.u32 127, %v2748_v54 }
 0x380   :  { %v2816_v31 = vand.u32 127, %v2752_v29  ;;  %v2756_v44 = vadd.s32 208, %v9652_v61  ;;  %v2760_v54 = vadd.s32 240, %v9652_v61 }
 0x382   :  { %7031 = vmatmul.mubr.msk.bf16.gmra.mrb[96].mxu1 %vm1493_vm0, %v11667_v14 }
 0x383   :  { %7034 = vmatprep.mubr.msk.bf16.mxu1 %vm1493_vm0, %v11668_v10  ;;  %v2742_v10 = vadd.s32 96, %v9652_v61 }
 0x38a   :  { %7035 = vmatmul.mubr.msk.bf16.gmra.mrb[100].mxu1 %vm1493_vm0, %v11669_v19 }
 0x38b   :  { %7038 = vmatprep.mubr.msk.bf16.mxu1 %vm1493_vm0, %v11670_v47 }
 0x392   :  { %7039 = vmatmul.mubr.msk.bf16.gmra.mrb[104].mxu1 %vm1493_vm0, %v11673_v22  ;;  %v2743_v22 = vadd.s32 104, %v9652_v61 }
 0x393   :  { %7042 = vmatprep.mubr.msk.bf16.mxu1 %vm1493_vm0, %v11674_v9 }
 0x39a   :  { %7043 = vmatmul.mubr.msk.bf16.gmra.mrb[108].mxu1 %vm1493_vm0, %v11675_v20 }
 0x39b   :  { %7046 = vmatprep.mubr.msk.bf16.mxu1 %vm1493_vm0, %v11676_v63 }
 0x3a2   :  { %7047 = vmatmul.mubr.msk.bf16.gmra.mrb[112].mxu1 %vm1493_vm0, %v11677_v1  ;;  %v2806_v1 = vand.u32 127, %v2742_v10 }
 0x3a3   :  { %7050 = vmatprep.mubr.msk.bf16.mxu1 %vm1493_vm0, %v11678_v15  ;;  %v2744_v15 = vadd.s32 112, %v9652_v61 }
 0x3a4   :  { %vm2872_vm13 = vcmp.ge.s32.totalorder %v2806_v1, %v9656_v16  ;;  %v2757_v1 = vadd.s32 216, %v9652_v61 }
 0x3aa   :  { %7051 = vmatmul.mubr.msk.bf16.gmra.mrb[116].mxu1 %vm1493_vm0, %v11679_v6 }
 0x3ab   :  { %7054 = vmatprep.mubr.msk.bf16.mxu1 %vm1493_vm0, %v11680_v58  ;;  %v2807_v58 = vand.u32 127, %v2743_v22 }
 0x3ad   :  { %vm2873_vm14 = vcmp.ge.s32.totalorder %v2807_v58, %v9656_v16  ;;  %v2820_v58 = vand.u32 127, %v2756_v44 }
 0x3b2   :  { %7055 = vmatmul.mubr.msk.bf16.gmra.mrb[120].mxu1 %vm1493_vm0, %v11681_v46  ;;  %v2745_v46 = vadd.s32 120, %v9652_v61 }
 0x3b3   :  { %7058 = vmatprep.mubr.msk.bf16.mxu1 %vm1493_vm0, %v11683_v0  ;;  %v2808_v0 = vand.u32 127, %v2744_v15 }
 0x3b5   :  { %vm2874_vm15 = vcmp.ge.s32.totalorder %v2808_v0, %v9656_v16 }
 0x3ba   :  { %7059 = vmatmul.mubr.msk.bf16.gmra.mrb[124].mxu1 %vm1493_vm0, %v11686_v23 }
 0x3bb   :  { %7062 = vmatprep.mubr.msk.bf16.mxu1 %vm1493_vm0, %v11687_v41 }
 0x3c2   :  { %7063 = vmatmul.mubr.msk.bf16.gmra.mrb[128].mxu1 %vm1493_vm0, %v11688_v27  ;;  %v2809_v27 = vand.u32 127, %v2745_v46  ;;  %v2758_v46 = vadd.s32 224, %v9652_v61 }
 0x3c3   :  { %7066 = vmatprep.mubr.msk.bf16.mxu1 %vm1493_vm0, %v11689_v35  ;;  %v2747_v35 = vadd.s32 136, %v9652_v61 }
 0x3c5   :  { %v2811_v7 = vand.u32 127, %v2747_v35 }
 0x3ca   :  { %7067 = vmatmul.mubr.msk.bf16.gmra.mrb[132].mxu1 %vm1493_vm0, %v11691_v51 }
 0x3cb   :  { %7070 = vmatprep.mubr.msk.bf16.mxu1 %vm1493_vm0, %v2308_v57 }
 0x3d2   :  { %7071 = vmatmul.mubr.msk.bf16.gmra.mrb[136].mxu1 %vm1493_vm0, %v2309_v50  ;;  %v2735_v50 = vadd.s32 40, %v9652_v61 }
 0x3d3   :  { %7074 = vmatprep.mubr.msk.bf16.mxu1 %vm1493_vm0, %v2310_v30  ;;  %v2740_v30 = vadd.s32 80, %v9652_v61 }
 0x3d4   :  { %v2799_v38 = vand.u32 127, %v2735_v50 }
 0x3d5   :  { %v2804_v14 = vand.u32 127, %v2740_v30 }
 0x3d6   :  { %vm2865_vm6 = vcmp.ge.s32.totalorder %v2799_v38, %v9656_v16 }
 0x3d7   :  { %vm2870_vm11 = vcmp.ge.s32.totalorder %v2804_v14, %v9656_v16 }
 0x3da   :  { %7075 = vmatmul.mubr.msk.bf16.gmra.mrb[140].mxu1 %vm1493_vm0, %v2311_v56  ;;  %v2802_v56 = vand.u32 127, %v2738_v24 }
 0x3dc   :  { %vm2868_vm9 = vcmp.ge.s32.totalorder %v2802_v56, %v9656_v16 }
 0x435   :  { %v7016_v21 = vpop.f32.mrb[80].mxu1 }
 0x436   :  { %v2474_v48 = vpop.f32.mrb[81].mxu1  ;;  %v9674_v8 = vsel %vm2862_vm3, %v7016_v21, -1e+30  ;;  %v2750_v21 = vadd.s32 160, %v9652_v61  ;;  %vm2877_vm3 = vcmp.ge.s32.totalorder %v2811_v7, %v9656_v16 }
 0x437   :  { %v7017_v57 = vpop.f32.mrb[82].mxu1  ;;  %v9664_v4 = vsel %vm2860_vm1, %v2474_v48, -1e+30  ;;  %vm2875_vm1 = vcmp.ge.s32.totalorder %v2809_v27, %v9656_v16  ;;  %v2759_v27 = vadd.s32 232, %v9652_v61 }
 0x438   :  { %2988 = vmax.xlane.f32.xlu0 %v9664_v4  ;;  %v2477_v53 = vpop.f32.mrb[83].mxu1  ;;  %v9679_v42 = vsel %vm2863_vm4, %v7017_v57, -1e+30  ;;  %v2813_v57 = vand.u32 127, %v2749_v5  ;;  %vm2878_vm4 = vcmp.ge.s32.totalorder %v2812_v11, %v9656_v16  ;;  %v2814_v37 = vand.u32 127, %v2750_v21 }
 0x439   :  { %v9669_v12 = vsel %vm2861_vm2, %v2477_v53, -1e+30  ;;  %vm2876_vm2 = vcmp.ge.s32.totalorder %v2810_v2, %v9656_v16  ;;  %v2751_v53 = vadd.s32 168, %v9652_v61  ;;  %v2822_v2 = vand.u32 127, %v2758_v46 }
 0x43a   :  { %2990 = vmax.xlane.f32.xlu1 %v9669_v12  ;;  %v2823_v5 = vand.u32 127, %v2759_v27  ;;  %v2761_v11 = vadd.s32 248, %v9652_v61 }
 0x43c   :  { %2992 = vmax.xlane.f32.xlu0 %v9674_v8 }
 0x43d   :  { %v7020_v43 = vpop.f32.mrb[84].mxu1 }
 0x43e   :  { %2994 = vmax.xlane.f32.xlu1 %v9679_v42  ;;  %v2490_v32 = vpop.f32.mrb[85].mxu1  ;;  %v9694_v39 = vsel %vm2866_vm7, %v7020_v43, -1e+30  ;;  %v2815_v43 = vand.u32 127, %v2751_v53 }
 0x43f   :  { %v7021_v59 = vpop.f32.mrb[86].mxu1  ;;  %v9684_v34 = vsel %vm2864_vm5, %v2490_v32, -1e+30  ;;  %vm2879_vm5 = vcmp.ge.s32.totalorder %v2813_v57, %v9656_v16  ;;  %v2753_v32 = vadd.s32 184, %v9652_v61 }
 0x440   :  { %2996 = vmax.xlane.f32.xlu0 %v9684_v34  ;;  %v2493_v25 = vpop.f32.mrb[87].mxu1  ;;  %v9699_v47 = vsel %vm2867_vm8, %v7021_v59, -1e+30  ;;  %v2754_v59 = vadd.s32 192, %v9652_v61  ;;  %vm2881_vm7 = vcmp.ge.s32.totalorder %v2815_v43, %v9656_v16  ;;  %vm2882_vm8 = vcmp.ge.s32.totalorder %v2816_v31, %v9656_v16 }
 0x441   :  { %v9689_v40 = vsel %vm2865_vm6, %v2493_v25, -1e+30  ;;  %vm2880_vm6 = vcmp.ge.s32.totalorder %v2814_v37, %v9656_v16  ;;  %v2817_v62 = vand.u32 127, %v2753_v32  ;;  %v2763_v37 = vadd.s32 264, %v9652_v61 }
 0x442   :  { %2998 = vmax.xlane.f32.xlu1 %v9689_v40 }
 0x444   :  { %3000 = vmax.xlane.f32.xlu0 %v9694_v39 }
 0x445   :  { %v7024_v19 = vpop.f32.mrb[88].mxu1 }
 0x446   :  { %3002 = vmax.xlane.f32.xlu1 %v9699_v47  ;;  %v2506_v49 = vpop.f32.mrb[89].mxu1  ;;  %v9714_v28 = vsel %vm2870_vm11, %v7024_v19, -1e+30 }
 0x447   :  { %v7025_v9 = vpop.f32.mrb[90].mxu1  ;;  %v9704_v20 = vsel %vm2868_vm9, %v2506_v49, -1e+30  ;;  %v2818_v49 = vand.u32 127, %v2754_v59  ;;  %vm2883_vm9 = vcmp.ge.s32.totalorder %v2817_v62, %v9656_v16  ;;  %v2764_v59 = vadd.s32 272, %v9652_v61 }
 0x448   :  { %3004 = vmax.xlane.f32.xlu0 %v9704_v20  ;;  %v2509_v63 = vpop.f32.mrb[91].mxu1  ;;  %v9719_v23 = vsel %vm2871_vm12, %v7025_v9, -1e+30  ;;  %v7350_v9 = vld [vmem:[%s11486_s14 + $0x4] ss:$16 sps:$4 sm:$0xff]   ;;  %vm2886_vm12 = vcmp.ge.s32.totalorder %v2820_v58, %v9656_v16  ;;  %v2765_v62 = vadd.s32 280, %v9652_v61 }
 0x449   :  { %v9709_v6 = vsel %vm2869_vm10, %v2509_v63, -1e+30  ;;  %v2819_v63 = vand.u32 127, %v2755_v60  ;;  %4708 = vmatprep.subr.bf16.mxu0 %v7350_v9  ;;  %vm2884_vm10 = vcmp.ge.s32.totalorder %v2818_v49, %v9656_v16 }
 0x44a   :  { %3006 = vmax.xlane.f32.xlu1 %v9709_v6 }
 0x44b   :  { %vm2885_vm11 = vcmp.ge.s32.totalorder %v2819_v63, %v9656_v16  ;;  %v2829_v63 = vand.u32 127, %v2765_v62  ;;  %v2773_v62 = vadd.s32 344, %v9652_v61 }
 0x44c   :  { %3008 = vmax.xlane.f32.xlu0 %v9714_v28 }
 0x44d   :  { %v7028_v26 = vpop.f32.mrb[92].mxu1 }
 0x44e   :  { %3010 = vmax.xlane.f32.xlu1 %v9719_v23  ;;  %v2522_v41 = vpop.f32.mrb[93].mxu1  ;;  %v9734_v17 = vsel %vm2874_vm15, %v7028_v26, -1e+30  ;;  %vm2889_vm15 = vcmp.ge.s32.totalorder %v2823_v5, %v9656_v16  ;;  %v2770_v5 = vadd.s32 320, %v9652_v61 }
 0x44f   :  { %v7029_v52 = vpop.f32.mrb[94].mxu1  ;;  %v9724_v51 = vsel %vm2872_vm13, %v2522_v41, -1e+30  ;;  %v2821_v41 = vand.u32 127, %v2757_v1  ;;  %v2767_v1 = vadd.s32 296, %v9652_v61 }
 0x450   :  { %3012 = vmax.xlane.f32.xlu0 %v9724_v51  ;;  %v2525_v45 = vpop.f32.mrb[95].mxu1  ;;  %v9739_v13 = vsel %vm2875_vm1, %v7029_v52, -1e+30 }
 0x451   :  { %v9729_v55 = vsel %vm2873_vm14, %v2525_v45, -1e+30  ;;  %vm2887_vm13 = vcmp.ge.s32.totalorder %v2821_v41, %v9656_v16  ;;  %vm2888_vm14 = vcmp.ge.s32.totalorder %v2822_v2, %v9656_v16  ;;  %v2768_v41 = vadd.s32 304, %v9652_v61 }
 0x452   :  { %3014 = vmax.xlane.f32.xlu1 %v9729_v55 }
 0x454   :  { %3016 = vmax.xlane.f32.xlu0 %v9734_v17 }
 0x455   :  { %v7032_v48 = vpop.f32.mrb[96].mxu1 }
 0x456   :  { %3018 = vmax.xlane.f32.xlu1 %v9739_v13  ;;  %v2538_v50 = vpop.f32.mrb[97].mxu1  ;;  %v9754_v33 = vsel %vm2878_vm4, %v7032_v48, -1e+30  ;;  %v2824_v48 = vand.u32 127, %v2760_v54  ;;  %v2832_v54 = vand.u32 127, %v2768_v41 }
 0x457   :  { %v7033_v18 = vpop.f32.mrb[98].mxu1  ;;  %v9744_v3 = vsel %vm2876_vm2, %v2538_v50, -1e+30  ;;  %v2762_v50 = vadd.s32 256, %v9652_v61 }
 0x458   :  { %3020 = vmax.xlane.f32.xlu0 %v9744_v3  ;;  %v2541_v38 = vpop.f32.mrb[99].mxu1  ;;  %v9759_v56 = vsel %vm2879_vm5, %v7033_v18, -1e+30  ;;  %vm2890_vm1 = vcmp.ge.s32.totalorder %v2824_v48, %v9656_v16 }
 0x459   :  { %v9749_v24 = vsel %vm2877_vm3, %v2541_v38, -1e+30  ;;  %v2825_v38 = vand.u32 127, %v2761_v11  ;;  %v2826_v31 = vand.u32 127, %v2762_v50 }
 0x45a   :  { %3022 = vmax.xlane.f32.xlu1 %v9749_v24 }
 0x45b   :  { %vm2891_vm2 = vcmp.ge.s32.totalorder %v2825_v38, %v9656_v16  ;;  %vm2892_vm3 = vcmp.ge.s32.totalorder %v2826_v31, %v9656_v16  ;;  %v2772_v31 = vadd.s32 336, %v9652_v61 }
 0x45c   :  { %3024 = vmax.xlane.f32.xlu0 %v9754_v33 }
 0x45d   :  { %v7036_v25 = vpop.f32.mrb[100].mxu1 }
 0x45e   :  { %3026 = vmax.xlane.f32.xlu1 %v9759_v56  ;;  %v2554_v30 = vpop.f32.mrb[101].mxu1  ;;  %v9777_v15 = vsel %vm2882_vm8, %v7036_v25, -1e+30 }
 0x45f   :  { %v7037_v14 = vpop.f32.mrb[102].mxu1  ;;  %v9764_v10 = vsel %vm2880_vm6, %v2554_v30, -1e+30  ;;  %v2827_v30 = vand.u32 127, %v2763_v37  ;;  %vm2895_vm6 = vcmp.ge.s32.totalorder %v2829_v63, %v9656_v16 }
 0x460   :  { %3028 = vmax.xlane.f32.xlu0 %v9764_v10  ;;  %v2557_v19 = vpop.f32.mrb[103].mxu1  ;;  %v9782_v36 = vsel %vm2883_vm9, %v7037_v14, -1e+30  ;;  %v2828_v14 = vand.u32 127, %v2764_v59  ;;  %vm2898_vm9 = vcmp.ge.s32.totalorder %v2832_v54, %v9656_v16  ;;  %v2776_v54 = vadd.s32 368, %v9652_v61 }
 0x461   :  { %v9769_v22 = vsel %vm2881_vm7, %v2557_v19, -1e+30  ;;  %v2766_v19 = vadd.s32 288, %v9652_v61  ;;  %vm2893_vm4 = vcmp.ge.s32.totalorder %v2827_v30, %v9656_v16 }
 0x462   :  { %3030 = vmax.xlane.f32.xlu1 %v9769_v22  ;;  %vm2894_vm5 = vcmp.ge.s32.totalorder %v2828_v14, %v9656_v16 }
 0x464   :  { %3032 = vmax.xlane.f32.xlu0 %v9777_v15 }
 0x465   :  { %v7040_v0 = vpop.f32.mrb[104].mxu1 }
 0x466   :  { %3034 = vmax.xlane.f32.xlu1 %v9782_v36  ;;  %v2570_v26 = vpop.f32.mrb[105].mxu1  ;;  %v9797_v21 = vsel %vm2886_vm12, %v7040_v0, -1e+30 }
 0x467   :  { %v7041_v35 = vpop.f32.mrb[106].mxu1  ;;  %v9787_v52 = vsel %vm2884_vm10, %v2570_v26, -1e+30  ;;  %v2830_v26 = vand.u32 127, %v2766_v19  ;;  %v2836_v19 = vand.u32 127, %v2772_v31 }
 0x468   :  { %3036 = vmax.xlane.f32.xlu0 %v9787_v52  ;;  %v2573_v45 = vpop.f32.mrb[107].mxu1  ;;  %v9802_v53 = vsel %vm2887_vm13, %v7041_v35, -1e+30  ;;  %v2831_v35 = vand.u32 127, %v2767_v1 }
 0x469   :  { %v9792_v7 = vsel %vm2885_vm11, %v2573_v45, -1e+30  ;;  %v2769_v45 = vadd.s32 312, %v9652_v61  ;;  %vm2896_vm7 = vcmp.ge.s32.totalorder %v2830_v26, %v9656_v16  ;;  %vm2902_vm13 = vcmp.ge.s32.totalorder %v2836_v19, %v9656_v16 }
 0x46a   :  { %3038 = vmax.xlane.f32.xlu1 %v9792_v7  ;;  %vm2897_vm8 = vcmp.ge.s32.totalorder %v2831_v35, %v9656_v16 }
 0x46c   :  { %3040 = vmax.xlane.f32.xlu0 %v9797_v21 }
 0x46d   :  { %v7044_v57 = vpop.f32.mrb[108].mxu1 }
 0x46e   :  { %3042 = vmax.xlane.f32.xlu1 %v9802_v53  ;;  %v2586_v18 = vpop.f32.mrb[109].mxu1  ;;  %v9817_v60 = vsel %vm2890_vm1, %v7044_v57, -1e+30  ;;  %v2833_v57 = vand.u32 127, %v2769_v45 }
 0x46f   :  { %v7045_v29 = vpop.f32.mrb[110].mxu1  ;;  %v9807_v43 = vsel %vm2888_vm14, %v2586_v18, -1e+30  ;;  %v2771_v18 = vadd.s32 328, %v9652_v61 }
 0x470   :  { %3044 = vmax.xlane.f32.xlu0 %v9807_v43  ;;  %v2589_v32 = vpop.f32.mrb[111].mxu1  ;;  %v9822_v44 = vsel %vm2891_vm2, %v7045_v29, -1e+30  ;;  %vm2899_vm10 = vcmp.ge.s32.totalorder %v2833_v57, %v9656_v16 }
 0x471   :  { %v9812_v25 = vsel %vm2889_vm15, %v2589_v32, -1e+30  ;;  %v2834_v32 = vand.u32 127, %v2770_v5  ;;  %v2835_v30 = vand.u32 127, %v2771_v18  ;;  %v2840_v18 = vand.u32 127, %v2776_v54 }
 0x472   :  { %3046 = vmax.xlane.f32.xlu1 %v9812_v25 }
 0x473   :  { %vm2900_vm11 = vcmp.ge.s32.totalorder %v2834_v32, %v9656_v16  ;;  %vm2901_vm12 = vcmp.ge.s32.totalorder %v2835_v30, %v9656_v16  ;;  %vm2906_vm2 = vcmp.ge.s32.totalorder %v2840_v18, %v9656_v16 }
 0x474   :  { %3048 = vmax.xlane.f32.xlu0 %v9817_v60 }
 0x475   :  { %v7048_v49 = vpop.f32.mrb[112].mxu1 }
 0x476   :  { %3050 = vmax.xlane.f32.xlu1 %v9822_v44  ;;  %v2602_v9 = vpop.f32.mrb[113].mxu1  ;;  %v9837_v2 = vsel %vm2894_vm5, %v7048_v49, -1e+30  ;;  %v2774_v49 = vadd.s32 352, %v9652_v61 }
 0x477   :  { %v7049_v58 = vpop.f32.mrb[114].mxu1  ;;  %v9827_v46 = vsel %vm2892_vm3, %v2602_v9, -1e+30 }
 0x478   :  { %3052 = vmax.xlane.f32.xlu0 %v9827_v46  ;;  %v2605_v0 = vpop.f32.mrb[115].mxu1  ;;  %v9842_v48 = vsel %vm2895_vm6, %v7049_v58, -1e+30  ;;  %v2837_v58 = vand.u32 127, %v2773_v62  ;;  %v2838_v45 = vand.u32 127, %v2774_v49  ;;  %v2779_v62 = vadd.s32 392, %v9652_v61 }
 0x479   :  { %v9832_v27 = vsel %vm2893_vm4, %v2605_v0, -1e+30  ;;  %v2775_v0 = vadd.s32 360, %v9652_v61 }
 0x47a   :  { %3054 = vmax.xlane.f32.xlu1 %v9832_v27  ;;  %vm2903_vm14 = vcmp.ge.s32.totalorder %v2837_v58, %v9656_v16  ;;  %vm2904_vm15 = vcmp.ge.s32.totalorder %v2838_v45, %v9656_v16  ;;  %v2780_v58 = vadd.s32 400, %v9652_v61 }
 0x47c   :  { %3056 = vmax.xlane.f32.xlu0 %v9837_v2  ;;  %v2844_v54 = vand.u32 127, %v2780_v58 }
 0x47d   :  { %v7052_v11 = vpop.f32.mrb[116].mxu1 }
 0x47e   :  { %3058 = vmax.xlane.f32.xlu1 %v9842_v48  ;;  %v2618_v50 = vpop.f32.mrb[117].mxu1  ;;  %v9857_v14 = vsel %vm2898_vm9, %v7052_v11, -1e+30  ;;  %v2839_v11 = vand.u32 127, %v2775_v0  ;;  %vm2910_vm6 = vcmp.ge.s32.totalorder %v2844_v54, %v9656_v16  ;;  %v2786_v54 = vadd.s32 448, %v9652_v61 }
 0x47f   :  { %v7053_v38 = vpop.f32.mrb[118].mxu1  ;;  %v9847_v37 = vsel %vm2896_vm7, %v2618_v50, -1e+30  ;;  %v2777_v50 = vadd.s32 376, %v9652_v61 }
 0x480   :  { %3060 = vmax.xlane.f32.xlu0 %v9847_v37  ;;  %v2621_v29 = vpop.f32.mrb[119].mxu1  ;;  %v9862_v63 = vsel %vm2899_vm10, %v7053_v38, -1e+30  ;;  %v2778_v38 = vadd.s32 384, %v9652_v61  ;;  %vm2905_vm1 = vcmp.ge.s32.totalorder %v2839_v11, %v9656_v16  ;;  %v2782_v11 = vadd.s32 416, %v9652_v61 }
 0x481   :  { %v9852_v59 = vsel %vm2897_vm8, %v2621_v29, -1e+30  ;;  %v2841_v30 = vand.u32 127, %v2777_v50 }
 0x482   :  { %3062 = vmax.xlane.f32.xlu1 %v9852_v59 }
 0x483   :  { %vm2907_vm3 = vcmp.ge.s32.totalorder %v2841_v30, %v9656_v16  ;;  %v2783_v30 = vadd.s32 424, %v9652_v61 }
 0x484   :  { %3064 = vmax.xlane.f32.xlu0 %v9857_v14 }
 0x485   :  { %v7056_v9 = vpop.f32.mrb[120].mxu1 }
 0x486   :  { %3066 = vmax.xlane.f32.xlu1 %v9862_v63  ;;  %v2634_v1 = vpop.f32.mrb[121].mxu1  ;;  %v9877_v57 = vsel %vm2902_vm13, %v7056_v9, -1e+30 }
 0x487   :  { %v7057_v26 = vpop.f32.mrb[122].mxu1  ;;  %v9867_v41 = vsel %vm2900_vm11, %v2634_v1, -1e+30  ;;  %v2842_v1 = vand.u32 127, %v2778_v38 }
 0x488   :  { %3068 = vmax.xlane.f32.xlu0 %v9867_v41  ;;  %v2637_v35 = vpop.f32.mrb[123].mxu1  ;;  %v9882_v32 = vsel %vm2903_vm14, %v7057_v26, -1e+30  ;;  %v2843_v26 = vand.u32 127, %v2779_v62 }
 0x489   :  { %v9872_v5 = vsel %vm2901_vm12, %v2637_v35, -1e+30  ;;  %v2781_v35 = vadd.s32 408, %v9652_v61  ;;  %vm2908_vm4 = vcmp.ge.s32.totalorder %v2842_v1, %v9656_v16  ;;  %v2846_v1 = vand.u32 127, %v2782_v11 }
 0x48a   :  { %3070 = vmax.xlane.f32.xlu1 %v9872_v5  ;;  %vm2909_vm5 = vcmp.ge.s32.totalorder %v2843_v26, %v9656_v16  ;;  %v2847_v26 = vand.u32 127, %v2783_v30  ;;  %v2787_v30 = vadd.s32 456, %v9652_v61 }
 0x48b   :  { %vm2912_vm8 = vcmp.ge.s32.totalorder %v2846_v1, %v9656_v16 }
 0x48c   :  { %3072 = vmax.xlane.f32.xlu0 %v9877_v57  ;;  %vm2913_vm9 = vcmp.ge.s32.totalorder %v2847_v26, %v9656_v16  ;;  %v2851_v26 = vand.u32 127, %v2787_v30  ;;  %v2791_v30 = vadd.s32 488, %v9652_v61 }
 0x48d   :  { %v7060_v29 = vpop.f32.mrb[124].mxu1 }
 0x48e   :  { %3074 = vmax.xlane.f32.xlu1 %v9882_v32  ;;  %v2650_v31 = vpop.f32.mrb[125].mxu1  ;;  %v9897_v45 = vsel %vm2906_vm2, %v7060_v29, -1e+30  ;;  %vm2917_vm13 = vcmp.ge.s32.totalorder %v2851_v26, %v9656_v16  ;;  %v2855_v26 = vand.u32 127, %v2791_v30 }
 0x48f   :  { %v7061_v19 = vpop.f32.mrb[126].mxu1  ;;  %v9887_v49 = vsel %vm2904_vm15, %v2650_v31, -1e+30  ;;  %v2845_v31 = vand.u32 127, %v2781_v35  ;;  %v2785_v35 = vadd.s32 440, %v9652_v61 }
 0x490   :  { %3076 = vmax.xlane.f32.xlu0 %v9887_v49  ;;  %v2653_v9 = vpop.f32.mrb[127].mxu1  ;;  %v9902_v18 = vsel %vm2907_vm3, %v7061_v19, -1e+30  ;;  %v2784_v19 = vadd.s32 432, %v9652_v61  ;;  %vm2921_vm2 = vcmp.ge.s32.totalorder %v2855_v26, %v9656_v16 }
 0x491   :  { %v9892_v0 = vsel %vm2905_vm1, %v2653_v9, -1e+30  ;;  %11692 = vst [vmem:[#allocation31_spill] sm:$0xff] %v9902_v18  ;;  %vm2911_vm7 = vcmp.ge.s32.totalorder %v2845_v31, %v9656_v16  ;;  %v2849_v31 = vand.u32 127, %v2785_v35  ;;  %v2789_v35 = vadd.s32 472, %v9652_v61 }
 0x492   :  { %3078 = vmax.xlane.f32.xlu1 %v9892_v0 }
 0x493   :  { %vm2915_vm11 = vcmp.ge.s32.totalorder %v2849_v31, %v9656_v16  ;;  %v2853_v31 = vand.u32 127, %v2789_v35  ;;  %v2793_v35 = vadd.s32 504, %v9652_v61 }
 0x494   :  { %3080 = vmax.xlane.f32.xlu0 %v9897_v45 }
 0x495   :  { %v7064_v50 = vpop.f32.mrb[128].mxu1  ;;  %vm2919_vm15 = vcmp.ge.s32.totalorder %v2853_v31, %v9656_v16 }
 0x496   :  { %3082 = vmax.xlane.f32.xlu1 %v9902_v18  ;;  %v2666_v38 = vpop.f32.mrb[129].mxu1  ;;  %v9917_v18 = vsel %vm2910_vm6, %v7064_v50, -1e+30 }
 0x497   :  { %v7065_v29 = vpop.f32.mrb[130].mxu1  ;;  %v9907_v62 = vsel %vm2908_vm4, %v2666_v38, -1e+30  ;;  %11695 = vst [vmem:[#allocation13_spill] sm:$0xff] %v9917_v18  ;;  %v2848_v38 = vand.u32 127, %v2784_v19  ;;  %v2850_v19 = vand.u32 127, %v2786_v54 }
 0x498   :  { %11693 = vst [vmem:[#allocation32_spill] sm:$0xff] %v9907_v62  ;;  %3084 = vmax.xlane.f32.xlu0 %v9907_v62  ;;  %v2669_v9 = vpop.f32.mrb[131].mxu1  ;;  %v9922_v62 = vsel %vm2911_vm7, %v7065_v29, -1e+30  ;;  %v2788_v29 = vadd.s32 464, %v9652_v61 }
 0x499   :  { %v9912_v58 = vsel %vm2909_vm5, %v2669_v9, -1e+30  ;;  %11696 = vst [vmem:[#allocation14_spill] sm:$0xff] %v9922_v62  ;;  %vm2914_vm10 = vcmp.ge.s32.totalorder %v2848_v38, %v9656_v16  ;;  %vm2916_vm12 = vcmp.ge.s32.totalorder %v2850_v19, %v9656_v16  ;;  %v2790_v38 = vadd.s32 480, %v9652_v61 }
 0x49a   :  { %11694 = vst [vmem:[#allocation33_spill] sm:$0xff] %v9912_v58  ;;  %3086 = vmax.xlane.f32.xlu1 %v9912_v58 }
 0x49c   :  { %3088 = vmax.xlane.f32.xlu0 %v9917_v18 }
 0x49d   :  { %v7068_v11 = vpop.f32.mrb[132].mxu1 }
 0x49e   :  { %3090 = vmax.xlane.f32.xlu1 %v9922_v62  ;;  %v2682_v9 = vpop.f32.mrb[133].mxu1  ;;  %v9937_v62 = vsel %vm2914_vm10, %v7068_v11, -1e+30 }
 0x49f   :  { %v7069_v50 = vpop.f32.mrb[134].mxu1  ;;  %v9927_v58 = vsel %vm2912_vm8, %v2682_v9, -1e+30  ;;  %11699 = vst [vmem:[#allocation17_spill] sm:$0xff] %v9937_v62  ;;  %v2852_v9 = vand.u32 127, %v2788_v29  ;;  %v2854_v29 = vand.u32 127, %v2790_v38 }
 0x4a0   :  { %11697 = vst [vmem:[#allocation15_spill] sm:$0xff] %v9927_v58  ;;  %3092 = vmax.xlane.f32.xlu0 %v9927_v58  ;;  %v2685_v1 = vpop.f32.mrb[135].mxu1  ;;  %v9942_v58 = vsel %vm2915_vm11, %v7069_v50, -1e+30  ;;  %v2792_v50 = vadd.s32 496, %v9652_v61 }
 0x4a1   :  { %v9932_v18 = vsel %vm2913_vm9, %v2685_v1, -1e+30  ;;  %11700 = vst [vmem:[#allocation18_spill] sm:$0xff] %v9942_v58  ;;  %vm2918_vm14 = vcmp.ge.s32.totalorder %v2852_v9, %v9656_v16  ;;  %vm2920_vm1 = vcmp.ge.s32.totalorder %v2854_v29, %v9656_v16 }
 0x4a2   :  { %11698 = vst [vmem:[#allocation16_spill] sm:$0xff] %v9932_v18  ;;  %3094 = vmax.xlane.f32.xlu1 %v9932_v18 }
 0x4a4   :  { %3096 = vmax.xlane.f32.xlu0 %v9937_v62 }
 0x4a5   :  { %v7072_v54 = vpop.f32.mrb[136].mxu1 }
 0x4a6   :  { %3098 = vmax.xlane.f32.xlu1 %v9942_v58  ;;  %v2698_v1 = vpop.f32.mrb[137].mxu1  ;;  %v9957_v58 = vsel %vm2918_vm14, %v7072_v54, -1e+30 }
 0x4a7   :  { %v7073_v11 = vpop.f32.mrb[138].mxu1  ;;  %v9947_v18 = vsel %vm2916_vm12, %v2698_v1, -1e+30  ;;  %v2856_v1 = vand.u32 127, %v2792_v50 }
 0x4a8   :  { %3100 = vmax.xlane.f32.xlu0 %v9947_v18  ;;  %v2701_v19 = vpop.f32.mrb[139].mxu1  ;;  %v9961_v38 = vsel %vm2919_vm15, %v7073_v11, -1e+30 }
 0x4a9   :  { %v9952_v62 = vsel %vm2917_vm13, %v2701_v19, -1e+30  ;;  %vm2922_vm3 = vcmp.ge.s32.totalorder %v2856_v1, %v9656_v16 }
 0x4aa   :  { %11701 = vst [vmem:[#allocation19_spill] sm:$0xff] %v9952_v62  ;;  %3102 = vmax.xlane.f32.xlu1 %v9952_v62  ;;  %v2857_v62 = vand.u32 127, %v2793_v35 }
 0x4ac   :  { %3104 = vmax.xlane.f32.xlu0 %v9957_v58  ;;  %vm2923_vm4 = vcmp.ge.s32.totalorder %v2857_v62, %v9656_v16 }
 0x4ad   :  { %v7076_v9 = vpop.f32.mrb[140].mxu1 }
 0x4ae   :  { %3106 = vmax.xlane.f32.xlu1 %v9961_v38  ;;  %v2714_v19 = vpop.f32.mrb[141].mxu1  ;;  %v9973_v11 = vsel %vm2922_vm3, %v7076_v9, -1e+30 }
 0x4af   :  { %v7077_v31 = vpop.f32.mrb[142].mxu1  ;;  %v9965_v30 = vsel %vm2920_vm1, %v2714_v19, -1e+30  ;;  %11704 = vst [vmem:[#allocation22_spill] sm:$0xff] %v9973_v11 }
 0x4b0   :  { %11702 = vst [vmem:[#allocation20_spill] sm:$0xff] %v9965_v30  ;;  %3108 = vmax.xlane.f32.xlu0 %v9965_v30  ;;  %v2717_v61 = vpop.f32.mrb[143].mxu1  ;;  %v9976_v29 = vsel %vm2923_vm4, %v7077_v31, -1e+30 }
 0x4b1   :  { %v9969_v54 = vsel %vm2921_vm2, %v2717_v61, -1e+30  ;;  %11705 = vst [vmem:[#allocation23_spill] sm:$0xff] %v9976_v29 }
 0x4b2   :  { %11703 = vst [vmem:[#allocation21_spill] sm:$0xff] %v9969_v54  ;;  %3110 = vmax.xlane.f32.xlu1 %v9969_v54 }
 0x4b4   :  { %3112 = vmax.xlane.f32.xlu0 %v9973_v11 }
 0x4b6   :  { %3114 = vmax.xlane.f32.xlu1 %v9976_v29 }
 0x4c5   :  { %v2989_v50 = vpop.xlane.xlu0 %2988 }
 0x4c6   :  { %v3116_v26 = vsub.f32 %v9664_v4, %v2989_v50 }
 0x4c7   :  { %v2991_v35 = vpop.xlane.xlu1 %2990 }
 0x4c8   :  { %v3180_v19 = vmul.f32 1.442695, %v3116_v26  ;;  %v3117_v1 = vsub.f32 %v9669_v12, %v2991_v35 }
 0x4c9   :  { %v2993_v61 = vpop.xlane.xlu0 %2992 }
 0x4ca   :  { %v3182_v30 = vmul.f32 1.442695, %v3117_v1  ;;  %v3118_v54 = vsub.f32 %v9674_v8, %v2993_v61  ;;  %7468 = vpow2.f32 %v3180_v19 }
 0x4cb   :  { %v2995_v16 = vpop.xlane.xlu1 %2994 }
 0x4cc   :  { %7470 = vpow2.f32 %v3182_v30  ;;  %v3184_v62 = vmul.f32 1.442695, %v3118_v54  ;;  %v3119_v9 = vsub.f32 %v9679_v42, %v2995_v16 }
 0x4cd   :  { %v2997_v31 = vpop.xlane.xlu0 %2996 }
 0x4ce   :  { %v3186_v11 = vmul.f32 1.442695, %v3119_v9  ;;  %v3120_v29 = vsub.f32 %v9684_v34, %v2997_v31  ;;  %7472 = vpow2.f32 %v3184_v62 }
 0x4cf   :  { %v2999_v4 = vpop.xlane.xlu1 %2998 }
 0x4d0   :  { %7474 = vpow2.f32 %v3186_v11  ;;  %v3188_v50 = vmul.f32 1.442695, %v3120_v29  ;;  %v3121_v12 = vsub.f32 %v9689_v40, %v2999_v4 }
 0x4d1   :  { %v3001_v26 = vpop.xlane.xlu0 %3000 }
 0x4d2   :  { %v3190_v35 = vmul.f32 1.442695, %v3121_v12  ;;  %v3122_v8 = vsub.f32 %v9694_v39, %v3001_v26  ;;  %7476 = vpow2.f32 %v3188_v50 }
 0x4d3   :  { %v3003_v19 = vpop.xlane.xlu1 %3002 }
 0x4d4   :  { %7478 = vpow2.f32 %v3190_v35  ;;  %v3192_v30 = vmul.f32 1.442695, %v3122_v8  ;;  %v3123_v42 = vsub.f32 %v9699_v47, %v3003_v19  ;;  %v9987_v54 = vpop.eup %7468 }
 0x4d5   :  { %v3005_v1 = vpop.xlane.xlu0 %3004 }
 0x4d6   :  { %v9989_v34 = vpop.eup %7470  ;;  %v3194_v61 = vmul.f32 1.442695, %v3123_v42  ;;  %v3124_v11 = vsub.f32 %v9704_v20, %v3005_v1  ;;  %7480 = vpow2.f32 %v3192_v30  ;;  %v7348_v20 = vld [vmem:[%s11486_s14] ss:$16 sps:$4 sm:$0xff]  }
 0x4d7   :  { %v3007_v40 = vpop.xlane.xlu1 %3006  ;;  %v3436_v29 = vpack.c.bf16 %v9989_v34, %v9987_v54  ;;  %v7351_v1 = vld [vmem:[%s11486_s14 + $0x20] ss:$16 sps:$4 sm:$0xff]  }
 0x4d8   :  { %7482 = vpow2.f32 %v3194_v61  ;;  %v3196_v39 = vmul.f32 1.442695, %v3124_v11  ;;  %v3125_v16 = vsub.f32 %v9709_v6, %v3007_v40  ;;  %v9995_v62 = vpop.eup %7472  ;;  %v7353_v6 = vld [vmem:[%s11486_s14 + $0x24] ss:$16 sps:$4 sm:$0xff]  }
 0x4d9   :  { %7094 = vmatprep.mubr.bf16.mxu0 %v3436_v29  ;;  %v3009_v47 = vpop.xlane.xlu0 %3008 }
 0x4da   :  { %v9997_v9 = vpop.eup %7474  ;;  %v3198_v31 = vmul.f32 1.442695, %v3125_v16  ;;  %v3126_v4 = vsub.f32 %v9714_v28, %v3009_v47  ;;  %7484 = vpow2.f32 %v3196_v39 }
 0x4db   :  { %v3011_v50 = vpop.xlane.xlu1 %3010  ;;  %v3437_v12 = vpack.c.bf16 %v9997_v9, %v9995_v62 }
 0x4dc   :  { %7486 = vpow2.f32 %v3198_v31  ;;  %v3200_v26 = vmul.f32 1.442695, %v3126_v4  ;;  %v3127_v35 = vsub.f32 %v9719_v23, %v3011_v50  ;;  %v10009_v8 = vpop.eup %7476  ;;  %v7356_v23 = vld [vmem:[%s11486_s14 + $0x44] ss:$16 sps:$4 sm:$0xff]   ;;  %v7354_v4 = vld [vmem:[%s11486_s14 + $0x40] ss:$16 sps:$4 sm:$0xff]  }
 0x4dd   :  { %7095 = vmatmul.mubr.bf16.vlgmr.msra.gmra.mrb[96].mxu0 %v3437_v12  ;;  %v3013_v28 = vpop.xlane.xlu0 %3012 }
 0x4de   :  { %v10011_v19 = vpop.eup %7478  ;;  %v3202_v30 = vmul.f32 1.442695, %v3127_v35  ;;  %4709 = vmatpush1.bf16.msra.mxu0 %v7348_v20  ;;  %v3128_v42 = vsub.f32 %v9724_v51, %v3013_v28  ;;  %7488 = vpow2.f32 %v3200_v26 }
 0x4df   :  { %v3015_v61 = vpop.xlane.xlu1 %3014  ;;  %v3438_v11 = vpack.c.bf16 %v10011_v19, %v10009_v8  ;;  %4710 = vmatprep.subr.bf16.mxu0 %v7353_v6 }
 0x4e0   :  { %7490 = vpow2.f32 %v3202_v30  ;;  %v3204_v40 = vmul.f32 1.442695, %v3128_v42  ;;  %v3129_v29 = vsub.f32 %v9729_v55, %v3015_v61  ;;  %v10023_v39 = vpop.eup %7480  ;;  %v7359_v55 = vld [vmem:[%s11486_s14 + $0x64] ss:$16 sps:$4 sm:$0xff]   ;;  %v7357_v42 = vld [vmem:[%s11486_s14 + $0x60] ss:$16 sps:$4 sm:$0xff]  }
 0x4e1   :  { %7098 = vmatprep.mubr.bf16.mxu0 %v3438_v11  ;;  %v3017_v51 = vpop.xlane.xlu0 %3016 }
 0x4e2   :  { %v10025_v16 = vpop.eup %7482  ;;  %v3206_v47 = vmul.f32 1.442695, %v3129_v29  ;;  %v3130_v31 = vsub.f32 %v9734_v17, %v3017_v51  ;;  %4711 = vmatpush1.bf16.msra.mxu0 %v7351_v1  ;;  %7492 = vpow2.f32 %v3204_v40 }
 0x4e3   :  { %v3019_v20 = vpop.xlane.xlu1 %3018  ;;  %v3439_v50 = vpack.c.bf16 %v10025_v16, %v10023_v39  ;;  %4712 = vmatprep.subr.bf16.mxu0 %v7356_v23 }
 0x4e4   :  { %7494 = vpow2.f32 %v3206_v47  ;;  %v3208_v12 = vmul.f32 1.442695, %v3130_v31  ;;  %v3131_v6 = vsub.f32 %v9739_v13, %v3019_v20  ;;  %v10037_v17 = vpop.eup %7484  ;;  %v7362_v13 = vld [vmem:[%s11486_s14 + $0x84] ss:$16 sps:$4 sm:$0xff]   ;;  %v7360_v31 = vld [vmem:[%s11486_s14 + $0x80] ss:$16 sps:$4 sm:$0xff]  }
 0x4e5   :  { %7099 = vmatmul.mubr.bf16.gmra.mrb[100].mxu0 %v3439_v50  ;;  %v3021_v26 = vpop.xlane.xlu0 %3020 }
 0x4e6   :  { %v10039_v35 = vpop.eup %7486  ;;  %v3210_v28 = vmul.f32 1.442695, %v3131_v6  ;;  %v3132_v30 = vsub.f32 %v9744_v3, %v3021_v26  ;;  %4713 = vmatpush1.bf16.msra.mxu0 %v7354_v4  ;;  %7496 = vpow2.f32 %v3208_v12 }
 0x4e7   :  { %v3023_v1 = vpop.xlane.xlu1 %3022  ;;  %v3440_v61 = vpack.c.bf16 %v10039_v35, %v10037_v17  ;;  %4714 = vmatprep.subr.bf16.mxu0 %v7359_v55 }
 0x4e8   :  { %7498 = vpow2.f32 %v3210_v28  ;;  %v3212_v11 = vmul.f32 1.442695, %v3132_v30  ;;  %v3133_v23 = vsub.f32 %v9749_v24, %v3023_v1  ;;  %v10051_v3 = vpop.eup %7488  ;;  %v7365_v24 = vld [vmem:[%s11486_s14 + $0xa4] ss:$16 sps:$4 sm:$0xff]   ;;  %v7363_v30 = vld [vmem:[%s11486_s14 + $0xa0] ss:$16 sps:$4 sm:$0xff]  }
 0x4e9   :  { %7102 = vmatprep.mubr.bf16.mxu0 %v3440_v61  ;;  %v3025_v40 = vpop.xlane.xlu0 %3024 }
 0x4ea   :  { %v10053_v29 = vpop.eup %7490  ;;  %7500 = vpow2.f32 %v3212_v11  ;;  %v3214_v51 = vmul.f32 1.442695, %v3133_v23  ;;  %v3134_v47 = vsub.f32 %v9754_v33, %v3025_v40  ;;  %4715 = vmatpush1.bf16.msra.mxu0 %v7357_v42 }
 0x4eb   :  { %v3027_v4 = vpop.xlane.xlu1 %3026  ;;  %v3441_v20 = vpack.c.bf16 %v10053_v29, %v10051_v3  ;;  %4716 = vmatprep.subr.bf16.mxu0 %v7362_v13 }
 0x4ec   :  { %7502 = vpow2.f32 %v3214_v51  ;;  %v3216_v50 = vmul.f32 1.442695, %v3134_v47  ;;  %v3135_v55 = vsub.f32 %v9759_v56, %v3027_v4  ;;  %v10065_v12 = vpop.eup %7492  ;;  %v7368_v56 = vld [vmem:[%s11486_s14 + $0xc4] ss:$16 sps:$4 sm:$0xff]   ;;  %v7366_v47 = vld [vmem:[%s11486_s14 + $0xc0] ss:$16 sps:$4 sm:$0xff]  }
 0x4ed   :  { %7103 = vmatmul.mubr.bf16.gmra.mrb[104].mxu0 %v3441_v20  ;;  %v3029_v33 = vpop.xlane.xlu0 %3028 }
 0x4ee   :  { %v10067_v6 = vpop.eup %7494  ;;  %7504 = vpow2.f32 %v3216_v50  ;;  %v3218_v26 = vmul.f32 1.442695, %v3135_v55  ;;  %v3136_v28 = vsub.f32 %v9764_v10, %v3029_v33  ;;  %4717 = vmatpush1.bf16.msra.mxu0 %v7360_v31 }
 0x4ef   :  { %v3031_v42 = vpop.xlane.xlu1 %3030  ;;  %v3442_v1 = vpack.c.bf16 %v10067_v6, %v10065_v12  ;;  %4718 = vmatprep.subr.bf16.mxu0 %v7365_v24 }
 0x4f0   :  { %7506 = vpow2.f32 %v3218_v26  ;;  %v3220_v61 = vmul.f32 1.442695, %v3136_v28  ;;  %v3137_v13 = vsub.f32 %v9769_v22, %v3031_v42  ;;  %v10079_v11 = vpop.eup %7496  ;;  %v7371_v22 = vld [vmem:[%s11486_s14 + $0xe4] ss:$16 sps:$4 sm:$0xff]   ;;  %v7369_v28 = vld [vmem:[%s11486_s14 + $0xe0] ss:$16 sps:$4 sm:$0xff]  }
 0x4f1   :  { %7106 = vmatprep.mubr.bf16.mxu0 %v3442_v1  ;;  %v3033_v10 = vpop.xlane.xlu0 %3032 }
 0x4f2   :  { %v10081_v23 = vpop.eup %7498  ;;  %7508 = vpow2.f32 %v3220_v61  ;;  %v3222_v40 = vmul.f32 1.442695, %v3137_v13  ;;  %v3138_v51 = vsub.f32 %v9777_v15, %v3033_v10  ;;  %4719 = vmatpush1.bf16.msra.mxu0 %v7363_v30 }
 0x4f3   :  { %v3035_v31 = vpop.xlane.xlu1 %3034  ;;  %v3443_v4 = vpack.c.bf16 %v10081_v23, %v10079_v11  ;;  %4720 = vmatprep.subr.bf16.mxu0 %v7368_v56 }
 0x4f4   :  { %v7501_v20 = vpop.eup %7500  ;;  %7510 = vpow2.f32 %v3222_v40  ;;  %v3224_v24 = vmul.f32 1.442695, %v3138_v51  ;;  %v3139_v50 = vsub.f32 %v9782_v36, %v3035_v31  ;;  %v7374_v36 = vld [vmem:[%s11486_s14 + $0xc] ss:$16 sps:$4 sm:$0xff]  }
 0x4f5   :  { %7107 = vmatmul.mubr.bf16.gmra.mrb[108].mxu0 %v3443_v4  ;;  %v3037_v15 = vpop.xlane.xlu0 %3036  ;;  %3340 = vadd.xlane.f32.xlu0 %v7501_v20 }
 0x4f6   :  { %v7503_v55 = vpop.eup %7502  ;;  %7512 = vpow2.f32 %v3224_v24  ;;  %v3226_v33 = vmul.f32 1.442695, %v3139_v50  ;;  %v3140_v26 = vsub.f32 %v9787_v52, %v3037_v15  ;;  %4721 = vmatpush1.bf16.msra.mxu0 %v7366_v47 }
 0x4f7   :  { %v3039_v30 = vpop.xlane.xlu1 %3038  ;;  %3342 = vadd.xlane.f32.xlu1 %v7503_v55  ;;  %v3444_v42 = vpack.c.bf16 %v7503_v55, %v7501_v20  ;;  %4722 = vmatprep.subr.bf16.mxu0 %v7371_v22 }
 0x4f8   :  { %v7505_v1 = vpop.eup %7504  ;;  %7514 = vpow2.f32 %v3226_v33  ;;  %v3228_v56 = vmul.f32 1.442695, %v3140_v26  ;;  %v3141_v61 = vsub.f32 %v9792_v7, %v3039_v30 }
 0x4f9   :  { %7110 = vmatprep.mubr.bf16.mxu0 %v3444_v42  ;;  %v3041_v52 = vpop.xlane.xlu0 %3040  ;;  %3344 = vadd.xlane.f32.xlu0 %v7505_v1 }
 0x4fa   :  { %v7507_v13 = vpop.eup %7506  ;;  %7516 = vpow2.f32 %v3228_v56  ;;  %v3230_v10 = vmul.f32 1.442695, %v3141_v61  ;;  %v3142_v40 = vsub.f32 %v9797_v21, %v3041_v52  ;;  %4723 = vmatpush1.bf16.msra.mxu0 %v7369_v28 }
 0x4fb   :  { %v3043_v51 = vpop.xlane.xlu1 %3042  ;;  %3346 = vadd.xlane.f32.xlu1 %v7507_v13  ;;  %v3445_v47 = vpack.c.bf16 %v7507_v13, %v7505_v1  ;;  %4821 = vmatprep.subr.bf16.mxu0 %v7374_v36 }
 0x4fc   :  { %v7509_v31 = vpop.eup %7508  ;;  %7518 = vpow2.f32 %v3230_v10  ;;  %v3232_v4 = vmul.f32 1.442695, %v3142_v40  ;;  %v3143_v22 = vsub.f32 %v9802_v53, %v3043_v51 }
 0x4fd   :  { %7111 = vmatmul.mubr.bf16.gmra.mrb[112].mxu0 %v3445_v47  ;;  %v3045_v7 = vpop.xlane.xlu0 %3044  ;;  %3348 = vadd.xlane.f32.xlu0 %v7509_v31 }
 0x4fe   :  { %v7511_v20 = vpop.eup %7510  ;;  %7520 = vpow2.f32 %v3232_v4  ;;  %v3234_v24 = vmul.f32 1.442695, %v3143_v22  ;;  %v3144_v50 = vsub.f32 %v9807_v43, %v3045_v7 }
 0x4ff   :  { %v3047_v15 = vpop.xlane.xlu1 %3046  ;;  %3350 = vadd.xlane.f32.xlu1 %v7511_v20  ;;  %v3446_v21 = vpack.c.bf16 %v7511_v20, %v7509_v31 }
 0x500   :  { %v7513_v55 = vpop.eup %7512  ;;  %7522 = vpow2.f32 %v3234_v24  ;;  %v3236_v33 = vmul.f32 1.442695, %v3144_v50  ;;  %v3145_v26 = vsub.f32 %v9812_v25, %v3047_v15 }
 0x501   :  { %7114 = vmatprep.mubr.bf16.mxu0 %v3446_v21  ;;  %v3049_v28 = vpop.xlane.xlu0 %3048  ;;  %3352 = vadd.xlane.f32.xlu0 %v7513_v55 }
 0x502   :  { %v7515_v53 = vpop.eup %7514  ;;  %7524 = vpow2.f32 %v3236_v33  ;;  %v3238_v30 = vmul.f32 1.442695, %v3145_v26  ;;  %v3146_v42 = vsub.f32 %v9817_v60, %v3049_v28  ;;  %v7393_v28 = vld [vmem:[%s11485_s13 + $0x10] sm:$0xff]  }
 0x503   :  { %v3051_v36 = vpop.xlane.xlu1 %3050  ;;  %3354 = vadd.xlane.f32.xlu1 %v7515_v53  ;;  %v3447_v1 = vpack.c.bf16 %v7515_v53, %v7513_v55  ;;  %7158 = vmatprep.subr.bf16.mxu1 %v7393_v28 }
 0x504   :  { %v7517_v43 = vpop.eup %7516  ;;  %7526 = vpow2.f32 %v3238_v30  ;;  %v3240_v56 = vmul.f32 1.442695, %v3146_v42  ;;  %v3147_v61 = vsub.f32 %v9822_v44, %v3051_v36  ;;  %7159 = vmatpush3.bf16.msra.mxu1 %v7393_v28 }
 0x505   :  { %7115 = vmatmul.mubr.bf16.gmra.mrb[116].mxu0 %v3447_v1  ;;  %v3053_v52 = vpop.xlane.xlu0 %3052  ;;  %3356 = vadd.xlane.f32.xlu0 %v7517_v43 }
 0x506   :  { %v7519_v25 = vpop.eup %7518  ;;  %7528 = vpow2.f32 %v3240_v56  ;;  %v3242_v13 = vmul.f32 1.442695, %v3147_v61  ;;  %v3148_v10 = vsub.f32 %v9827_v46, %v3053_v52 }
 0x507   :  { %v3055_v40 = vpop.xlane.xlu1 %3054  ;;  %3358 = vadd.xlane.f32.xlu1 %v7519_v25  ;;  %v3448_v51 = vpack.c.bf16 %v7519_v25, %v7517_v43 }
 0x508   :  { %v7521_v60 = vpop.eup %7520  ;;  %7530 = vpow2.f32 %v3242_v13  ;;  %v3244_v47 = vmul.f32 1.442695, %v3148_v10  ;;  %v3149_v31 = vsub.f32 %v9832_v27, %v3055_v40 }
 0x509   :  { %7118 = vmatprep.mubr.bf16.mxu0 %v3448_v51  ;;  %v3057_v4 = vpop.xlane.xlu0 %3056  ;;  %3360 = vadd.xlane.f32.xlu0 %v7521_v60 }
 0x50a   :  { %v7523_v44 = vpop.eup %7522  ;;  %v3246_v22 = vmul.f32 1.442695, %v3149_v31  ;;  %v3150_v7 = vsub.f32 %v9837_v2, %v3057_v4  ;;  %7532 = vpow2.f32 %v3244_v47 }
 0x50b   :  { %v3059_v20 = vpop.xlane.xlu1 %3058  ;;  %3362 = vadd.xlane.f32.xlu1 %v7523_v44  ;;  %v3449_v24 = vpack.c.bf16 %v7523_v44, %v7521_v60 }
 0x50c   :  { %v7525_v46 = vpop.eup %7524  ;;  %7534 = vpow2.f32 %v3246_v22  ;;  %v3248_v50 = vmul.f32 1.442695, %v3150_v7  ;;  %v3151_v15 = vsub.f32 %v9842_v48, %v3059_v20 }
 0x50d   :  { %7119 = vmatmul.mubr.bf16.gmra.mrb[120].mxu0 %v3449_v24  ;;  %v3061_v21 = vpop.xlane.xlu0 %3060  ;;  %3364 = vadd.xlane.f32.xlu0 %v7525_v46 }
 0x50e   :  { %v7527_v27 = vpop.eup %7526  ;;  %v3250_v55 = vmul.f32 1.442695, %v3151_v15  ;;  %v3152_v33 = vsub.f32 %v9847_v37, %v3061_v21  ;;  %7536 = vpow2.f32 %v3248_v50 }
 0x50f   :  { %v3063_v26 = vpop.xlane.xlu1 %3062  ;;  %3366 = vadd.xlane.f32.xlu1 %v7527_v27  ;;  %v3450_v2 = vpack.c.bf16 %v7527_v27, %v7525_v46 }
 0x510   :  { %v7529_v53 = vpop.eup %7528  ;;  %7538 = vpow2.f32 %v3250_v55  ;;  %v3252_v30 = vmul.f32 1.442695, %v3152_v33  ;;  %v3153_v48 = vsub.f32 %v9852_v59, %v3063_v26  ;;  %v11706_v33 = vld [vmem:[#allocation31_spill] sm:$0xff] }
 0x511   :  { %7122 = vmatprep.mubr.bf16.mxu0 %v3450_v2  ;;  %v3065_v42 = vpop.xlane.xlu0 %3064  ;;  %3368 = vadd.xlane.f32.xlu0 %v7529_v53 }
 0x512   :  { %v7531_v36 = vpop.eup %7530  ;;  %v3254_v1 = vmul.f32 1.442695, %v3153_v48  ;;  %v3154_v37 = vsub.f32 %v9857_v14, %v3065_v42  ;;  %7540 = vpow2.f32 %v3252_v30 }
 0x513   :  { %v3067_v43 = vpop.xlane.xlu1 %3066  ;;  %3370 = vadd.xlane.f32.xlu1 %v7531_v36  ;;  %v3451_v56 = vpack.c.bf16 %v7531_v36, %v7529_v53  ;;  %v11707_v53 = vld [vmem:[#allocation32_spill] sm:$0xff]  ;;  %v11708_v36 = vld [vmem:[#allocation33_spill] sm:$0xff] }
 0x514   :  { %7542 = vpow2.f32 %v3254_v1  ;;  %v3256_v61 = vmul.f32 1.442695, %v3154_v37  ;;  %v3155_v52 = vsub.f32 %v9862_v63, %v3067_v43  ;;  %v10118_v25 = vpop.eup %7532 }
 0x515   :  { %7123 = vmatmul.mubr.bf16.gmra.mrb[124].mxu0 %v3451_v56  ;;  %v3069_v59 = vpop.xlane.xlu0 %3068  ;;  %3308 = vadd.xlane.f32.xlu0 %v9987_v54 }
 0x516   :  { %v10121_v13 = vpop.eup %7534  ;;  %v3258_v10 = vmul.f32 1.442695, %v3155_v52  ;;  %v3156_v14 = vsub.f32 %v9867_v41, %v3069_v59  ;;  %7544 = vpow2.f32 %v3256_v61  ;;  %v11709_v61 = vld [vmem:[#allocation13_spill] sm:$0xff] }
 0x517   :  { %v3071_v40 = vpop.xlane.xlu1 %3070  ;;  %3310 = vadd.xlane.f32.xlu1 %v9989_v34  ;;  %v3452_v51 = vpack.c.bf16 %v10121_v13, %v10118_v25 }
 0x518   :  { %7546 = vpow2.f32 %v3258_v10  ;;  %v3260_v63 = vmul.f32 1.442695, %v3156_v14  ;;  %v3157_v60 = vsub.f32 %v9872_v5, %v3071_v40  ;;  %v10128_v47 = vpop.eup %7536  ;;  %v11710_v14 = vld [vmem:[#allocation14_spill] sm:$0xff] }
 0x519   :  { %7126 = vmatprep.mubr.bf16.mxu0 %v3452_v51  ;;  %v3073_v54 = vpop.xlane.xlu0 %3072  ;;  %3312 = vadd.xlane.f32.xlu0 %v9995_v62 }
 0x51a   :  { %v10131_v31 = vpop.eup %7538  ;;  %v3262_v41 = vmul.f32 1.442695, %v3157_v60  ;;  %v3158_v4 = vsub.f32 %v9877_v57, %v3073_v54  ;;  %7548 = vpow2.f32 %v3260_v63  ;;  %v11711_v54 = vld [vmem:[#allocation15_spill] sm:$0xff] }
 0x51b   :  { %v3075_v34 = vpop.xlane.xlu1 %3074  ;;  %3314 = vadd.xlane.f32.xlu1 %v9997_v9  ;;  %v3453_v44 = vpack.c.bf16 %v10131_v31, %v10128_v47 }
 0x51c   :  { %7550 = vpow2.f32 %v3262_v41  ;;  %v3264_v5 = vmul.f32 1.442695, %v3158_v4  ;;  %v3159_v22 = vsub.f32 %v9882_v32, %v3075_v34  ;;  %v10138_v7 = vpop.eup %7540 }
 0x51d   :  { %7127 = vmatmul.mubr.bf16.gmra.mrb[128].mxu0 %v3453_v44  ;;  %v3077_v62 = vpop.xlane.xlu0 %3076  ;;  %3316 = vadd.xlane.f32.xlu0 %v10009_v8  ;;  %v11712_v44 = vld [vmem:[#allocation16_spill] sm:$0xff] }
 0x51e   :  { %v10141_v20 = vpop.eup %7542  ;;  %v3266_v57 = vmul.f32 1.442695, %v3159_v22  ;;  %v3160_v24 = vsub.f32 %v9887_v49, %v3077_v62  ;;  %7552 = vpow2.f32 %v3264_v5 }
 0x51f   :  { %v3079_v9 = vpop.xlane.xlu1 %3078  ;;  %3318 = vadd.xlane.f32.xlu1 %v10011_v19  ;;  %v3454_v46 = vpack.c.bf16 %v10141_v20, %v10138_v7 }
 0x520   :  { %7554 = vpow2.f32 %v3266_v57  ;;  %v3268_v32 = vmul.f32 1.442695, %v3160_v24  ;;  %v3161_v50 = vsub.f32 %v9892_v0, %v3079_v9  ;;  %v10148_v15 = vpop.eup %7544  ;;  %v11713_v24 = vld [vmem:[#allocation17_spill] sm:$0xff] }
 0x521   :  { %7130 = vmatprep.mubr.bf16.mxu0 %v3454_v46  ;;  %v3081_v8 = vpop.xlane.xlu0 %3080  ;;  %3320 = vadd.xlane.f32.xlu0 %v10023_v39 }
 0x522   :  { %v10151_v21 = vpop.eup %7546  ;;  %v3270_v49 = vmul.f32 1.442695, %v3161_v50  ;;  %v3162_v27 = vsub.f32 %v9897_v45, %v3081_v8  ;;  %7556 = vpow2.f32 %v3268_v32  ;;  %v11714_v50 = vld [vmem:[#allocation18_spill] sm:$0xff] }
 0x523   :  { %v3083_v19 = vpop.xlane.xlu1 %3082  ;;  %3322 = vadd.xlane.f32.xlu1 %v10025_v16  ;;  %v3455_v55 = vpack.c.bf16 %v10151_v21, %v10148_v15 }
 0x524   :  { %7558 = vpow2.f32 %v3270_v49  ;;  %v3272_v0 = vmul.f32 1.442695, %v3162_v27  ;;  %v3163_v26 = vsub.f32 %v11706_v33, %v3083_v19  ;;  %v10158_v2 = vpop.eup %7548 }
 0x525   :  { %7131 = vmatmul.mubr.bf16.gmra.mrb[132].mxu0 %v3455_v55  ;;  %v3085_v39 = vpop.xlane.xlu0 %3084  ;;  %3324 = vadd.xlane.f32.xlu0 %v10037_v17 }
 0x526   :  { %v10161_v28 = vpop.eup %7550  ;;  %v3274_v45 = vmul.f32 1.442695, %v3163_v26  ;;  %v3164_v30 = vsub.f32 %v11707_v53, %v3085_v39  ;;  %7560 = vpow2.f32 %v3272_v0  ;;  %v11715_v26 = vld [vmem:[#allocation19_spill] sm:$0xff] }
 0x527   :  { %v3087_v16 = vpop.xlane.xlu1 %3086  ;;  %3326 = vadd.xlane.f32.xlu1 %v10039_v35  ;;  %v3456_v48 = vpack.c.bf16 %v10161_v28, %v10158_v2 }
 0x528   :  { %7562 = vpow2.f32 %v3274_v45  ;;  %v3276_v42 = vmul.f32 1.442695, %v3164_v30  ;;  %v3165_v1 = vsub.f32 %v11708_v36, %v3087_v16  ;;  %v10168_v37 = vpop.eup %7552 }
 0x529   :  { %7134 = vmatprep.mubr.bf16.mxu0 %v3456_v48  ;;  %v3089_v17 = vpop.xlane.xlu0 %3088  ;;  %3328 = vadd.xlane.f32.xlu0 %v10051_v3 }
 0x52a   :  { %v10171_v43 = vpop.eup %7554  ;;  %v3278_v56 = vmul.f32 1.442695, %v3165_v1  ;;  %v3166_v52 = vsub.f32 %v11709_v61, %v3089_v17  ;;  %7564 = vpow2.f32 %v3276_v42  ;;  %v11716_v17 = vld [vmem:[#allocation20_spill] sm:$0xff] }
 0x52b   :  { %v3091_v35 = vpop.xlane.xlu1 %3090  ;;  %3330 = vadd.xlane.f32.xlu1 %v10053_v29  ;;  %v3457_v59 = vpack.c.bf16 %v10171_v43, %v10168_v37 }
 0x52c   :  { %7566 = vpow2.f32 %v3278_v56  ;;  %v3280_v10 = vmul.f32 1.442695, %v3166_v52  ;;  %v3167_v40 = vsub.f32 %v11710_v14, %v3091_v35  ;;  %v10178_v51 = vpop.eup %7556  ;;  %v11717_v52 = vld [vmem:[#allocation21_spill] sm:$0xff] }
 0x52d   :  { %7135 = vmatmul.mubr.bf16.gmra.mrb[136].mxu0 %v3457_v59  ;;  %v3093_v3 = vpop.xlane.xlu0 %3092  ;;  %3332 = vadd.xlane.f32.xlu0 %v10065_v12 }
 0x52e   :  { %v10181_v63 = vpop.eup %7558  ;;  %v3282_v60 = vmul.f32 1.442695, %v3167_v40  ;;  %v3168_v41 = vsub.f32 %v11711_v54, %v3093_v3  ;;  %7568 = vpow2.f32 %v3280_v10  ;;  %v11718_v40 = vld [vmem:[#allocation22_spill] sm:$0xff] }
 0x52f   :  { %v3095_v29 = vpop.xlane.xlu1 %3094  ;;  %3334 = vadd.xlane.f32.xlu1 %v10067_v6  ;;  %v3458_v4 = vpack.c.bf16 %v10181_v63, %v10178_v51 }
 0x530   :  { %7570 = vpow2.f32 %v3282_v60  ;;  %v3284_v34 = vmul.f32 1.442695, %v3168_v41  ;;  %v3169_v5 = vsub.f32 %v11712_v44, %v3095_v29  ;;  %v10188_v22 = vpop.eup %7560  ;;  %v11719_v41 = vld [vmem:[#allocation23_spill] sm:$0xff] }
 0x531   :  { %7138 = vmatprep.mubr.bf16.mxu0 %v3458_v4  ;;  %v3097_v12 = vpop.xlane.xlu0 %3096  ;;  %3336 = vadd.xlane.f32.xlu0 %v10079_v11 }
 0x532   :  { %v10191_v62 = vpop.eup %7562  ;;  %v3286_v57 = vmul.f32 1.442695, %v3169_v5  ;;  %v3170_v9 = vsub.f32 %v11713_v24, %v3097_v12  ;;  %7572 = vpow2.f32 %v3284_v34 }
 0x533   :  { %v3099_v6 = vpop.xlane.xlu1 %3098  ;;  %3338 = vadd.xlane.f32.xlu1 %v10081_v23  ;;  %v3459_v46 = vpack.c.bf16 %v10191_v62, %v10188_v22 }
 0x534   :  { %7574 = vpow2.f32 %v3286_v57  ;;  %v3288_v32 = vmul.f32 1.442695, %v3170_v9  ;;  %v3171_v8 = vsub.f32 %v11714_v50, %v3099_v6  ;;  %v10198_v49 = vpop.eup %7564  ;;  %v7375_v6 = vld [vmem:[%s11486_s14 + $0x28] ss:$16 sps:$4 sm:$0xff]   ;;  %v7383_v50 = vld [vmem:[%s11486_s14 + $0x6c] ss:$16 sps:$4 sm:$0xff]  }
 0x535   :  { %7139 = vmatmul.mubr.bf16.gmra.mrb[140].mxu0 %v3459_v46  ;;  %v3101_v11 = vpop.xlane.xlu0 %3100  ;;  %3372 = vadd.xlane.f32.xlu0 %v10118_v25  ;;  %v7380_v46 = vld [vmem:[%s11486_s14 + $0x4c] ss:$16 sps:$4 sm:$0xff]  }
 0x536   :  { %v10201_v27 = vpop.eup %7566  ;;  %v3290_v19 = vmul.f32 1.442695, %v3171_v8  ;;  %v3172_v55 = vsub.f32 %v9947_v18, %v3101_v11  ;;  %7576 = vpow2.f32 %v3288_v32  ;;  %v7378_v32 = vld [vmem:[%s11486_s14 + $0x48] ss:$16 sps:$4 sm:$0xff]   ;;  %v7386_v11 = vld [vmem:[%s11486_s14 + $0x8c] ss:$16 sps:$4 sm:$0xff]  }
 0x537   :  { %v3103_v23 = vpop.xlane.xlu1 %3102  ;;  %3374 = vadd.xlane.f32.xlu1 %v10121_v13  ;;  %v3460_v0 = vpack.c.bf16 %v10201_v27, %v10198_v49  ;;  %v11721_v8 = vld [vmem:[#allocation6_spill] sm:$0xff] }
 0x538   :  { %7578 = vpow2.f32 %v3290_v19  ;;  %v3292_v33 = vmul.f32 1.442695, %v3172_v55  ;;  %v3173_v39 = vsub.f32 %v11715_v26, %v3103_v23  ;;  %v10208_v45 = vpop.eup %7568  ;;  %v7389_v19 = vld [vmem:[%s11486_s14 + $0xac] ss:$16 sps:$4 sm:$0xff]   ;;  %v11722_v55 = vld [vmem:[#allocation7_spill] sm:$0xff]  ;;  %v10298_v26 = vld [vmem:[%s11485_s13] sm:$0xff]  }
 0x539   :  { %7142 = vmatprep.mubr.bf16.mxu0 %v3460_v0  ;;  %v3105_v25 = vpop.xlane.xlu0 %3104  ;;  %3376 = vadd.xlane.f32.xlu0 %v10128_v47  ;;  %v7387_v23 = vld [vmem:[%s11486_s14 + $0xa8] ss:$16 sps:$4 sm:$0xff]   ;;  %v7392_v0 = vld [vmem:[%s11486_s14 + $0xcc] ss:$16 sps:$4 sm:$0xff]  }
 0x53a   :  { %v10211_v53 = vpop.eup %7570  ;;  %v3294_v18 = vmul.f32 1.442695, %v3173_v39  ;;  %v3174_v30 = vsub.f32 %v9957_v58, %v3105_v25  ;;  %7580 = vpow2.f32 %v3292_v33  ;;  %v7390_v33 = vld [vmem:[%s11486_s14 + $0xc8] ss:$16 sps:$4 sm:$0xff]   ;;  %v7396_v39 = vld [vmem:[%s11486_s14 + $0xec] ss:$16 sps:$4 sm:$0xff]  }
 0x53b   :  { %v3107_v13 = vpop.xlane.xlu1 %3106  ;;  %3378 = vadd.xlane.f32.xlu1 %v10131_v31  ;;  %v3461_v16 = vpack.c.bf16 %v10211_v53, %v10208_v45  ;;  %v7394_v25 = vld [vmem:[%s11486_s14 + $0xe8] ss:$16 sps:$4 sm:$0xff]  }
 0x53c   :  { %7582 = vpow2.f32 %v3294_v18  ;;  %v3296_v48 = vmul.f32 1.442695, %v3174_v30  ;;  %v3175_v42 = vsub.f32 %v9961_v38, %v3107_v13  ;;  %v10218_v36 = vpop.eup %7572  ;;  %v11725_v13 = vld [vmem:[#allocation10_spill] sm:$0xff] }
 0x53d   :  { %7143 = vmatmul.mubr.bf16.gmra.mrb[144].mxu0 %v3461_v16  ;;  %3380 = vadd.xlane.f32.xlu0 %v10138_v7  ;;  %v3109_v47 = vpop.xlane.xlu0 %3108 }
 0x53e   :  { %v10221_v1 = vpop.eup %7574  ;;  %v3298_v58 = vmul.f32 1.442695, %v3175_v42  ;;  %v3176_v56 = vsub.f32 %v11716_v17, %v3109_v47  ;;  %7584 = vpow2.f32 %v3296_v48  ;;  %v11726_v47 = vld [vmem:[#allocation11_spill] sm:$0xff] }
 0x53f   :  { %3382 = vadd.xlane.f32.xlu1 %v10141_v20  ;;  %v3111_v31 = vpop.xlane.xlu1 %3110  ;;  %v3462_v61 = vpack.c.bf16 %v10221_v1, %v10218_v36 }
 0x540   :  { %7586 = vpow2.f32 %v3298_v58  ;;  %v3300_v38 = vmul.f32 1.442695, %v3176_v56  ;;  %v3177_v35 = vsub.f32 %v11717_v52, %v3111_v31  ;;  %v7577_v59 = vpop.eup %7576  ;;  %v11727_v31 = vld [vmem:[#allocation12_spill] sm:$0xff] }
 0x541   :  { %7146 = vmatprep.mubr.bf16.mxu0 %v3462_v61  ;;  %3384 = vadd.xlane.f32.xlu0 %v10148_v15  ;;  %v3113_v7 = vpop.xlane.xlu0 %3112 }
 0x542   :  { %v7579_v10 = vpop.eup %7578  ;;  %v3302_v14 = vmul.f32 1.442695, %v3177_v35  ;;  %v3178_v3 = vsub.f32 %v11718_v40, %v3113_v7  ;;  %7588 = vpow2.f32 %v3300_v38 }
 0x543   :  { %3386 = vadd.xlane.f32.xlu1 %v10151_v21  ;;  %v3115_v20 = vpop.xlane.xlu1 %3114  ;;  %v3463_v60 = vpack.c.bf16 %v7579_v10, %v7577_v59 }
 0x544   :  { %7590 = vpow2.f32 %v3302_v14  ;;  %v3304_v54 = vmul.f32 1.442695, %v3178_v3  ;;  %v3179_v29 = vsub.f32 %v11719_v41, %v3115_v20  ;;  %v7581_v4 = vpop.eup %7580 }
 0x545   :  { %7147 = vmatmul.mubr.bf16.gmra.mrb[148].mxu0 %v3463_v60  ;;  %3388 = vadd.xlane.f32.xlu0 %v10158_v2 }
 0x546   :  { %v7583_v34 = vpop.eup %7582  ;;  %v3306_v15 = vmul.f32 1.442695, %v3179_v29  ;;  %7592 = vpow2.f32 %v3304_v54 }
 0x547   :  { %3390 = vadd.xlane.f32.xlu1 %v10161_v28  ;;  %v3464_v44 = vpack.c.bf16 %v7583_v34, %v7581_v4  ;;  %v7397_v28 = vld [vmem:[%s11485_s13 + $0x18] sm:$0xff]  }
 0x548   :  { %7594 = vpow2.f32 %v3306_v15  ;;  %v7585_v5 = vpop.eup %7584  ;;  %7160 = vmatprep.subr.bf16.mxu1 %v7397_v28 }
 0x549   :  { %7150 = vmatprep.mubr.bf16.mxu0 %v3464_v44  ;;  %3392 = vadd.xlane.f32.xlu0 %v10168_v37 }
 0x54a   :  { %v7587_v21 = vpop.eup %7586  ;;  %7161 = vmatpush3.bf16.msra.mxu1 %v7397_v28 }
 0x54b   :  { %3394 = vadd.xlane.f32.xlu1 %v10171_v43  ;;  %v3465_v12 = vpack.c.bf16 %v7587_v21, %v7585_v5  ;;  %7178 = vmatprep.subr.bf16.mxu1 %v10298_v26 }
 0x54c   :  { %v7589_v57 = vpop.eup %7588 }
 0x54d   :  { %7151 = vmatmul.mubr.bf16.gmra.mrb[152].mxu0 %v3465_v12  ;;  %3396 = vadd.xlane.f32.xlu0 %v10178_v51  ;;  %v7892_v51 = vmov 0  }
 0x54e   :  { %v7591_v2 = vpop.eup %7590 }
 0x54f   :  { %3398 = vadd.xlane.f32.xlu1 %v10181_v63  ;;  %v3466_v24 = vpack.c.bf16 %v7591_v2, %v7589_v57  ;;  %v7372_v63 = vld [vmem:[%s11486_s14 + $0x8] ss:$16 sps:$4 sm:$0xff]  }
 0x550   :  { %v7593_v9 = vpop.eup %7592 }
 0x551   :  { %3400 = vadd.xlane.f32.xlu0 %v10188_v22  ;;  %7154 = vmatprep.mubr.bf16.mxu0 %v3466_v24  ;;  %v7377_v22 = vld [vmem:[%s11486_s14 + $0x2c] ss:$16 sps:$4 sm:$0xff]  }
 0x552   :  { %v7595_v37 = vpop.eup %7594 }
 0x553   :  { %3402 = vadd.xlane.f32.xlu1 %v10191_v62  ;;  %v3467_v43 = vpack.c.bf16 %v7595_v37, %v7593_v9  ;;  %v11720_v62 = vld [vmem:[#allocation5_spill] sm:$0xff] }
 0x555   :  { %3404 = vadd.xlane.f32.xlu0 %v10198_v49  ;;  %7155 = vmatmul.mubr.bf16.gmra.mrb[156].mxu0 %v3467_v43  ;;  %v7381_v49 = vld [vmem:[%s11486_s14 + $0x68] ss:$16 sps:$4 sm:$0xff]  }
 0x556   :  { %4740 = vmatprep.mubr.bf16.mxu0 %v7892_v51 }
 0x557   :  { %3406 = vadd.xlane.f32.xlu1 %v10201_v27  ;;  %v7384_v27 = vld [vmem:[%s11486_s14 + $0x88] ss:$16 sps:$4 sm:$0xff]  }
 0x559   :  { %3408 = vadd.xlane.f32.xlu0 %v10208_v45  ;;  %v11723_v45 = vld [vmem:[#allocation8_spill] sm:$0xff] }
 0x55b   :  { %3410 = vadd.xlane.f32.xlu1 %v10211_v53  ;;  %v11724_v53 = vld [vmem:[#allocation9_spill] sm:$0xff] }
 0x55d   :  { %3412 = vadd.xlane.f32.xlu0 %v10218_v36  ;;  %4741 = vmatmul.mubr.bf16.vlgmr.msra.gmra.mrb[160].mxu0 %v11720_v62 }
 0x55e   :  { %4822 = vmatpush1.bf16.msra.mxu0 %v7372_v63  ;;  %4750 = vmatprep.mubr.bf16.mxu0 %v7892_v51 }
 0x55f   :  { %3414 = vadd.xlane.f32.xlu1 %v10221_v1  ;;  %4823 = vmatprep.subr.bf16.mxu0 %v7377_v22 }
 0x561   :  { %3416 = vadd.xlane.f32.xlu0 %v7577_v59 }
 0x562   :  { %4824 = vmatpush1.bf16.msra.mxu0 %v7375_v6 }
 0x563   :  { %3418 = vadd.xlane.f32.xlu1 %v7579_v10  ;;  %4825 = vmatprep.subr.bf16.mxu0 %v7380_v46 }
 0x565   :  { %3420 = vadd.xlane.f32.xlu0 %v7581_v4  ;;  %4751 = vmatmul.mubr.bf16.gmra.mrb[164].mxu0 %v11721_v8 }
 0x566   :  { %4760 = vmatprep.mubr.bf16.mxu0 %v7892_v51  ;;  %4826 = vmatpush1.bf16.msra.mxu0 %v7378_v32 }
 0x567   :  { %3422 = vadd.xlane.f32.xlu1 %v7583_v34  ;;  %4827 = vmatprep.subr.bf16.mxu0 %v7383_v50 }
 0x569   :  { %3424 = vadd.xlane.f32.xlu0 %v7585_v5 }
 0x56a   :  { %4828 = vmatpush1.bf16.msra.mxu0 %v7381_v49 }
 0x56b   :  { %3426 = vadd.xlane.f32.xlu1 %v7587_v21  ;;  %4829 = vmatprep.subr.bf16.mxu0 %v7386_v11 }
 0x56d   :  { %3428 = vadd.xlane.f32.xlu0 %v7589_v57  ;;  %4761 = vmatmul.mubr.bf16.gmra.mrb[168].mxu0 %v11722_v55 }
 0x56e   :  { %4770 = vmatprep.mubr.bf16.mxu0 %v7892_v51  ;;  %4830 = vmatpush1.bf16.msra.mxu0 %v7384_v27 }
 0x56f   :  { %3430 = vadd.xlane.f32.xlu1 %v7591_v2  ;;  %4831 = vmatprep.subr.bf16.mxu0 %v7389_v19 }
 0x571   :  { %3432 = vadd.xlane.f32.xlu0 %v7593_v9 }
 0x572   :  { %4832 = vmatpush1.bf16.msra.mxu0 %v7387_v23 }
 0x573   :  { %3434 = vadd.xlane.f32.xlu1 %v7595_v37  ;;  %4833 = vmatprep.subr.bf16.mxu0 %v7392_v0 }
 0x575   :  { %4771 = vmatmul.mubr.bf16.gmra.mrb[172].mxu0 %v11723_v45 }
 0x576   :  { %4780 = vmatprep.mubr.bf16.mxu0 %v7892_v51  ;;  %4834 = vmatpush1.bf16.msra.mxu0 %v7390_v33 }
 0x577   :  { %4835 = vmatprep.subr.bf16.mxu0 %v7396_v39 }
 0x57a   :  { %4836 = vmatpush1.bf16.msra.mxu0 %v7394_v25 }
 0x57d   :  { %4781 = vmatmul.mubr.bf16.gmra.mrb[176].mxu0 %v11724_v53 }
 0x57e   :  { %4790 = vmatprep.mubr.bf16.mxu0 %v7892_v51 }
 0x582   :  { %v10311_v18 = vpop.xlane.xlu0 %3340 }
 0x584   :  { %v10313_v30 = vpop.xlane.xlu1 %3342 }
 0x585   :  { %4791 = vmatmul.mubr.bf16.gmra.mrb[180].mxu0 %v11725_v13 }
 0x586   :  { %v10316_v16 = vpop.xlane.xlu0 %3344  ;;  %4800 = vmatprep.mubr.bf16.mxu0 %v7892_v51 }
 0x588   :  { %v10319_v48 = vpop.xlane.xlu1 %3346 }
 0x58a   :  { %v10321_v42 = vpop.xlane.xlu0 %3348 }
 0x58c   :  { %v10323_v36 = vpop.xlane.xlu1 %3350 }
 0x58d   :  { %4801 = vmatmul.mubr.bf16.gmra.mrb[184].mxu0 %v11726_v47 }
 0x58e   :  { %v10326_v1 = vpop.xlane.xlu0 %3352  ;;  %4810 = vmatprep.mubr.bf16.mxu0 %v7892_v51 }
 0x590   :  { %v10329_v58 = vpop.xlane.xlu1 %3354 }
 0x592   :  { %v10331_v17 = vpop.xlane.xlu0 %3356 }
 0x594   :  { %v10333_v56 = vpop.xlane.xlu1 %3358 }
 0x595   :  { %4811 = vmatmul.mubr.bf16.gmra.mrb[188].mxu0 %v11727_v31 }
 0x596   :  { %v10336_v61 = vpop.xlane.xlu0 %3360  ;;  %4853 = vmatprep.mubr.bf16.mxu0 %v7892_v51 }
 0x598   :  { %v10339_v38 = vpop.xlane.xlu1 %3362 }
 0x59a   :  { %v10341_v52 = vpop.xlane.xlu0 %3364 }
 0x59c   :  { %v10343_v35 = vpop.xlane.xlu1 %3366 }
 0x59d   :  { %4854 = vmatmul.mubr.bf16.vlgmr.msra.gmra.mrb[192].mxu0 %v11720_v62 }
 0x59e   :  { %v10346_v59 = vpop.xlane.xlu0 %3368  ;;  %4863 = vmatprep.mubr.bf16.mxu0 %v7892_v51 }
 0x5a0   :  { %v10349_v7 = vpop.xlane.xlu1 %3370 }
 0x5a2   :  { %v3309_v10 = vpop.xlane.xlu0 %3308 }
 0x5a3   :  { %7596 = vrcp.f32 %v3309_v10 }
 0x5a4   :  { %v3311_v14 = vpop.xlane.xlu1 %3310 }
 0x5a5   :  { %4864 = vmatmul.mubr.bf16.gmra.mrb[196].mxu0 %v11721_v8 }
 0x5a6   :  { %v3313_v40 = vpop.xlane.xlu0 %3312  ;;  %4873 = vmatprep.mubr.bf16.mxu0 %v7892_v51 }
 0x5a7   :  { %7598 = vrcp.f32 %v3313_v40 }
 0x5a8   :  { %7600 = vrcp.f32 %v3311_v14  ;;  %v3315_v3 = vpop.xlane.xlu1 %3314 }
 0x5a9   :  { %7602 = vrcp.f32 %v3315_v3 }
 0x5aa   :  { %v3317_v20 = vpop.xlane.xlu0 %3316 }
 0x5ab   :  { %7604 = vrcp.f32 %v3317_v20 }
 0x5ac   :  { %v3319_v60 = vpop.xlane.xlu1 %3318 }
 0x5ad   :  { %4874 = vmatmul.mubr.bf16.gmra.mrb[200].mxu0 %v11722_v55  ;;  %v7597_v41 = vpop.eup %7596 }
 0x5ae   :  { %v3321_v54 = vpop.xlane.xlu0 %3320  ;;  %4883 = vmatprep.mubr.bf16.mxu0 %v7892_v51 }
 0x5af   :  { %7606 = vrcp.f32 %v3321_v54 }
 0x5b0   :  { %7608 = vrcp.f32 %v3319_v60  ;;  %v7096_v29 = vpop.f32.mrb[96].mxu0  ;;  %v3323_v4 = vpop.xlane.xlu1 %3322 }
 0x5b1   :  { %v7599_v34 = vpop.eup %7598  ;;  %7610 = vrcp.f32 %v3323_v4  ;;  %v3510_v15 = vpop.f32.mrb[97].mxu0 }
 0x5b2   :  { %v7601_v44 = vpop.eup %7600  ;;  %v7097_v5 = vpop.f32.mrb[98].mxu0  ;;  %v10355_v2 = vmul.f32 %v7599_v34, %v7096_v29  ;;  %v10357_v24 = vmul.f32 %v7597_v41, %v3510_v15 }
 0x5b3   :  { %v3325_v21 = vpop.xlane.xlu0 %3324  ;;  %v7603_v12 = vpop.eup %7602 }
 0x5b4   :  { %v3513_v57 = vpop.f32.mrb[99].mxu0  ;;  %v10359_v28 = vmul.f32 %v7603_v12, %v7097_v5  ;;  %v3327_v37 = vpop.xlane.xlu1 %3326  ;;  %7612 = vrcp.f32 %v3325_v21 }
 0x5b5   :  { %v10361_v9 = vmul.f32 %v7601_v44, %v3513_v57  ;;  %4884 = vmatmul.mubr.bf16.gmra.mrb[204].mxu0 %v11723_v45  ;;  %v7605_v62 = vpop.eup %7604 }
 0x5b6   :  { %v3894_v43 = vpack.c.bf16 %v10359_v28, %v10355_v2  ;;  %4893 = vmatprep.mubr.bf16.mxu0 %v7892_v51 }
 0x5b7   :  { %v3893_v63 = vpack.c.bf16 %v10361_v9, %v10357_v24  ;;  %v3329_v22 = vpop.xlane.xlu0 %3328  ;;  %v7401_v9 = vld [vmem:[%s11485_s13 + $0x28] sm:$0xff]  }
 0x5b8   :  { %7614 = vrcp.f32 %v3329_v22  ;;  %v7100_v6 = vpop.f32.mrb[100].mxu0  ;;  %v3331_v46 = vpop.xlane.xlu1 %3330 }
 0x5b9   :  { %7616 = vrcp.f32 %v3327_v37  ;;  %v7607_v32 = vpop.eup %7606  ;;  %v3526_v50 = vpop.f32.mrb[101].mxu0 }
 0x5ba   :  { %7618 = vrcp.f32 %v3331_v46  ;;  %v7609_v8 = vpop.eup %7608  ;;  %v7101_v49 = vpop.f32.mrb[102].mxu0  ;;  %v10369_v55 = vmul.f32 %v7607_v32, %v7100_v6  ;;  %v10371_v23 = vmul.f32 %v7605_v62, %v3526_v50 }
 0x5bb   :  { %v3333_v11 = vpop.xlane.xlu0 %3332  ;;  %v7611_v27 = vpop.eup %7610 }
 0x5bc   :  { %v3529_v19 = vpop.f32.mrb[103].mxu0  ;;  %v10373_v0 = vmul.f32 %v7611_v27, %v7101_v49  ;;  %v3335_v39 = vpop.xlane.xlu1 %3334  ;;  %7620 = vrcp.f32 %v3333_v11 }
 0x5bd   :  { %v10375_v33 = vmul.f32 %v7609_v8, %v3529_v19  ;;  %4894 = vmatmul.mubr.bf16.gmra.mrb[208].mxu0 %v11724_v53 }
 0x5be   :  { %v3896_v45 = vpack.c.bf16 %v10373_v0, %v10369_v55  ;;  %4903 = vmatprep.mubr.bf16.mxu0 %v7892_v51  ;;  %v7613_v14 = vpop.eup %7612 }
 0x5bf   :  { %v3895_v25 = vpack.c.bf16 %v10375_v33, %v10371_v23  ;;  %v3337_v10 = vpop.xlane.xlu0 %3336 }
 0x5c0   :  { %7622 = vrcp.f32 %v3337_v10  ;;  %v7104_v40 = vpop.f32.mrb[104].mxu0  ;;  %v3339_v3 = vpop.xlane.xlu1 %3338 }
 0x5c1   :  { %7624 = vrcp.f32 %v3335_v39  ;;  %v3542_v60 = vpop.f32.mrb[105].mxu0 }
 0x5c2   :  { %v7615_v20 = vpop.eup %7614  ;;  %7626 = vrcp.f32 %v3339_v3  ;;  %v7105_v53 = vpop.f32.mrb[106].mxu0  ;;  %v10387_v15 = vmul.f32 %v7613_v14, %v3542_v60 }
 0x5c3   :  { %v7617_v54 = vpop.eup %7616  ;;  %v10383_v41 = vpop.xlane.xlu0 %3372  ;;  %v10385_v34 = vmul.f32 %v7615_v20, %v7104_v40  ;;  %7628 = vrcp.f32 %v10311_v18 }
 0x5c4   :  { %v7619_v29 = vpop.eup %7618  ;;  %v3545_v4 = vpop.f32.mrb[107].mxu0  ;;  %7630 = vrcp.f32 %v10316_v16 }
 0x5c5   :  { %v10389_v44 = vmul.f32 %v7619_v29, %v7105_v53  ;;  %v10391_v5 = vmul.f32 %v7617_v54, %v3545_v4  ;;  %v10393_v21 = vpop.xlane.xlu1 %3374  ;;  %4904 = vmatmul.mubr.bf16.gmra.mrb[212].mxu0 %v11725_v13  ;;  %7632 = vrcp.f32 %v10319_v48 }
 0x5c6   :  { %4913 = vmatprep.mubr.bf16.mxu0 %v7892_v51  ;;  %v7621_v37 = vpop.eup %7620  ;;  %7634 = vrcp.f32 %v10313_v30 }
 0x5c7   :  { %v3898_v12 = vpack.c.bf16 %v10389_v44, %v10385_v34  ;;  %v3897_v57 = vpack.c.bf16 %v10391_v5, %v10387_v15  ;;  %v10404_v22 = vpop.xlane.xlu0 %3376  ;;  %7636 = vrcp.f32 %v10321_v42 }
 0x5c8   :  { %v7108_v62 = vpop.f32.mrb[108].mxu0  ;;  %7638 = vrcp.f32 %v10326_v1 }
 0x5c9   :  { %v10407_v18 = vpop.xlane.xlu1 %3378  ;;  %v3558_v13 = vpop.f32.mrb[109].mxu0  ;;  %7640 = vrcp.f32 %v10329_v58 }
 0x5ca   :  { %v7623_v6 = vpop.eup %7622  ;;  %v7109_v32 = vpop.f32.mrb[110].mxu0  ;;  %v10411_v11 = vmul.f32 %v7621_v37, %v3558_v13  ;;  %7642 = vrcp.f32 %v10323_v36  ;;  %v7399_v36 = vld [vmem:[%s11485_s13 + $0x8] sm:$0xff]  }
 0x5cb   :  { %v7625_v46 = vpop.eup %7624  ;;  %v3561_v8 = vpop.f32.mrb[111].mxu0  ;;  %v10409_v49 = vmul.f32 %v7623_v6, %v7108_v62  ;;  %7644 = vrcp.f32 %v10331_v17 }
 0x5cc   :  { %v7627_v50 = vpop.eup %7626  ;;  %v10415_v48 = vmul.f32 %v7625_v46, %v3561_v8  ;;  %v10421_v27 = vpop.xlane.xlu0 %3380  ;;  %7646 = vrcp.f32 %v10336_v61 }
 0x5cd   :  { %v10413_v16 = vmul.f32 %v7627_v50, %v7109_v32  ;;  %4914 = vmatmul.mubr.bf16.gmra.mrb[216].mxu0 %v11726_v47  ;;  %v10427_v39 = vpop.xlane.xlu1 %3382  ;;  %v7629_v10 = vpop.eup %7628  ;;  %7648 = vrcp.f32 %v10339_v38 }
 0x5ce   :  { %v3899_v19 = vpack.c.bf16 %v10415_v48, %v10411_v11  ;;  %4923 = vmatprep.mubr.bf16.mxu0 %v7892_v51  ;;  %v7631_v14 = vpop.eup %7630  ;;  %7650 = vrcp.f32 %v10333_v56  ;;  %v10453_v56 = vld [vmem:[%s11485_s13 + $0x20] sm:$0xff]   ;;  %v7427_v48 = vld [vmem:[%s11487_s15 + $0x98] sm:$0xff]  }
 0x5cf   :  { %v3900_v30 = vpack.c.bf16 %v10413_v16, %v10409_v49  ;;  %v7633_v40 = vpop.eup %7632  ;;  %7652 = vrcp.f32 %v10341_v52  ;;  %v7428_v49 = vld [vmem:[%s11487_s15 + $0xe0] sm:$0xff]  }
 0x5d0   :  { %v7112_v47 = vpop.f32.mrb[112].mxu0  ;;  %v7635_v20 = vpop.eup %7634  ;;  %7654 = vrcp.f32 %v10346_v59 }
 0x5d1   :  { %v3574_v42 = vpop.f32.mrb[113].mxu0  ;;  %v3847_v60 = vmul.f32 %v7631_v14, %v7112_v47  ;;  %v10431_v29 = vpop.xlane.xlu0 %3384  ;;  %7656 = vrcp.f32 %v10349_v7 }
 0x5d2   :  { %v7113_v3 = vpop.f32.mrb[114].mxu0  ;;  %v3845_v51 = vmul.f32 %v7629_v10, %v3574_v42  ;;  %v10433_v4 = vpop.xlane.xlu1 %3386  ;;  %7658 = vrcp.f32 %v10343_v35 }
 0x5d3   :  { %v3848_v54 = vmul.f32 %v7633_v40, %v7113_v3  ;;  %v3577_v53 = vpop.f32.mrb[115].mxu0  ;;  %v7637_v62 = vpop.eup %7636  ;;  %7660 = vrcp.f32 %v10383_v41 }
 0x5d4   :  { %v3846_v1 = vmul.f32 %v7635_v20, %v3577_v53  ;;  %v7639_v13 = vpop.eup %7638  ;;  %7662 = vrcp.f32 %v10404_v22 }
 0x5d5   :  { %v3902_v37 = vpack.c.bf16 %v3848_v54, %v3847_v60  ;;  %4924 = vmatmul.mubr.bf16.gmra.mrb[220].mxu0 %v11727_v31  ;;  %v7641_v17 = vpop.eup %7640  ;;  %v10445_v31 = vpop.xlane.xlu0 %3388  ;;  %7664 = vrcp.f32 %v10407_v18 }
 0x5d6   :  { %v3901_v58 = vpack.c.bf16 %v3846_v1, %v3845_v51  ;;  %v7643_v32 = vpop.eup %7642  ;;  %v10448_v50 = vpop.xlane.xlu1 %3390  ;;  %7666 = vrcp.f32 %v10393_v21  ;;  %v7417_v21 = vld [vmem:[%s11487_s15 + $0xc0] sm:$0xff]  }
 0x5d7   :  { %7668 = vrcp.f32 %v10421_v27  ;;  %6654 = vmatprep.subr.bf16.mxu0 %v7417_v21  ;;  %v7419_v27 = vld [vmem:[%s11487_s15 + $0x80] sm:$0xff]  }
 0x5d8   :  { %v7116_v6 = vpop.f32.mrb[116].mxu0  ;;  %7162 = vmatprep.mubr.msk.bf16.mxu1 %vm1493_vm0, %v3901_v58  ;;  %7670 = vrcp.f32 %v10431_v29  ;;  %6655 = vmatpush3.bf16.msra.mxu0 %v7419_v27 }
 0x5d9   :  { %v3590_v46 = vpop.f32.mrb[117].mxu0  ;;  %7163 = vmatmul.mubr.msk.bf16.vlgmr.msra.gmra.mrb[144].mxu1 %vm1493_vm0, %v3902_v37  ;;  %v3851_v8 = vmul.f32 %v7639_v13, %v7116_v6  ;;  %v10459_v3 = vpop.xlane.xlu0 %3392  ;;  %7672 = vrcp.f32 %v10433_v4 }
 0x5da   :  { %v7117_v61 = vpop.f32.mrb[118].mxu0  ;;  %7179 = vmatpush3.bf16.msra.mxu1 %v10298_v26  ;;  %v3849_v47 = vmul.f32 %v7637_v62, %v3590_v46  ;;  %v7645_v26 = vpop.eup %7644  ;;  %7674 = vrcp.f32 %v10427_v39 }
 0x5db   :  { %v3852_v38 = vmul.f32 %v7641_v17, %v7117_v61  ;;  %v3593_v10 = vpop.f32.mrb[119].mxu0  ;;  %7180 = vmatprep.subr.bf16.mxu1 %v7399_v36  ;;  %v7647_v60 = vpop.eup %7646  ;;  %7676 = vrcp.f32 %v10445_v31 }
 0x5dc   :  { %v3850_v14 = vmul.f32 %v7643_v32, %v3593_v10  ;;  %v10463_v54 = vpop.xlane.xlu1 %3394  ;;  %v7649_v53 = vpop.eup %7648  ;;  %7678 = vrcp.f32 %v10459_v3  ;;  %v7423_v3 = vld [vmem:[%s11487_s15 + $0x88] sm:$0xff]  }
 0x5dd   :  { %v3904_v42 = vpack.c.bf16 %v3852_v38, %v3851_v8  ;;  %v7651_v51 = vpop.eup %7650  ;;  %v10467_v6 = vpop.xlane.xlu0 %3396  ;;  %7680 = vrcp.f32 %v10463_v54 }
 0x5de   :  { %v3903_v40 = vpack.c.bf16 %v3850_v14, %v3849_v47  ;;  %7181 = vmatpush3.bf16.msra.mxu1 %v7399_v36  ;;  %v7653_v46 = vpop.eup %7652  ;;  %7682 = vrcp.f32 %v10448_v50 }
 0x5df   :  { %7198 = vmatprep.subr.bf16.mxu1 %v10453_v56  ;;  %v7655_v61 = vpop.eup %7654  ;;  %7684 = vrcp.f32 %v10467_v6  ;;  %v7424_v6 = vld [vmem:[%s11487_s15 + $0xd0] sm:$0xff]  }
 0x5e0   :  { %v7120_v20 = vpop.f32.mrb[120].mxu0  ;;  %7166 = vmatprep.mubr.msk.bf16.mxu1 %vm1493_vm0, %v3903_v40  ;;  %v10470_v35 = vpop.xlane.xlu1 %3398 }
 0x5e1   :  { %v3606_v52 = vpop.f32.mrb[121].mxu0  ;;  %7167 = vmatmul.mubr.msk.bf16.gmra.mrb[148].mxu1 %vm1493_vm0, %v3904_v42  ;;  %v3855_v1 = vmul.f32 %v7647_v60, %v7120_v20  ;;  %v7657_v41 = vpop.eup %7656 }
 0x5e2   :  { %v7121_v59 = vpop.f32.mrb[122].mxu0  ;;  %v3853_v7 = vmul.f32 %v7645_v26, %v3606_v52  ;;  %v7659_v38 = vpop.eup %7658 }
 0x5e3   :  { %v3856_v37 = vmul.f32 %v7649_v53, %v7121_v59  ;;  %v3609_v58 = vpop.f32.mrb[123].mxu0  ;;  %v10476_v14 = vpop.xlane.xlu0 %3400 }
 0x5e4   :  { %v3854_v36 = vmul.f32 %v7651_v51, %v3609_v58  ;;  %v10478_v18 = vpop.xlane.xlu1 %3402  ;;  %v7661_v60 = vpop.eup %7660  ;;  %7686 = vrcp.f32 %v10476_v14 }
 0x5e5   :  { %v3906_v62 = vpack.c.bf16 %v3856_v37, %v3855_v1  ;;  %v7663_v53 = vpop.eup %7662  ;;  %7688 = vrcp.f32 %v10478_v18 }
 0x5e6   :  { %v3905_v13 = vpack.c.bf16 %v3854_v36, %v3853_v7  ;;  %v7665_v29 = vpop.eup %7664  ;;  %7690 = vrcp.f32 %v10470_v35  ;;  %v7425_v35 = vld [vmem:[%s11487_s15 + $0x90] sm:$0xff]  }
 0x5e7   :  { %v10492_v51 = vpop.xlane.xlu0 %3404  ;;  %v7667_v4 = vpop.eup %7666 }
 0x5e8   :  { %v7124_v17 = vpop.f32.mrb[124].mxu0  ;;  %7170 = vmatprep.mubr.msk.bf16.mxu1 %vm1493_vm0, %v3905_v13  ;;  %v10498_v37 = vpop.xlane.xlu1 %3406  ;;  %7692 = vrcp.f32 %v10492_v51  ;;  %v7426_v51 = vld [vmem:[%s11487_s15 + $0xd8] sm:$0xff]  }
 0x5e9   :  { %v3622_v32 = vpop.f32.mrb[125].mxu0  ;;  %7171 = vmatmul.mubr.msk.bf16.gmra.mrb[152].mxu1 %vm1493_vm0, %v3906_v62  ;;  %v3859_v10 = vmul.f32 %v7655_v61, %v7124_v17 }
 0x5ea   :  { %v7125_v8 = vpop.f32.mrb[126].mxu0  ;;  %v3857_v42 = vmul.f32 %v7653_v46, %v3622_v32  ;;  %v7669_v46 = vpop.eup %7668 }
 0x5eb   :  { %v3860_v47 = vmul.f32 %v7657_v41, %v7125_v8  ;;  %v3625_v22 = vpop.f32.mrb[127].mxu0  ;;  %v3409_v17 = vpop.xlane.xlu0 %3408 }
 0x5ec   :  { %v3858_v40 = vmul.f32 %v7659_v38, %v3625_v22  ;;  %v7671_v32 = vpop.eup %7670  ;;  %v3411_v31 = vpop.xlane.xlu1 %3410  ;;  %7694 = vrcp.f32 %v3409_v17 }
 0x5ed   :  { %v3908_v26 = vpack.c.bf16 %v3860_v47, %v3859_v10  ;;  %v7673_v8 = vpop.eup %7672  ;;  %7696 = vrcp.f32 %v3411_v31 }
 0x5ee   :  { %v3907_v20 = vpack.c.bf16 %v3858_v40, %v3857_v42  ;;  %v7675_v50 = vpop.eup %7674  ;;  %7698 = vrcp.f32 %v10498_v37 }
 0x5ef   :  { %v7677_v22 = vpop.eup %7676 }
 0x5f0   :  { %v7128_v52 = vpop.f32.mrb[128].mxu0  ;;  %7174 = vmatprep.mubr.msk.bf16.mxu1 %vm1493_vm0, %v3907_v20  ;;  %v3415_v47 = vpop.xlane.xlu1 %3414 }
 0x5f1   :  { %v3638_v59 = vpop.f32.mrb[129].mxu0  ;;  %7175 = vmatmul.mubr.msk.bf16.gmra.mrb[156].mxu1 %vm1493_vm0, %v3908_v26  ;;  %v10500_v39 = vmul.f32 %v7663_v53, %v7128_v52  ;;  %v7679_v40 = vpop.eup %7678 }
 0x5f2   :  { %v7129_v1 = vpop.f32.mrb[130].mxu0  ;;  %7182 = vmatprep.mubr.msk.bf16.mxu1 %vm1493_vm0, %v3893_v63  ;;  %v10504_v36 = vmul.f32 %v7661_v60, %v3638_v59  ;;  %v7422_v63 = vld [vmem:[%s11487_s15 + $0xc8] sm:$0xff]   ;;  %v7681_v14 = vpop.eup %7680 }
 0x5f3   :  { %v10502_v58 = vmul.f32 %v7665_v29, %v7129_v1  ;;  %v3641_v7 = vpop.f32.mrb[131].mxu0  ;;  %6656 = vmatprep.subr.bf16.mxu0 %v7422_v63  ;;  %v7683_v18 = vpop.eup %7682 }
 0x5f4   :  { %v10506_v62 = vmul.f32 %v7667_v4, %v3641_v7  ;;  %6657 = vmatpush3.bf16.msra.mxu0 %v7423_v3  ;;  %v3419_v15 = vpop.xlane.xlu1 %3418  ;;  %v7685_v53 = vpop.eup %7684 }
 0x5f5   :  { %v3910_v13 = vpack.c.bf16 %v10502_v58, %v10500_v39  ;;  %6658 = vmatprep.subr.bf16.mxu0 %v7424_v6  ;;  %v7687_v27 = vpop.eup %7686  ;;  %v7404_v39 = vld [vmem:[%s11487_s15 + $0x40] sm:$0xff]   ;;  %v7430_v58 = vld [vmem:[%s11487_s15 + $0xe8] sm:$0xff]  }
 0x5f6   :  { %v3909_v24 = vpack.c.bf16 %v10506_v62, %v10504_v36  ;;  %v7689_v1 = vpop.eup %7688  ;;  %v7429_v62 = vld [vmem:[%s11487_s15 + $0xa0] sm:$0xff]  }
 0x5f8   :  { %v7132_v61 = vpop.f32.mrb[132].mxu0  ;;  %6659 = vmatpush3.bf16.msra.mxu0 %v7425_v35  ;;  %v3423_v37 = vpop.xlane.xlu1 %3422 }
 0x5f9   :  { %v3654_v41 = vpop.f32.mrb[133].mxu0  ;;  %7183 = vmatmul.mubr.msk.bf16.vlgmr.msra.gmra.mrb[144].mxu1 %vm1493_vm0, %v3894_v43  ;;  %v10534_v54 = vmul.f32 %v7671_v32, %v7132_v61  ;;  %v10541_v43 = vld [vmem:[%s11485_s13 + $0x30] sm:$0xff]   ;;  %6660 = vmatprep.subr.bf16.mxu0 %v7426_v51 }
 0x5fa   :  { %v7133_v38 = vpop.f32.mrb[134].mxu0  ;;  %7186 = vmatprep.mubr.msk.bf16.mxu1 %vm1493_vm0, %v3895_v25  ;;  %7199 = vmatpush3.bf16.msra.mxu1 %v10453_v56  ;;  %v10543_v10 = vmul.f32 %v7669_v46, %v3654_v41  ;;  %v3413_v25 = vpop.xlane.xlu0 %3412 }
 0x5fb   :  { %v10536_v2 = vmul.f32 %v7673_v8, %v7133_v38  ;;  %v3657_v28 = vpop.f32.mrb[135].mxu0  ;;  %7200 = vmatprep.subr.bf16.mxu1 %v7401_v9  ;;  %7700 = vrcp.f32 %v3413_v25 }
 0x5fc   :  { %v10545_v23 = vmul.f32 %v7675_v50, %v3657_v28  ;;  %6661 = vmatpush3.bf16.msra.mxu0 %v7427_v48  ;;  %v3427_v41 = vpop.xlane.xlu1 %3426 }
 0x5fd   :  { %v3912_v33 = vpack.c.bf16 %v10536_v2, %v10534_v54  ;;  %6662 = vmatprep.subr.bf16.mxu0 %v7428_v49 }
 0x5fe   :  { %v3911_v56 = vpack.c.bf16 %v10545_v23, %v10543_v10  ;;  %7201 = vmatpush3.bf16.msra.mxu1 %v7401_v9  ;;  %v7691_v9 = vpop.eup %7690 }
 0x5ff   :  { %7218 = vmatprep.subr.bf16.mxu1 %v10541_v43  ;;  %v7693_v17 = vpop.eup %7692 }
 0x600   :  { %v7136_v42 = vpop.f32.mrb[136].mxu0  ;;  %v7695_v31 = vpop.eup %7694  ;;  %6663 = vmatpush3.bf16.msra.mxu0 %v7429_v62 }
 0x601   :  { %v3670_v26 = vpop.f32.mrb[137].mxu0  ;;  %7187 = vmatmul.mubr.msk.bf16.gmra.mrb[148].mxu1 %vm1493_vm0, %v3896_v45  ;;  %v10570_v21 = vmul.f32 %v7679_v40, %v7136_v42  ;;  %v3417_v45 = vpop.xlane.xlu0 %3416  ;;  %v7403_v40 = vld [vmem:[%s11485_s13 + $0x38] sm:$0xff]   ;;  %6664 = vmatprep.subr.bf16.mxu0 %v7430_v58 }
 0x602   :  { %v7137_v20 = vpop.f32.mrb[138].mxu0  ;;  %7190 = vmatprep.mubr.msk.bf16.mxu1 %vm1493_vm0, %v3897_v57  ;;  %v10574_v60 = vmul.f32 %v7677_v22, %v3670_v26  ;;  %7702 = vrcp.f32 %v3417_v45  ;;  %v7697_v8 = vpop.eup %7696 }
 0x603   :  { %v10572_v55 = vmul.f32 %v7681_v14, %v7137_v20  ;;  %v3673_v0 = vpop.f32.mrb[139].mxu0  ;;  %7704 = vrcp.f32 %v3419_v15  ;;  %v7699_v50 = vpop.eup %7698 }
 0x604   :  { %v10576_v52 = vmul.f32 %v7683_v18, %v3673_v0  ;;  %7706 = vrcp.f32 %v3415_v47 }
 0x605   :  { %v3914_v5 = vpack.c.bf16 %v10572_v55, %v10570_v21  ;;  %v3421_v4 = vpop.xlane.xlu0 %3420  ;;  %v7701_v26 = vpop.eup %7700 }
 0x606   :  { %v3913_v57 = vpack.c.bf16 %v10576_v52, %v10574_v60  ;;  %7708 = vrcp.f32 %v3421_v4  ;;  %v7434_v60 = vld [vmem:[%s11487_s15 + $0xf8] sm:$0xff]  }
 0x608   :  { %v7140_v59 = vpop.f32.mrb[140].mxu0 }
 0x609   :  { %v3686_v29 = vpop.f32.mrb[141].mxu0  ;;  %7191 = vmatmul.mubr.msk.bf16.gmra.mrb[152].mxu1 %vm1493_vm0, %v3898_v12  ;;  %v10595_v63 = vmul.f32 %v7687_v27, %v7140_v59  ;;  %v3425_v61 = vpop.xlane.xlu0 %3424 }
 0x60a   :  { %v7141_v7 = vpop.f32.mrb[142].mxu0  ;;  %7194 = vmatprep.mubr.msk.bf16.mxu1 %vm1493_vm0, %v3899_v19  ;;  %v10599_v44 = vmul.f32 %v7685_v53, %v3686_v29  ;;  %7710 = vrcp.f32 %v3425_v61  ;;  %v7432_v29 = vld [vmem:[%s11487_s15 + $0xf0] sm:$0xff]  }
 0x60b   :  { %v10597_v46 = vmul.f32 %v7689_v1, %v7141_v7  ;;  %v3689_v34 = vpop.f32.mrb[143].mxu0  ;;  %7712 = vrcp.f32 %v3427_v41  ;;  %v7433_v7 = vld [vmem:[%s11487_s15 + $0xb0] sm:$0xff]   ;;  %v7435_v41 = vld [vmem:[%s11487_s15 + $0xb8] sm:$0xff]  }
 0x60c   :  { %v10601_v12 = vmul.f32 %v7691_v9, %v3689_v34  ;;  %v7703_v14 = vpop.eup %7702  ;;  %7714 = vrcp.f32 %v3423_v37 }
 0x60d   :  { %v3916_v11 = vpack.c.bf16 %v10597_v46, %v10595_v63  ;;  %v7705_v35 = vpop.eup %7704 }
 0x60e   :  { %v3915_v19 = vpack.c.bf16 %v10601_v12, %v10599_v44  ;;  %v7707_v0 = vpop.eup %7706 }
 0x610   :  { %v7144_v32 = vpop.f32.mrb[144].mxu0  ;;  %v7709_v1 = vpop.eup %7708 }
 0x611   :  { %v3702_v3 = vpop.f32.mrb[145].mxu0  ;;  %7195 = vmatmul.mubr.msk.bf16.gmra.mrb[156].mxu1 %vm1493_vm0, %v3900_v30  ;;  %v10618_v28 = vmul.f32 %v7695_v31, %v7144_v32  ;;  %v3429_v30 = vpop.xlane.xlu0 %3428 }
 0x612   :  { %v7145_v38 = vpop.f32.mrb[146].mxu0  ;;  %7202 = vmatprep.mubr.msk.bf16.mxu1 %vm1493_vm0, %v3909_v24  ;;  %v10622_v22 = vmul.f32 %v7693_v17, %v3702_v3  ;;  %v3431_v24 = vpop.xlane.xlu1 %3430  ;;  %7716 = vrcp.f32 %v3429_v30 }
 0x613   :  { %v10620_v25 = vmul.f32 %v7697_v8, %v7145_v38  ;;  %v3705_v47 = vpop.f32.mrb[147].mxu0 }
 0x614   :  { %v10624_v42 = vmul.f32 %v7699_v50, %v3705_v47  ;;  %v7711_v51 = vpop.eup %7710 }
 0x615   :  { %v3918_v16 = vpack.c.bf16 %v10620_v25, %v10618_v28  ;;  %v7713_v37 = vpop.eup %7712  ;;  %v7407_v28 = vld [vmem:[%s11487_s15 + $0x8] sm:$0xff]  }
 0x616   :  { %v3917_v36 = vpack.c.bf16 %v10624_v42, %v10622_v22  ;;  %v7715_v48 = vpop.eup %7714 }
 0x618   :  { %v7148_v6 = vpop.f32.mrb[148].mxu0 }
 0x619   :  { %v3718_v20 = vpop.f32.mrb[149].mxu0  ;;  %7203 = vmatmul.mubr.msk.bf16.vlgmr.msra.gmra.mrb[144].mxu1 %vm1493_vm0, %v3910_v13  ;;  %v10648_v45 = vmul.f32 %v7703_v14, %v7148_v6  ;;  %v3433_v13 = vpop.xlane.xlu0 %3432 }
 0x61a   :  { %v7149_v18 = vpop.f32.mrb[150].mxu0  ;;  %7206 = vmatprep.mubr.msk.bf16.mxu1 %vm1493_vm0, %v3911_v56  ;;  %7219 = vmatpush3.bf16.msra.mxu1 %v10541_v43  ;;  %v10658_v10 = vmul.f32 %v7701_v26, %v3718_v20  ;;  %v7431_v43 = vld [vmem:[%s11487_s15 + $0xa8] sm:$0xff]   ;;  %v3435_v56 = vpop.xlane.xlu1 %3434  ;;  %7718 = vrcp.f32 %v3433_v13 }
 0x61b   :  { %v10650_v15 = vmul.f32 %v7705_v35, %v7149_v18  ;;  %v3721_v53 = vpop.f32.mrb[151].mxu0  ;;  %7220 = vmatprep.subr.bf16.mxu1 %v7403_v40  ;;  %6665 = vmatpush3.bf16.msra.mxu0 %v7431_v43  ;;  %7720 = vrcp.f32 %v3435_v56 }
 0x61c   :  { %v10660_v23 = vmul.f32 %v7707_v0, %v3721_v53  ;;  %7722 = vrcp.f32 %v3431_v24  ;;  %6666 = vmatprep.subr.bf16.mxu0 %v7432_v29  ;;  %v7717_v52 = vpop.eup %7716  ;;  %v7406_v53 = vld [vmem:[%s11487_s15 + $0x48] sm:$0xff]  }
 0x61d   :  { %v3920_v59 = vpack.c.bf16 %v10650_v15, %v10648_v45  ;;  %v7411_v45 = vld [vmem:[%s11487_s15 + $0x18] sm:$0xff]  }
 0x61e   :  { %v3919_v27 = vpack.c.bf16 %v10660_v23, %v10658_v10  ;;  %7221 = vmatpush3.bf16.msra.mxu1 %v7403_v40  ;;  %v7408_v10 = vld [vmem:[%s11487_s15 + $0x50] sm:$0xff]  }
 0x61f   :  { %6590 = vmatprep.subr.bf16.mxu1 %v7404_v39  ;;  %6667 = vmatpush3.bf16.msra.mxu0 %v7433_v7 }
 0x620   :  { %v7152_v4 = vpop.f32.mrb[152].mxu0  ;;  %6668 = vmatprep.subr.bf16.mxu0 %v7434_v60 }
 0x621   :  { %v3734_v9 = vpop.f32.mrb[153].mxu0  ;;  %7207 = vmatmul.mubr.msk.bf16.gmra.mrb[148].mxu1 %vm1493_vm0, %v3912_v33  ;;  %v10683_v17 = vmul.f32 %v7711_v51, %v7152_v4 }
 0x622   :  { %v7153_v34 = vpop.f32.mrb[154].mxu0  ;;  %7210 = vmatprep.mubr.msk.bf16.mxu1 %vm1493_vm0, %v3913_v57  ;;  %v10687_v31 = vmul.f32 %v7709_v1, %v3734_v9 }
 0x623   :  { %v10685_v61 = vmul.f32 %v7713_v37, %v7153_v34  ;;  %v3737_v32 = vpop.f32.mrb[155].mxu0  ;;  %6669 = vmatpush3.bf16.msra.mxu0 %v7435_v41  ;;  %v7409_v41 = vld [vmem:[%s11487_s15 + $0x10] sm:$0xff]  }
 0x624   :  { %v10689_v54 = vmul.f32 %v7715_v48, %v3737_v32  ;;  %v7719_v3 = vpop.eup %7718 }
 0x625   :  { %v3922_v2 = vpack.c.bf16 %v10685_v61, %v10683_v17  ;;  %v7721_v38 = vpop.eup %7720  ;;  %v7415_v17 = vld [vmem:[%s11487_s15 + $0x28] sm:$0xff]  }
 0x626   :  { %v3921_v33 = vpack.c.bf16 %v10689_v54, %v10687_v31  ;;  %v7723_v47 = vpop.eup %7722  ;;  %v7412_v31 = vld [vmem:[%s11487_s15 + $0x60] sm:$0xff]  }
 0x628   :  { %v7156_v57 = vpop.f32.mrb[156].mxu0 }
 0x629   :  { %v3750_v8 = vpop.f32.mrb[157].mxu0  ;;  %7211 = vmatmul.mubr.msk.bf16.gmra.mrb[152].mxu1 %vm1493_vm0, %v3914_v5  ;;  %v10709_v49 = vmul.f32 %v7719_v3, %v7156_v57 }
 0x62a   :  { %v7157_v50 = vpop.f32.mrb[158].mxu0  ;;  %7214 = vmatprep.mubr.msk.bf16.mxu1 %vm1493_vm0, %v3915_v19  ;;  %v10713_v24 = vmul.f32 %v7717_v52, %v3750_v8 }
 0x62b   :  { %v10711_v30 = vmul.f32 %v7721_v38, %v7157_v50  ;;  %v3753_v62 = vpop.f32.mrb[159].mxu0  ;;  %v7410_v38 = vld [vmem:[%s11487_s15 + $0x58] sm:$0xff]  }
 0x62c   :  { %v10715_v21 = vmul.f32 %v7723_v47, %v3753_v62 }
 0x62d   :  { %v3924_v55 = vpack.c.bf16 %v10711_v30, %v10709_v49 }
 0x62e   :  { %v3923_v5 = vpack.c.bf16 %v10715_v21, %v10713_v24  ;;  %v7416_v24 = vld [vmem:[%s11487_s15 + $0x70] sm:$0xff]  }
 0x630   :  { %v10721_v44 = vpop.f32.mrb[160].mxu0 }
 0x631   :  { %v4934_v12 = vmul.f32 %v10721_v44, %v10721_v44  ;;  %7215 = vmatmul.mubr.msk.bf16.gmra.mrb[156].mxu1 %vm1493_vm0, %v3916_v11  ;;  %v10729_v19 = vpop.f32.mrb[161].mxu0 }
 0x632   :  { %v4935_v40 = vmul.f32 %v10729_v19, %v10729_v19  ;;  %7222 = vmatprep.mubr.msk.bf16.mxu1 %vm1493_vm0, %v3917_v36  ;;  %v10737_v26 = vpop.f32.mrb[162].mxu0  ;;  %v7405_v36 = vld [vmem:[%s11487_s15] sm:$0xff]  }
 0x633   :  { %v4998_v6 = vmul.f32 %v4934_v12, %v10721_v44  ;;  %v4938_v14 = vmul.f32 %v10737_v26, %v10737_v26  ;;  %v10742_v63 = vpop.f32.mrb[163].mxu0 }
 0x634   :  { %v4999_v46 = vmul.f32 %v4935_v40, %v10729_v19  ;;  %v4939_v11 = vmul.f32 %v10742_v63, %v10742_v63 }
 0x635   :  { %v5062_v20 = vmul.f32 0.044715, %v4998_v6  ;;  %v5002_v35 = vmul.f32 %v4938_v14, %v10737_v26 }
 0x636   :  { %v5063_v22 = vmul.f32 0.044715, %v4999_v46  ;;  %v5003_v42 = vmul.f32 %v4939_v11, %v10742_v63 }
 0x637   :  { %v5126_v18 = vadd.f32 %v5062_v20, %v10721_v44  ;;  %v5066_v0 = vmul.f32 0.044715, %v5002_v35 }
 0x638   :  { %v5127_v39 = vadd.f32 %v5063_v22, %v10729_v19  ;;  %v5067_v58 = vmul.f32 0.044715, %v5003_v42  ;;  %v10757_v13 = vpop.f32.mrb[164].mxu0 }
 0x639   :  { %v5190_v43 = vmul.f32 0.7978846, %v5126_v18  ;;  %v5130_v56 = vadd.f32 %v5066_v0, %v10737_v26  ;;  %v4942_v29 = vmul.f32 %v10757_v13, %v10757_v13  ;;  %7223 = vmatmul.mubr.msk.bf16.vlgmr.msra.gmra.mrb[144].mxu1 %vm1493_vm0, %v3918_v16  ;;  %v10766_v1 = vpop.f32.mrb[165].mxu0 }
 0x63a   :  { %v5191_v4 = vmul.f32 0.7978846, %v5127_v39  ;;  %v5131_v7 = vadd.f32 %v5067_v58, %v10742_v63  ;;  %v4943_v51 = vmul.f32 %v10766_v1, %v10766_v1  ;;  %7226 = vmatprep.mubr.msk.bf16.mxu1 %vm1493_vm0, %v3919_v27  ;;  %v10775_v9 = vpop.f32.mrb[166].mxu0  ;;  %6591 = vmatpush3.bf16.msra.mxu1 %v7405_v36 }
 0x63b   :  { %7724 = vtanh.f32 %v5190_v43  ;;  %v5194_v25 = vmul.f32 0.7978846, %v5130_v56  ;;  %v5006_v16 = vmul.f32 %v4942_v29, %v10757_v13  ;;  %v4946_v37 = vmul.f32 %v10775_v9, %v10775_v9  ;;  %v10783_v34 = vpop.f32.mrb[167].mxu0  ;;  %6592 = vmatprep.subr.bf16.mxu1 %v7406_v53  ;;  %v7413_v29 = vld [vmem:[%s11487_s15 + $0x20] sm:$0xff]  }
 0x63c   :  { %7726 = vtanh.f32 %v5191_v4  ;;  %v5195_v23 = vmul.f32 0.7978846, %v5131_v7  ;;  %v5007_v27 = vmul.f32 %v4943_v51, %v10766_v1  ;;  %v4947_v48 = vmul.f32 %v10783_v34, %v10783_v34 }
 0x63d   :  { %7728 = vtanh.f32 %v5194_v25  ;;  %v5070_v32 = vmul.f32 0.044715, %v5006_v16  ;;  %v5010_v60 = vmul.f32 %v4946_v37, %v10775_v9  ;;  %v7414_v25 = vld [vmem:[%s11487_s15 + $0x68] sm:$0xff]  }
 0x63e   :  { %7730 = vtanh.f32 %v5195_v23  ;;  %v5071_v52 = vmul.f32 0.044715, %v5007_v27  ;;  %v5011_v57 = vmul.f32 %v4947_v48, %v10783_v34  ;;  %6593 = vmatpush3.bf16.msra.mxu1 %v7407_v28 }
 0x63f   :  { %v5134_v3 = vadd.f32 %v5070_v32, %v10757_v13  ;;  %v5074_v8 = vmul.f32 0.044715, %v5010_v60  ;;  %6594 = vmatprep.subr.bf16.mxu1 %v7408_v10 }
 0x640   :  { %v5135_v50 = vadd.f32 %v5071_v52, %v10766_v1  ;;  %v5075_v47 = vmul.f32 0.044715, %v5011_v57  ;;  %v10801_v62 = vpop.f32.mrb[168].mxu0 }
 0x641   :  { %v5198_v12 = vmul.f32 0.7978846, %v5134_v3  ;;  %v5138_v40 = vadd.f32 %v5074_v8, %v10775_v9  ;;  %v4950_v6 = vmul.f32 %v10801_v62, %v10801_v62  ;;  %7227 = vmatmul.mubr.msk.bf16.gmra.mrb[148].mxu1 %vm1493_vm0, %v3920_v59  ;;  %v10810_v14 = vpop.f32.mrb[169].mxu0 }
 0x642   :  { %v5199_v46 = vmul.f32 0.7978846, %v5135_v50  ;;  %v5139_v11 = vadd.f32 %v5075_v47, %v10783_v34  ;;  %v4951_v20 = vmul.f32 %v10810_v14, %v10810_v14  ;;  %7230 = vmatprep.mubr.msk.bf16.mxu1 %vm1493_vm0, %v3921_v33  ;;  %v10819_v35 = vpop.f32.mrb[170].mxu0  ;;  %6595 = vmatpush3.bf16.msra.mxu1 %v7409_v41 }
 0x643   :  { %7732 = vtanh.f32 %v5198_v12  ;;  %v5202_v15 = vmul.f32 0.7978846, %v5138_v40  ;;  %v5014_v59 = vmul.f32 %v4950_v6, %v10801_v62  ;;  %v4954_v22 = vmul.f32 %v10819_v35, %v10819_v35  ;;  %v10827_v42 = vpop.f32.mrb[171].mxu0  ;;  %6596 = vmatprep.subr.bf16.mxu1 %v7410_v38 }
 0x644   :  { %7734 = vtanh.f32 %v5199_v46  ;;  %v5203_v54 = vmul.f32 0.7978846, %v5139_v11  ;;  %v5015_v33 = vmul.f32 %v4951_v20, %v10810_v14  ;;  %v4955_v36 = vmul.f32 %v10827_v42, %v10827_v42 }
 0x645   :  { %v7725_v18 = vpop.eup %7724  ;;  %7736 = vtanh.f32 %v5202_v15  ;;  %v5078_v0 = vmul.f32 0.044715, %v5014_v59  ;;  %v5018_v53 = vmul.f32 %v4954_v22, %v10819_v35 }
 0x646   :  { %v7727_v39 = vpop.eup %7726  ;;  %v5318_v58 = vadd.f32 1.0, %v7725_v18  ;;  %7738 = vtanh.f32 %v5203_v54  ;;  %v5079_v43 = vmul.f32 0.044715, %v5015_v33  ;;  %v5019_v56 = vmul.f32 %v4955_v36, %v10827_v42  ;;  %6597 = vmatpush3.bf16.msra.mxu1 %v7411_v45  ;;  %v7420_v36 = vld [vmem:[%s11487_s15 + $0x78] sm:$0xff]  }
 0x647   :  { %v7729_v4 = vpop.eup %7728  ;;  %v5319_v7 = vadd.f32 1.0, %v7727_v39  ;;  %v5142_v51 = vadd.f32 %v5078_v0, %v10801_v62  ;;  %v5082_v28 = vmul.f32 0.044715, %v5018_v53  ;;  %6598 = vmatprep.subr.bf16.mxu1 %v7412_v31 }
 0x648   :  { %v7731_v16 = vpop.eup %7730  ;;  %v5382_v37 = vmul.f32 0.5, %v5318_v58  ;;  %v5322_v10 = vadd.f32 1.0, %v7729_v4  ;;  %v5143_v23 = vadd.f32 %v5079_v43, %v10810_v14  ;;  %v5083_v27 = vmul.f32 0.044715, %v5019_v56  ;;  %v10845_v48 = vpop.f32.mrb[172].mxu0 }
 0x649   :  { %v5383_v32 = vmul.f32 0.5, %v5319_v7  ;;  %v5323_v60 = vadd.f32 1.0, %v7731_v16  ;;  %v5206_v52 = vmul.f32 0.7978846, %v5142_v51  ;;  %v5146_v57 = vadd.f32 %v5082_v28, %v10819_v35  ;;  %7231 = vmatmul.mubr.msk.bf16.gmra.mrb[152].mxu1 %vm1493_vm0, %v3922_v2  ;;  %v10852_v41 = vpop.f32.mrb[173].mxu0  ;;  %v7421_v16 = vld [vmem:[%s11487_s15 + $0x38] sm:$0xff]  }
 0x64a   :  { %v10855_v3 = vmul.f32 %v5382_v37, %v10721_v44  ;;  %v5386_v8 = vmul.f32 0.5, %v5322_v10  ;;  %v5207_v38 = vmul.f32 0.7978846, %v5143_v23  ;;  %v5147_v50 = vadd.f32 %v5083_v27, %v10827_v42  ;;  %7234 = vmatprep.mubr.msk.bf16.mxu1 %vm1493_vm0, %v3923_v5  ;;  %v10862_v47 = vpop.f32.mrb[174].mxu0  ;;  %6599 = vmatpush3.bf16.msra.mxu1 %v7413_v29 }
 0x64b   :  { %v5447_v61 = vmul.f32 %v5383_v32, %v10729_v19  ;;  %v5387_v2 = vmul.f32 0.5, %v5323_v60  ;;  %7740 = vtanh.f32 %v5206_v52  ;;  %v5210_v44 = vmul.f32 0.7978846, %v5146_v57  ;;  %v10868_v12 = vpop.f32.mrb[175].mxu0  ;;  %6600 = vmatprep.subr.bf16.mxu1 %v7414_v25 }
 0x64c   :  { %v10874_v21 = vmul.f32 %v5386_v8, %v10737_v26  ;;  %7742 = vtanh.f32 %v5207_v38  ;;  %v5211_v5 = vmul.f32 0.7978846, %v5147_v50  ;;  %v4958_v40 = vmul.f32 %v10845_v48, %v10845_v48 }
 0x64d   :  { %v7733_v6 = vpop.eup %7732  ;;  %v5451_v19 = vmul.f32 %v5387_v2, %v10742_v63  ;;  %7744 = vtanh.f32 %v5210_v44  ;;  %v4959_v46 = vmul.f32 %v10852_v41, %v10852_v41  ;;  %v4962_v11 = vmul.f32 %v10862_v47, %v10862_v47  ;;  %v7418_v63 = vld [vmem:[%s11487_s15 + $0x30] sm:$0xff]   ;;  %s6029_s15 = sshll.u32 %s7893_s20, 4  ;;  %s6030_s15 = int_to_ptr.vmem [resolvable:$true] %s6029_s15 }
 0x64e   :  { %v7735_v20 = vpop.eup %7734  ;;  %v5510_v26 = vpack.c.bf16 %v10874_v21, %v10855_v3  ;;  %v5326_v45 = vadd.f32 1.0, %v7733_v6  ;;  %7746 = vtanh.f32 %v5211_v5  ;;  %v5022_v15 = vmul.f32 %v4958_v40, %v10845_v48  ;;  %6601 = vmatpush3.bf16.msra.mxu1 %v7415_v17  ;;  %s7868_s22 = scalar_lea.vmem %s6030_s15, 2048  ;;  %p7873_p1 = scmp.lt.s32.totalorder %s6030_s15, %s6030_s15 }
 0x64f   :  { %v7737_v59 = vpop.eup %7736  ;;  %v5327_v22 = vadd.f32 1.0, %v7735_v20  ;;  %v5023_v31 = vmul.f32 %v4959_v46, %v10852_v41  ;;  %v5026_v54 = vmul.f32 %v4962_v11, %v10862_v47  ;;  %v4963_v33 = vmul.f32 %v10868_v12, %v10868_v12  ;;  %6602 = vmatprep.subr.bf16.mxu1 %v7416_v24  ;;  %p7869_p0 = scmp.ne.s32.totalorder %s6030_s15, %s7868_s22  ;;  %p7874_p2 = scmp.lt.s32.totalorder %s7868_s22, %s7868_s22 }
 0x650   :  { %v7739_v18 = vpop.eup %7738  ;;  %v5390_v0 = vmul.f32 0.5, %v5326_v45  ;;  %v5330_v53 = vadd.f32 1.0, %v7737_v59  ;;  %v5086_v39 = vmul.f32 0.044715, %v5022_v15  ;;  %v10896_v58 = vpop.f32.mrb[176].mxu0  ;;  %v5511_v43 = vpack.c.bf16 %v5451_v19, %v5447_v61 }
 0x651   :  { %v5391_v56 = vmul.f32 0.5, %v5327_v22  ;;  %v5331_v29 = vadd.f32 1.0, %v7739_v18  ;;  %v5087_v4 = vmul.f32 0.044715, %v5023_v31  ;;  %v5090_v7 = vmul.f32 0.044715, %v5026_v54  ;;  %7235 = vmatmul.mubr.msk.bf16.gmra.mrb[156].mxu1 %vm1493_vm0, %v3924_v55  ;;  %p7875_p3 = por %p7874_p2, %p7873_p1 }
 0x652   :  { %v5150_v51 = vadd.f32 %v5086_v39, %v10845_v48  ;;  %v5027_v28 = vmul.f32 %v4963_v33, %v10868_v12  ;;  %v10904_v25 = vpop.f32.mrb[177].mxu0  ;;  %6603 = vmatpush3.bf16.msra.mxu1 %v7418_v63  ;;  %5830 = vmatprep.mubr.bf16.mxu1 %v5511_v43  ;;  %v10910_v37 = vmul.f32 %v5390_v0, %v10757_v13  ;;  %v5394_v10 = vmul.f32 0.5, %v5330_v53 }
 0x653   :  { %v5151_v49 = vadd.f32 %v5087_v4, %v10852_v41  ;;  %v5154_v30 = vadd.f32 %v5090_v7, %v10862_v47  ;;  %v10914_v55 = vpop.f32.mrb[178].mxu0  ;;  %6604 = vmatprep.subr.bf16.mxu1 %v7420_v36  ;;  %v10917_v23 = vmul.f32 %v5391_v56, %v10766_v1  ;;  %v4966_v60 = vmul.f32 %v10896_v58, %v10896_v58  ;;  %p7876_p4 = pnand %p7875_p3, %p7869_p0 }
 0x654   :  { %v5214_v27 = vmul.f32 0.7978846, %v5150_v51  ;;  %v5091_v32 = vmul.f32 0.044715, %v5027_v28  ;;  %v10921_v52 = vpop.f32.mrb[179].mxu0  ;;  %v5395_v57 = vmul.f32 0.5, %v5331_v29  ;;  %v4967_v50 = vmul.f32 %v10904_v25, %v10904_v25 }
 0x655   :  { %v7741_v13 = vpop.eup %7740  ;;  %v5215_v8 = vmul.f32 0.7978846, %v5151_v49  ;;  %v5218_v38 = vmul.f32 0.7978846, %v5154_v30  ;;  %v5030_v2 = vmul.f32 %v4966_v60, %v10896_v58  ;;  %v4970_v40 = vmul.f32 %v10914_v55, %v10914_v55 }
 0x656   :  { %v7743_v17 = vpop.eup %7742  ;;  %v5334_v61 = vadd.f32 1.0, %v7741_v13  ;;  %7748 = vtanh.f32 %v5214_v27  ;;  %v5155_v1 = vadd.f32 %v5091_v32, %v10868_v12  ;;  %6605 = vmatpush3.bf16.msra.mxu1 %v7421_v16  ;;  %v5031_v5 = vmul.f32 %v4967_v50, %v10904_v25 }
 0x657   :  { %v7745_v44 = vpop.eup %7744  ;;  %v5335_v24 = vadd.f32 1.0, %v7743_v17  ;;  %7750 = vtanh.f32 %v5215_v8  ;;  %v5094_v63 = vmul.f32 0.044715, %v5030_v2  ;;  %v10936_v22 = vmul.f32 %v5394_v10, %v10775_v9 }
 0x658   :  { %v7747_v6 = vpop.eup %7746  ;;  %v5398_v19 = vmul.f32 0.5, %v5334_v61  ;;  %v5338_v46 = vadd.f32 1.0, %v7745_v44  ;;  %7752 = vtanh.f32 %v5218_v38  ;;  %v5219_v11 = vmul.f32 0.7978846, %v5155_v1  ;;  %v10930_v20 = vpop.f32.mrb[180].mxu0 }
 0x659   :  { %v5399_v45 = vmul.f32 0.5, %v5335_v24  ;;  %v5339_v15 = vadd.f32 1.0, %v7747_v6  ;;  %v5095_v59 = vmul.f32 0.044715, %v5031_v5  ;;  %5831 = vmatmul.mubr.bf16.vlgmr.msra.gmra.mrb[160].mxu1 %v5510_v26  ;;  %v5459_v31 = vmul.f32 %v5395_v57, %v10783_v34  ;;  %v10940_v33 = vpop.f32.mrb[181].mxu0 }
 0x65a   :  { %7754 = vtanh.f32 %v5219_v11  ;;  %v5034_v54 = vmul.f32 %v4970_v40, %v10914_v55  ;;  %v10943_v36 = vmul.f32 %v5398_v19, %v10801_v62  ;;  %v5402_v18 = vmul.f32 0.5, %v5338_v46  ;;  %v10947_v3 = vpop.f32.mrb[182].mxu0 }
 0x65b   :  { %v5158_v0 = vadd.f32 %v5094_v63, %v10896_v58  ;;  %v5159_v53 = vadd.f32 %v5095_v59, %v10904_v25  ;;  %v10950_v9 = vmul.f32 %v5399_v45, %v10810_v14  ;;  %v4971_v34 = vmul.f32 %v10921_v52, %v10921_v52  ;;  %v10956_v39 = vpop.f32.mrb[183].mxu0 }
 0x65c   :  { %v5098_v21 = vmul.f32 0.044715, %v5034_v54  ;;  %v4974_v26 = vmul.f32 %v10930_v20, %v10930_v20  ;;  %v5403_v62 = vmul.f32 0.5, %v5339_v15  ;;  %v4975_v29 = vmul.f32 %v10940_v33, %v10940_v33 }
 0x65d   :  { %v5222_v43 = vmul.f32 0.7978846, %v5158_v0  ;;  %v5223_v56 = vmul.f32 0.7978846, %v5159_v53  ;;  %v5035_v14 = vmul.f32 %v4971_v34, %v10921_v52  ;;  %v4978_v51 = vmul.f32 %v10947_v3, %v10947_v3 }
 0x65e   :  { %v5162_v4 = vadd.f32 %v5098_v21, %v10914_v55  ;;  %v5038_v7 = vmul.f32 %v4974_v26, %v10930_v20  ;;  %v5039_v28 = vmul.f32 %v4975_v29, %v10940_v33  ;;  %v5515_v16 = vpack.c.bf16 %v5459_v31, %v10917_v23 }
 0x65f   :  { %7756 = vtanh.f32 %v5222_v43  ;;  %v4979_v10 = vmul.f32 %v10956_v39, %v10956_v39  ;;  %v5099_v27 = vmul.f32 0.044715, %v5035_v14  ;;  %v5042_v8 = vmul.f32 %v4978_v51, %v10947_v3 }
 0x660   :  { %v7749_v49 = vpop.eup %7748  ;;  %7758 = vtanh.f32 %v5223_v56  ;;  %v5226_v30 = vmul.f32 0.7978846, %v5162_v4  ;;  %v5102_v32 = vmul.f32 0.044715, %v5038_v7  ;;  %v5103_v57 = vmul.f32 0.044715, %v5039_v28  ;;  %5838 = vmatprep.mubr.bf16.mxu1 %v5515_v16 }
 0x661   :  { %v7751_v60 = vpop.eup %7750  ;;  %v5342_v13 = vadd.f32 1.0, %v7749_v49  ;;  %v5043_v38 = vmul.f32 %v4979_v10, %v10956_v39  ;;  %v10971_v50 = vpop.f32.mrb[184].mxu0  ;;  %v5163_v61 = vadd.f32 %v5099_v27, %v10921_v52  ;;  %v5106_v40 = vmul.f32 0.044715, %v5042_v8 }
 0x662   :  { %v7753_v17 = vpop.eup %7752  ;;  %v5343_v23 = vadd.f32 1.0, %v7751_v60  ;;  %7760 = vtanh.f32 %v5226_v30  ;;  %v5166_v1 = vadd.f32 %v5102_v32, %v10930_v20  ;;  %v10975_v2 = vpop.f32.mrb[185].mxu0  ;;  %v5167_v5 = vadd.f32 %v5103_v57, %v10940_v33 }
 0x663   :  { %v5406_v44 = vmul.f32 0.5, %v5342_v13  ;;  %v5346_v24 = vadd.f32 1.0, %v7753_v17  ;;  %v10978_v6 = vpop.f32.mrb[186].mxu0  ;;  %v5227_v11 = vmul.f32 0.7978846, %v5163_v61  ;;  %v4982_v15 = vmul.f32 %v10971_v50, %v10971_v50 }
 0x664   :  { %v7755_v19 = vpop.eup %7754  ;;  %v5407_v46 = vmul.f32 0.5, %v5343_v23  ;;  %v5230_v45 = vmul.f32 0.7978846, %v5166_v1  ;;  %v10982_v63 = vpop.f32.mrb[187].mxu0  ;;  %v10985_v59 = vmul.f32 %v5402_v18, %v10819_v35  ;;  %v5467_v31 = vmul.f32 %v5403_v62, %v10827_v42 }
 0x665   :  { %v5347_v54 = vadd.f32 1.0, %v7755_v19  ;;  %v5231_v0 = vmul.f32 0.7978846, %v5167_v5  ;;  %v10989_v53 = vmul.f32 %v5406_v44, %v10845_v48  ;;  %7762 = vtanh.f32 %v5227_v11 }
 0x666   :  { %v5170_v21 = vadd.f32 %v5106_v40, %v10947_v3  ;;  %v5107_v34 = vmul.f32 0.044715, %v5043_v38  ;;  %v10993_v26 = vmul.f32 %v5407_v46, %v10852_v41  ;;  %v5410_v43 = vmul.f32 0.5, %v5346_v24 }
 0x667   :  { %7764 = vtanh.f32 %v5230_v45  ;;  %v5046_v56 = vmul.f32 %v4982_v15, %v10971_v50  ;;  %v4983_v18 = vmul.f32 %v10975_v2, %v10975_v2  ;;  %v5411_v29 = vmul.f32 0.5, %v5347_v54 }
 0x668   :  { %7766 = vtanh.f32 %v5231_v0  ;;  %v5234_v35 = vmul.f32 0.7978846, %v5170_v21  ;;  %v5171_v42 = vadd.f32 %v5107_v34, %v10956_v39  ;;  %v10999_v48 = vpop.f32.mrb[188].mxu0  ;;  %v5514_v41 = vpack.c.bf16 %v10936_v22, %v10910_v37 }
 0x669   :  { %v7757_v62 = vpop.eup %7756  ;;  %v5110_v4 = vmul.f32 0.044715, %v5046_v56  ;;  %v4986_v14 = vmul.f32 %v10978_v6, %v10978_v6  ;;  %v11005_v7 = vpop.f32.mrb[189].mxu0  ;;  %v5047_v10 = vmul.f32 %v4983_v18, %v10975_v2  ;;  %v5519_v37 = vpack.c.bf16 %v5467_v31, %v10950_v9 }
 0x66a   :  { %v7759_v51 = vpop.eup %7758  ;;  %v5350_v28 = vadd.f32 1.0, %v7757_v62  ;;  %7768 = vtanh.f32 %v5234_v35  ;;  %v5235_v16 = vmul.f32 0.7978846, %v5171_v42  ;;  %v11008_v49 = vpop.f32.mrb[190].mxu0  ;;  %5839 = vmatmul.mubr.bf16.gmra.mrb[164].mxu1 %v5514_v41  ;;  %v4987_v8 = vmul.f32 %v10982_v63, %v10982_v63 }
 0x66b   :  { %v5351_v30 = vadd.f32 1.0, %v7759_v51  ;;  %v5174_v27 = vadd.f32 %v5110_v4, %v10971_v50  ;;  %v5050_v32 = vmul.f32 %v4986_v14, %v10978_v6  ;;  %v11013_v22 = vpop.f32.mrb[191].mxu0  ;;  %v5111_v57 = vmul.f32 0.044715, %v5047_v10  ;;  %5846 = vmatprep.mubr.bf16.mxu1 %v5519_v37 }
 0x66c   :  { %v7761_v60 = vpop.eup %7760  ;;  %v5414_v13 = vmul.f32 0.5, %v5350_v28  ;;  %7770 = vtanh.f32 %v5235_v16  ;;  %v11018_v38 = vmul.f32 %v5410_v43, %v10862_v47  ;;  %v11021_v1 = vmul.f32 %v5411_v29, %v10868_v12 }
 0x66d   :  { %v5354_v17 = vadd.f32 1.0, %v7761_v60  ;;  %v5238_v23 = vmul.f32 0.7978846, %v5174_v27  ;;  %v5114_v61 = vmul.f32 0.044715, %v5050_v32  ;;  %v5175_v9 = vadd.f32 %v5111_v57, %v10975_v2 }
 0x66e   :  { %v5051_v44 = vmul.f32 %v4987_v8, %v10982_v63  ;;  %v4990_v24 = vmul.f32 %v10999_v48, %v10999_v48  ;;  %v11028_v5 = vmul.f32 %v5414_v13, %v10896_v58  ;;  %v5415_v40 = vmul.f32 0.5, %v5351_v30 }
 0x66f   :  { %7772 = vtanh.f32 %v5238_v23  ;;  %v5178_v47 = vadd.f32 %v5114_v61, %v10978_v6  ;;  %v7763_v19 = vpop.eup %7762  ;;  %v5239_v46 = vmul.f32 0.7978846, %v5175_v9  ;;  %v4991_v45 = vmul.f32 %v11005_v7, %v11005_v7 }
 0x670   :  { %v5115_v11 = vmul.f32 0.044715, %v5051_v44  ;;  %v5054_v12 = vmul.f32 %v4990_v24, %v10999_v48  ;;  %v11034_v15 = vpop.f32.mrb[192].mxu0  ;;  %v5418_v54 = vmul.f32 0.5, %v5354_v17  ;;  %v5355_v0 = vadd.f32 1.0, %v7763_v19 }
 0x671   :  { %v7765_v31 = vpop.eup %7764  ;;  %v5242_v21 = vmul.f32 0.7978846, %v5178_v47  ;;  %v5518_v58 = vpack.c.bf16 %v10985_v59, %v10943_v36  ;;  %v11038_v34 = vpop.f32.mrb[193].mxu0  ;;  %7774 = vtanh.f32 %v5239_v46  ;;  %v5055_v4 = vmul.f32 %v4991_v45, %v11005_v7 }
 0x672   :  { %v7767_v43 = vpop.eup %7766  ;;  %v5358_v56 = vadd.f32 1.0, %v7765_v31  ;;  %v5179_v35 = vadd.f32 %v5115_v11, %v10982_v63  ;;  %v5118_v42 = vmul.f32 0.044715, %v5054_v12  ;;  %v11041_v18 = vpop.f32.mrb[194].mxu0  ;;  %v5419_v62 = vmul.f32 0.5, %v5355_v0 }
 0x673   :  { %v5359_v29 = vadd.f32 1.0, %v7767_v43  ;;  %7776 = vtanh.f32 %v5242_v21  ;;  %5847 = vmatmul.mubr.bf16.gmra.mrb[168].mxu1 %v5518_v58  ;;  %v11044_v41 = vpop.f32.mrb[195].mxu0  ;;  %v4994_v28 = vmul.f32 %v11008_v49, %v11008_v49  ;;  %v5479_v16 = vmul.f32 %v5415_v40, %v10904_v25 }
 0x674   :  { %v7769_v14 = vpop.eup %7768  ;;  %v5422_v36 = vmul.f32 0.5, %v5358_v56  ;;  %v5243_v59 = vmul.f32 0.7978846, %v5179_v35  ;;  %v5182_v51 = vadd.f32 %v5118_v42, %v10999_v48  ;;  %v5119_v27 = vmul.f32 0.044715, %v5055_v4 }
 0x675   :  { %v5423_v10 = vmul.f32 0.5, %v5359_v29  ;;  %v5362_v30 = vadd.f32 1.0, %v7769_v14  ;;  %v11051_v37 = vmul.f32 %v5418_v54, %v10914_v55  ;;  %v5058_v13 = vmul.f32 %v4994_v28, %v11008_v49 }
 0x676   :  { %v7771_v32 = vpop.eup %7770  ;;  %7778 = vtanh.f32 %v5243_v59  ;;  %v5246_v60 = vmul.f32 0.7978846, %v5182_v51  ;;  %v5483_v57 = vmul.f32 %v5419_v62, %v10921_v52  ;;  %v11056_v8 = vmul.f32 %v5422_v36, %v10930_v20 }
 0x677   :  { %v5363_v17 = vadd.f32 1.0, %v7771_v32  ;;  %v5183_v23 = vadd.f32 %v5119_v27, %v11005_v7  ;;  %v5122_v25 = vmul.f32 0.044715, %v5058_v13  ;;  %v5523_v61 = vpack.c.bf16 %v11021_v1, %v10993_v26 }
 0x678   :  { %7780 = vtanh.f32 %v5246_v60  ;;  %v4995_v55 = vmul.f32 %v11013_v22, %v11013_v22  ;;  %v11063_v9 = vpop.f32.mrb[196].mxu0  ;;  %v11066_v24 = vmul.f32 %v5423_v10, %v10940_v33  ;;  %v5426_v52 = vmul.f32 0.5, %v5362_v30 }
 0x679   :  { %v7773_v44 = vpop.eup %7772  ;;  %v5247_v20 = vmul.f32 0.7978846, %v5183_v23  ;;  %v4936_v40 = vmul.f32 %v11034_v15, %v11034_v15  ;;  %v11070_v47 = vpop.f32.mrb[197].mxu0  ;;  %v5186_v46 = vadd.f32 %v5122_v25, %v11008_v49  ;;  %5854 = vmatprep.mubr.bf16.mxu1 %v5523_v61  ;;  %v4937_v1 = vmul.f32 %v11038_v34, %v11038_v34 }
 0x67a   :  { %v5366_v19 = vadd.f32 1.0, %v7773_v44  ;;  %v5059_v26 = vmul.f32 %v4995_v55, %v11013_v22  ;;  %v11076_v11 = vpop.f32.mrb[198].mxu0  ;;  %v5427_v33 = vmul.f32 0.5, %v5363_v17  ;;  %v5522_v45 = vpack.c.bf16 %v11018_v38, %v10989_v53 }
 0x67b   :  { %7782 = vtanh.f32 %v5247_v20  ;;  %v5000_v12 = vmul.f32 %v4936_v40, %v11034_v15  ;;  %v11081_v31 = vpop.f32.mrb[199].mxu0  ;;  %v7775_v54 = vpop.eup %7774  ;;  %v5250_v21 = vmul.f32 0.7978846, %v5186_v46  ;;  %v5001_v43 = vmul.f32 %v4937_v1, %v11038_v34 }
 0x67c   :  { %v5430_v0 = vmul.f32 0.5, %v5366_v19  ;;  %v5123_v58 = vmul.f32 0.044715, %v5059_v26  ;;  %v5367_v35 = vadd.f32 1.0, %v7775_v54  ;;  %5855 = vmatmul.mubr.bf16.gmra.mrb[172].mxu1 %v5522_v45  ;;  %v4940_v62 = vmul.f32 %v11041_v18, %v11041_v18 }
 0x67d   :  { %v7777_v56 = vpop.eup %7776  ;;  %v5064_v42 = vmul.f32 0.044715, %v5000_v12  ;;  %v5527_v29 = vpack.c.bf16 %v5483_v57, %v5479_v16  ;;  %v11087_v4 = vmul.f32 %v5426_v52, %v10947_v3  ;;  %7784 = vtanh.f32 %v5250_v21 }
 0x67e   :  { %v5370_v53 = vadd.f32 1.0, %v7777_v56  ;;  %v5187_v38 = vadd.f32 %v5123_v58, %v11013_v22  ;;  %v5491_v14 = vmul.f32 %v5427_v33, %v10956_v39  ;;  %v5065_v59 = vmul.f32 0.044715, %v5001_v43 }
 0x67f   :  { %v5128_v36 = vadd.f32 %v5064_v42, %v11034_v15  ;;  %v5004_v51 = vmul.f32 %v4940_v62, %v11041_v18  ;;  %5862 = vmatprep.mubr.bf16.mxu1 %v5527_v29  ;;  %v11094_v10 = vmul.f32 %v5430_v0, %v10971_v50  ;;  %v4941_v3 = vmul.f32 %v11044_v41, %v11044_v41 }
 0x680   :  { %v7779_v28 = vpop.eup %7778  ;;  %v5251_v16 = vmul.f32 0.7978846, %v5187_v38  ;;  %v4944_v30 = vmul.f32 %v11063_v9, %v11063_v9  ;;  %v11100_v27 = vpop.f32.mrb[200].mxu0  ;;  %v5431_v39 = vmul.f32 0.5, %v5367_v35  ;;  %v5129_v13 = vadd.f32 %v5065_v59, %v11038_v34 }
 0x681   :  { %v5371_v32 = vadd.f32 1.0, %v7779_v28  ;;  %v5192_v60 = vmul.f32 0.7978846, %v5128_v36  ;;  %v11103_v57 = vpop.f32.mrb[201].mxu0  ;;  %v5434_v23 = vmul.f32 0.5, %v5370_v53  ;;  %v5005_v25 = vmul.f32 %v4941_v3, %v11044_v41 }
 0x682   :  { %v7781_v17 = vpop.eup %7780  ;;  %7786 = vtanh.f32 %v5251_v16  ;;  %v5068_v50 = vmul.f32 0.044715, %v5004_v51  ;;  %v11106_v61 = vpop.f32.mrb[202].mxu0  ;;  %v5193_v52 = vmul.f32 0.7978846, %v5129_v13  ;;  %v5008_v46 = vmul.f32 %v4944_v30, %v11063_v9 }
 0x683   :  { %v5435_v55 = vmul.f32 0.5, %v5371_v32  ;;  %v5374_v44 = vadd.f32 1.0, %v7781_v17  ;;  %7788 = vtanh.f32 %v5192_v60  ;;  %v11108_v20 = vpop.f32.mrb[203].mxu0  ;;  %v5069_v19 = vmul.f32 0.044715, %v5005_v25 }
 0x684   :  { %v5132_v40 = vadd.f32 %v5068_v50, %v11041_v18  ;;  %v4945_v26 = vmul.f32 %v11070_v47, %v11070_v47  ;;  %v11115_v33 = vmul.f32 %v5431_v39, %v10975_v2  ;;  %7790 = vtanh.f32 %v5193_v52 }
 0x685   :  { %v7783_v1 = vpop.eup %7782  ;;  %v5438_v12 = vmul.f32 0.5, %v5374_v44  ;;  %v5526_v45 = vpack.c.bf16 %v11051_v37, %v11028_v5  ;;  %v5133_v21 = vadd.f32 %v5069_v19, %v11044_v41  ;;  %v5072_v58 = vmul.f32 0.044715, %v5008_v46 }
 0x686   :  { %v5375_v54 = vadd.f32 1.0, %v7783_v1  ;;  %v5196_v0 = vmul.f32 0.7978846, %v5132_v40  ;;  %v11121_v43 = vmul.f32 %v5434_v23, %v10978_v6  ;;  %v5009_v56 = vmul.f32 %v4945_v26, %v11070_v47 }
 0x687   :  { %5863 = vmatmul.mubr.bf16.gmra.mrb[176].mxu1 %v5526_v45  ;;  %v4948_v2 = vmul.f32 %v11076_v11, %v11076_v11  ;;  %v5531_v35 = vpack.c.bf16 %v5491_v14, %v11066_v24  ;;  %v7785_v42 = vpop.eup %7784  ;;  %v11128_v62 = vmul.f32 %v5435_v55, %v10982_v63  ;;  %v5197_v5 = vmul.f32 0.7978846, %v5133_v21 }
 0x688   :  { %7792 = vtanh.f32 %v5196_v0  ;;  %v5136_v37 = vadd.f32 %v5072_v58, %v11063_v9  ;;  %v11131_v29 = vpop.f32.mrb[204].mxu0  ;;  %v5439_v6 = vmul.f32 0.5, %v5375_v54  ;;  %v5073_v53 = vmul.f32 0.044715, %v5009_v56 }
 0x689   :  { %v5012_v38 = vmul.f32 %v4948_v2, %v11076_v11  ;;  %5870 = vmatprep.mubr.bf16.mxu1 %v5531_v35  ;;  %v4949_v36 = vmul.f32 %v11081_v31, %v11081_v31  ;;  %v11136_v59 = vpop.f32.mrb[205].mxu0  ;;  %v11139_v24 = vmul.f32 %v5438_v12, %v10999_v48  ;;  %7794 = vtanh.f32 %v5197_v5 }
 0x68a   :  { %v5200_v63 = vmul.f32 0.7978846, %v5136_v37  ;;  %v4952_v14 = vmul.f32 %v11100_v27, %v11100_v27  ;;  %v11143_v51 = vpop.f32.mrb[206].mxu0  ;;  %v5378_v28 = vadd.f32 1.0, %v7785_v42  ;;  %v5137_v16 = vadd.f32 %v5073_v53, %v11070_v47 }
 0x68b   :  { %v5076_v3 = vmul.f32 0.044715, %v5012_v38  ;;  %v5013_v30 = vmul.f32 %v4949_v36, %v11081_v31  ;;  %v11147_v39 = vpop.f32.mrb[207].mxu0  ;;  %v4953_v60 = vmul.f32 %v11103_v57, %v11103_v57  ;;  %v5530_v13 = vpack.c.bf16 %v11087_v4, %v11056_v8 }
 0x68c   :  { %v7787_v32 = vpop.eup %7786  ;;  %7796 = vtanh.f32 %v5200_v63  ;;  %v5016_v48 = vmul.f32 %v4952_v14, %v11100_v27  ;;  %v11155_v23 = vmul.f32 %v5439_v6, %v11005_v7  ;;  %v5201_v25 = vmul.f32 0.7978846, %v5137_v16 }
 0x68d   :  { %v7789_v17 = vpop.eup %7788  ;;  %v5379_v50 = vadd.f32 1.0, %v7787_v32  ;;  %v5140_v55 = vadd.f32 %v5076_v3, %v11076_v11  ;;  %v5077_v52 = vmul.f32 0.044715, %v5013_v30  ;;  %v5017_v19 = vmul.f32 %v4953_v60, %v11103_v57 }
 0x68e   :  { %v5320_v44 = vadd.f32 1.0, %v7789_v17  ;;  %v5080_v40 = vmul.f32 0.044715, %v5016_v48  ;;  %v7791_v46 = vpop.eup %7790  ;;  %7798 = vtanh.f32 %v5201_v25  ;;  %v4956_v8 = vmul.f32 %v11106_v61, %v11106_v61 }
 0x68f   :  { %v5443_v26 = vmul.f32 0.5, %v5379_v50  ;;  %v5204_v1 = vmul.f32 0.7978846, %v5140_v55  ;;  %5871 = vmatmul.mubr.bf16.gmra.mrb[180].mxu1 %v5530_v13  ;;  %v5321_v7 = vadd.f32 1.0, %v7791_v46  ;;  %v5141_v12 = vadd.f32 %v5077_v52, %v11081_v31 }
 0x690   :  { %v5384_v4 = vmul.f32 0.5, %v5320_v44  ;;  %v5144_v45 = vadd.f32 %v5080_v40, %v11100_v27  ;;  %v11163_v54 = vpop.f32.mrb[208].mxu0  ;;  %v5442_v0 = vmul.f32 0.5, %v5378_v28  ;;  %v5081_v21 = vmul.f32 0.044715, %v5017_v19 }
 0x691   :  { %7800 = vtanh.f32 %v5204_v1  ;;  %v5020_v58 = vmul.f32 %v4956_v8, %v11106_v61  ;;  %v11166_v56 = vpop.f32.mrb[209].mxu0  ;;  %v5507_v35 = vmul.f32 %v5443_v26, %v11013_v22  ;;  %v5205_v5 = vmul.f32 0.7978846, %v5141_v12 }
 0x692   :  { %v7793_v2 = vpop.eup %7792  ;;  %v11170_v42 = vmul.f32 %v5384_v4, %v11034_v15  ;;  %v5208_v37 = vmul.f32 0.7978846, %v5144_v45  ;;  %v11172_v6 = vpop.f32.mrb[210].mxu0  ;;  %v5145_v38 = vadd.f32 %v5081_v21, %v11103_v57  ;;  %v5535_v63 = vpack.c.bf16 %v11128_v62, %v11115_v33 }
 0x693   :  { %v5324_v53 = vadd.f32 1.0, %v7793_v2  ;;  %v5084_v36 = vmul.f32 0.044715, %v5020_v58  ;;  %v11177_v14 = vpop.f32.mrb[211].mxu0  ;;  %v7795_v28 = vpop.eup %7794  ;;  %v5385_v16 = vmul.f32 0.5, %v5321_v7  ;;  %7802 = vtanh.f32 %v5205_v5 }
 0x694   :  { %v4957_v22 = vmul.f32 %v11108_v20, %v11108_v20  ;;  %v4960_v15 = vmul.f32 %v11131_v29, %v11131_v29  ;;  %v5325_v30 = vadd.f32 1.0, %v7795_v28  ;;  %7804 = vtanh.f32 %v5208_v37  ;;  %5878 = vmatprep.mubr.bf16.mxu1 %v5535_v63 }
 0x695   :  { %v5388_v3 = vmul.f32 0.5, %v5324_v53  ;;  %v5209_v32 = vmul.f32 0.7978846, %v5145_v38  ;;  %v5148_v60 = vadd.f32 %v5084_v36, %v11106_v61  ;;  %v4961_v13 = vmul.f32 %v11136_v59, %v11136_v59 }
 0x696   :  { %v7797_v48 = vpop.eup %7796  ;;  %v5021_v33 = vmul.f32 %v4957_v22, %v11108_v20  ;;  %v5024_v62 = vmul.f32 %v4960_v15, %v11131_v29  ;;  %v5389_v50 = vmul.f32 0.5, %v5325_v30  ;;  %v11193_v46 = vmul.f32 %v5442_v0, %v11008_v49 }
 0x697   :  { %v11189_v17 = vmul.f32 %v5388_v3, %v11041_v18  ;;  %v5328_v25 = vadd.f32 1.0, %v7797_v48  ;;  %7806 = vtanh.f32 %v5209_v32  ;;  %v5212_v55 = vmul.f32 0.7978846, %v5148_v60 }
 0x698   :  { %v5085_v44 = vmul.f32 0.044715, %v5021_v33  ;;  %v5088_v52 = vmul.f32 0.044715, %v5024_v62  ;;  %v5025_v40 = vmul.f32 %v4961_v13, %v11136_v59  ;;  %v7799_v19 = vpop.eup %7798  ;;  %v5534_v18 = vpack.c.bf16 %v11121_v43, %v11094_v10  ;;  %v11199_v8 = vpop.f32.mrb[212].mxu0 }
 0x699   :  { %v5512_v26 = vpack.c.bf16 %v11189_v17, %v11170_v42  ;;  %v5392_v1 = vmul.f32 0.5, %v5328_v25  ;;  %v5329_v4 = vadd.f32 1.0, %v7799_v19  ;;  %7808 = vtanh.f32 %v5212_v55  ;;  %v11203_v45 = vpop.f32.mrb[213].mxu0 }
 0x69a   :  { %v5149_v7 = vadd.f32 %v5085_v44, %v11108_v20  ;;  %v5152_v12 = vadd.f32 %v5088_v52, %v11131_v29  ;;  %v11206_v49 = vmul.f32 %v5385_v16, %v11038_v34  ;;  %v5089_v0 = vmul.f32 0.044715, %v5025_v40  ;;  %5879 = vmatmul.mubr.bf16.gmra.mrb[184].mxu1 %v5534_v18  ;;  %v11211_v43 = vpop.f32.mrb[214].mxu0 }
 0x69b   :  { %v7801_v21 = vpop.eup %7800  ;;  %v4964_v58 = vmul.f32 %v11143_v51, %v11143_v51  ;;  %v5539_v10 = vpack.c.bf16 %v5507_v35, %v11155_v23  ;;  %v5453_v2 = vmul.f32 %v5389_v50, %v11044_v41  ;;  %v4965_v34 = vmul.f32 %v11147_v39, %v11147_v39  ;;  %v11220_v28 = vpop.f32.mrb[215].mxu0 }
 0x69c   :  { %v5332_v5 = vadd.f32 1.0, %v7801_v21  ;;  %v5213_v37 = vmul.f32 0.7978846, %v5149_v7  ;;  %v5216_v53 = vmul.f32 0.7978846, %v5152_v12  ;;  %v5153_v38 = vadd.f32 %v5089_v0, %v11136_v59 }
 0x69d   :  { %v5028_v36 = vmul.f32 %v4964_v58, %v11143_v51  ;;  %5886 = vmatprep.mubr.bf16.mxu1 %v5539_v10  ;;  %v4968_v63 = vmul.f32 %v11163_v54, %v11163_v54  ;;  %v7803_v23 = vpop.eup %7802  ;;  %v11223_v35 = vmul.f32 %v5392_v1, %v11063_v9  ;;  %v5393_v41 = vmul.f32 0.5, %v5329_v4 }
 0x69e   :  { %7810 = vtanh.f32 %v5213_v37  ;;  %v4969_v16 = vmul.f32 %v11166_v56, %v11166_v56  ;;  %v7805_v22 = vpop.eup %7804  ;;  %v5333_v15 = vadd.f32 1.0, %v7803_v23  ;;  %v5217_v3 = vmul.f32 0.7978846, %v5153_v38 }
 0x69f   :  { %7812 = vtanh.f32 %v5216_v53  ;;  %v5092_v30 = vmul.f32 0.044715, %v5028_v36  ;;  %v5396_v32 = vmul.f32 0.5, %v5332_v5  ;;  %v5336_v48 = vadd.f32 1.0, %v7805_v22 }
 0x6a0   :  { %v5029_v60 = vmul.f32 %v4965_v34, %v11147_v39  ;;  %v5032_v33 = vmul.f32 %v4968_v63, %v11163_v54  ;;  %v11229_v62 = vpop.f32.mrb[216].mxu0  ;;  %v5397_v13 = vmul.f32 0.5, %v5333_v15  ;;  %7814 = vtanh.f32 %v5217_v3 }
 0x6a1   :  { %v7807_v9 = vpop.eup %7806  ;;  %v5156_v50 = vadd.f32 %v5092_v30, %v11143_v51  ;;  %v5033_v25 = vmul.f32 %v4969_v16, %v11166_v56  ;;  %v11233_v55 = vpop.f32.mrb[217].mxu0  ;;  %v5457_v44 = vmul.f32 %v5393_v41, %v11070_v47  ;;  %v5400_v52 = vmul.f32 0.5, %v5336_v48 }
 0x6a2   :  { %v5093_v40 = vmul.f32 0.044715, %v5029_v60  ;;  %v5096_v19 = vmul.f32 0.044715, %v5032_v33  ;;  %v5337_v1 = vadd.f32 1.0, %v7807_v9  ;;  %v5538_v7 = vpack.c.bf16 %v11193_v46, %v11139_v24  ;;  %v11238_v12 = vpop.f32.mrb[218].mxu0 }
 0x6a3   :  { %v5220_v18 = vmul.f32 0.7978846, %v5156_v50  ;;  %v5097_v4 = vmul.f32 0.044715, %v5033_v25  ;;  %v7809_v21 = vpop.eup %7808  ;;  %v11241_v0 = vmul.f32 %v5396_v32, %v11076_v11  ;;  %v5461_v58 = vmul.f32 %v5397_v13, %v11081_v31  ;;  %v11246_v5 = vpop.f32.mrb[219].mxu0 }
 0x6a4   :  { %v5157_v10 = vadd.f32 %v5093_v40, %v11147_v39  ;;  %v5160_v47 = vadd.f32 %v5096_v19, %v11163_v54  ;;  %v5340_v37 = vadd.f32 1.0, %v7809_v21  ;;  %5887 = vmatmul.mubr.bf16.gmra.mrb[188].mxu1 %v5538_v7  ;;  %v5513_v24 = vpack.c.bf16 %v5453_v2, %v11206_v49 }
 0x6a5   :  { %7816 = vtanh.f32 %v5220_v18  ;;  %v5161_v53 = vadd.f32 %v5097_v4, %v11166_v56  ;;  %v11251_v46 = vmul.f32 %v5400_v52, %v11100_v27  ;;  %v4972_v31 = vmul.f32 %v11172_v6, %v11172_v6 }
 0x6a6   :  { %v5221_v11 = vmul.f32 0.7978846, %v5157_v10  ;;  %v5224_v38 = vmul.f32 0.7978846, %v5160_v47  ;;  %v5401_v36 = vmul.f32 0.5, %v5337_v1  ;;  %5927 = vmatprep.mubr.bf16.mxu0 %v5513_v24  ;;  %v4973_v63 = vmul.f32 %v11177_v14, %v11177_v14 }
 0x6a7   :  { %v5225_v34 = vmul.f32 0.7978846, %v5161_v53  ;;  %v4976_v23 = vmul.f32 %v11199_v8, %v11199_v8  ;;  %v5036_v49 = vmul.f32 %v4972_v31, %v11172_v6  ;;  %5928 = vmatmul.mubr.bf16.vlgmr.msra.gmra.mrb[224].mxu0 %v5512_v26  ;;  %v4977_v27 = vmul.f32 %v11203_v45, %v11203_v45 }
 0x6a8   :  { %v7811_v41 = vpop.eup %7810  ;;  %7818 = vtanh.f32 %v5221_v11  ;;  %v5517_v2 = vpack.c.bf16 %v5461_v58, %v5457_v44  ;;  %v11265_v16 = vpop.f32.mrb[220].mxu0  ;;  %v5404_v15 = vmul.f32 0.5, %v5340_v37  ;;  %v5037_v30 = vmul.f32 %v4973_v63, %v11177_v14 }
 0x6a9   :  { %v7813_v22 = vpop.eup %7812  ;;  %v5341_v3 = vadd.f32 1.0, %v7811_v41  ;;  %7820 = vtanh.f32 %v5224_v38  ;;  %v11268_v32 = vpop.f32.mrb[221].mxu0  ;;  %v5100_v60 = vmul.f32 0.044715, %v5036_v49  ;;  %v5040_v42 = vmul.f32 %v4976_v23, %v11199_v8 }
 0x6aa   :  { %v5344_v48 = vadd.f32 1.0, %v7813_v22  ;;  %7822 = vtanh.f32 %v5225_v34  ;;  %5935 = vmatprep.mubr.bf16.mxu0 %v5517_v2  ;;  %v11271_v17 = vpop.f32.mrb[222].mxu0  ;;  %v7815_v26 = vpop.eup %7814  ;;  %v5101_v9 = vmul.f32 0.044715, %v5037_v30  ;;  %v5041_v13 = vmul.f32 %v4977_v27, %v11203_v45 }
 0x6ab   :  { %v5405_v33 = vmul.f32 0.5, %v5341_v3  ;;  %v4980_v50 = vmul.f32 %v11211_v43, %v11211_v43  ;;  %v11276_v25 = vpop.f32.mrb[223].mxu0  ;;  %v5465_v44 = vmul.f32 %v5401_v36, %v11103_v57  ;;  %v5345_v52 = vadd.f32 1.0, %v7815_v26 }
 0x6ac   :  { %v5164_v40 = vadd.f32 %v5100_v60, %v11172_v6  ;;  %v5104_v19 = vmul.f32 0.044715, %v5040_v42  ;;  %v5468_v1 = vmul.f32 %v5404_v15, %v11106_v61  ;;  %v5165_v18 = vadd.f32 %v5101_v9, %v11177_v14 }
 0x6ad   :  { %v5105_v4 = vmul.f32 0.044715, %v5041_v13  ;;  %v5044_v7 = vmul.f32 %v4980_v50, %v11211_v43  ;;  %v5469_v21 = vmul.f32 %v5405_v33, %v11108_v20  ;;  %v5408_v58 = vmul.f32 0.5, %v5344_v48 }
 0x6ae   :  { %v5228_v10 = vmul.f32 0.7978846, %v5164_v40  ;;  %v5168_v47 = vadd.f32 %v5104_v19, %v11199_v8  ;;  %v5229_v53 = vmul.f32 0.7978846, %v5165_v18  ;;  %v5516_v11 = vpack.c.bf16 %v11241_v0, %v11223_v35 }
 0x6af   :  { %v7817_v37 = vpop.eup %7816  ;;  %v5169_v57 = vadd.f32 %v5105_v4, %v11203_v45  ;;  %v5108_v24 = vmul.f32 0.044715, %v5044_v7  ;;  %v5409_v61 = vmul.f32 0.5, %v5345_v52  ;;  %v4981_v34 = vmul.f32 %v11220_v28, %v11220_v28 }
 0x6b0   :  { %v5348_v38 = vadd.f32 1.0, %v7817_v37  ;;  %7824 = vtanh.f32 %v5228_v10  ;;  %v5232_v31 = vmul.f32 0.7978846, %v5168_v47  ;;  %5936 = vmatmul.mubr.bf16.gmra.mrb[228].mxu0 %v5516_v11  ;;  %v4984_v41 = vmul.f32 %v11229_v62, %v11229_v62 }
 0x6b1   :  { %7826 = vtanh.f32 %v5229_v53  ;;  %v5233_v36 = vmul.f32 0.7978846, %v5169_v57  ;;  %v5172_v20 = vadd.f32 %v5108_v24, %v11211_v43  ;;  %v4985_v35 = vmul.f32 %v11233_v55, %v11233_v55 }
 0x6b2   :  { %v7819_v63 = vpop.eup %7818  ;;  %v5412_v23 = vmul.f32 0.5, %v5348_v38  ;;  %7828 = vtanh.f32 %v5232_v31  ;;  %v5045_v2 = vmul.f32 %v4981_v34, %v11220_v28  ;;  %v11297_v15 = vmul.f32 %v5408_v58, %v11131_v29 }
 0x6b3   :  { %v7821_v0 = vpop.eup %7820  ;;  %v5349_v49 = vadd.f32 1.0, %v7819_v63  ;;  %7830 = vtanh.f32 %v5233_v36  ;;  %v5236_v27 = vmul.f32 0.7978846, %v5172_v20  ;;  %v5048_v30 = vmul.f32 %v4984_v41, %v11229_v62 }
 0x6b4   :  { %v7823_v22 = vpop.eup %7822  ;;  %v5352_v3 = vadd.f32 1.0, %v7821_v0  ;;  %v5049_v48 = vmul.f32 %v4985_v35, %v11233_v55  ;;  %v5109_v26 = vmul.f32 0.044715, %v5045_v2  ;;  %v11302_v33 = vmul.f32 %v5409_v61, %v11136_v59 }
 0x6b5   :  { %v5413_v60 = vmul.f32 0.5, %v5349_v49  ;;  %v5353_v42 = vadd.f32 1.0, %v7823_v22  ;;  %7832 = vtanh.f32 %v5236_v27  ;;  %v5112_v9 = vmul.f32 0.044715, %v5048_v30 }
 0x6b6   :  { %v5113_v13 = vmul.f32 0.044715, %v5049_v48  ;;  %v5521_v50 = vpack.c.bf16 %v5469_v21, %v5465_v44  ;;  %v11305_v52 = vmul.f32 %v5412_v23, %v11143_v51  ;;  %v5416_v29 = vmul.f32 0.5, %v5352_v3 }
 0x6b7   :  { %v5173_v40 = vadd.f32 %v5109_v26, %v11220_v28  ;;  %v4988_v19 = vmul.f32 %v11238_v12, %v11238_v12  ;;  %v5477_v18 = vmul.f32 %v5413_v60, %v11147_v39  ;;  %v5176_v4 = vadd.f32 %v5112_v9, %v11229_v62 }
 0x6b8   :  { %v5177_v7 = vadd.f32 %v5113_v13, %v11233_v55  ;;  %5943 = vmatprep.mubr.bf16.mxu0 %v5521_v50  ;;  %v5520_v59 = vpack.c.bf16 %v5468_v1, %v11251_v46  ;;  %v5417_v58 = vmul.f32 0.5, %v5353_v42  ;;  %v4989_v21 = vmul.f32 %v11246_v5, %v11246_v5 }
 0x6b9   :  { %v5237_v44 = vmul.f32 0.7978846, %v5173_v40  ;;  %v5052_v51 = vmul.f32 %v4988_v19, %v11238_v12  ;;  %v5240_v47 = vmul.f32 0.7978846, %v5176_v4  ;;  %v4992_v39 = vmul.f32 %v11265_v16, %v11265_v16 }
 0x6ba   :  { %v7825_v10 = vpop.eup %7824  ;;  %v5241_v37 = vmul.f32 0.7978846, %v5177_v7  ;;  %5944 = vmatmul.mubr.bf16.gmra.mrb[232].mxu0 %v5520_v59  ;;  %v4993_v53 = vmul.f32 %v11268_v32, %v11268_v32  ;;  %v5053_v1 = vmul.f32 %v4989_v21, %v11246_v5  ;;  %v11325_v20 = vmul.f32 %v5416_v29, %v11163_v54 }
 0x6bb   :  { %v7827_v57 = vpop.eup %7826  ;;  %v5356_v24 = vadd.f32 1.0, %v7825_v10  ;;  %7834 = vtanh.f32 %v5237_v44  ;;  %v5116_v46 = vmul.f32 0.044715, %v5052_v51  ;;  %v5056_v38 = vmul.f32 %v4992_v39, %v11265_v16 }
 0x6bc   :  { %v7829_v11 = vpop.eup %7828  ;;  %v5357_v61 = vadd.f32 1.0, %v7827_v57  ;;  %7836 = vtanh.f32 %v5240_v47  ;;  %v5057_v31 = vmul.f32 %v4993_v53, %v11268_v32  ;;  %v5117_v35 = vmul.f32 0.044715, %v5053_v1 }
 0x6bd   :  { %v7831_v36 = vpop.eup %7830  ;;  %v5420_v34 = vmul.f32 0.5, %v5356_v24  ;;  %v5360_v63 = vadd.f32 1.0, %v7829_v11  ;;  %v5180_v23 = vadd.f32 %v5116_v46, %v11238_v12  ;;  %7838 = vtanh.f32 %v5241_v37 }
 0x6be   :  { %v5421_v41 = vmul.f32 0.5, %v5357_v61  ;;  %v5120_v0 = vmul.f32 0.044715, %v5056_v38  ;;  %v5481_v27 = vmul.f32 %v5417_v58, %v11166_v56  ;;  %v5121_v3 = vmul.f32 0.044715, %v5057_v31 }
 0x6bf   :  { %v7833_v49 = vpop.eup %7832  ;;  %v5424_v2 = vmul.f32 0.5, %v5360_v63  ;;  %v5244_v22 = vmul.f32 0.7978846, %v5180_v23  ;;  %v5361_v48 = vadd.f32 1.0, %v7831_v36  ;;  %v5181_v54 = vadd.f32 %v5117_v35, %v11246_v5 }
 0x6c0   :  { %v5485_v30 = vmul.f32 %v5421_v41, %v11177_v14  ;;  %v5364_v60 = vadd.f32 1.0, %v7833_v49  ;;  %v5484_v42 = vmul.f32 %v5420_v34, %v11172_v6  ;;  %v5184_v26 = vadd.f32 %v5120_v0, %v11265_v16 }
 0x6c1   :  { %7840 = vtanh.f32 %v5244_v22  ;;  %v5185_v9 = vadd.f32 %v5121_v3, %v11268_v32  ;;  %v5488_v13 = vmul.f32 %v5424_v2, %v11199_v8  ;;  %v5245_v56 = vmul.f32 0.7978846, %v5181_v54 }
 0x6c2   :  { %v5428_v50 = vmul.f32 0.5, %v5364_v60  ;;  %v5525_v29 = vpack.c.bf16 %v5477_v18, %v11302_v33  ;;  %v5248_v40 = vmul.f32 0.7978846, %v5184_v26  ;;  %v4996_v14 = vmul.f32 %v11271_v17, %v11271_v17 }
 0x6c3   :  { %v5249_v19 = vmul.f32 0.7978846, %v5185_v9  ;;  %v5524_v4 = vpack.c.bf16 %v11305_v52, %v11297_v15  ;;  %7842 = vtanh.f32 %v5245_v56  ;;  %v4997_v7 = vmul.f32 %v11276_v25, %v11276_v25 }
 0x6c4   :  { %v5492_v6 = vmul.f32 %v5428_v50, %v11211_v43  ;;  %5951 = vmatprep.mubr.bf16.mxu0 %v5525_v29  ;;  %v5529_v8 = vpack.c.bf16 %v5485_v30, %v5481_v27  ;;  %v5060_v58 = vmul.f32 %v4996_v14, %v11271_v17  ;;  %v5528_v33 = vpack.c.bf16 %v5484_v42, %v11325_v20 }
 0x6c5   :  { %v7835_v59 = vpop.eup %7834  ;;  %5952 = vmatmul.mubr.bf16.gmra.mrb[236].mxu0 %v5524_v4  ;;  %v5425_v44 = vmul.f32 0.5, %v5361_v48  ;;  %v5061_v21 = vmul.f32 %v4997_v7, %v11276_v25  ;;  %7844 = vtanh.f32 %v5248_v40 }
 0x6c6   :  { %v7837_v18 = vpop.eup %7836  ;;  %v5365_v51 = vadd.f32 1.0, %v7835_v59  ;;  %5959 = vmatprep.mubr.bf16.mxu0 %v5529_v8  ;;  %v5532_v15 = vpack.c.bf16 %v5492_v6, %v5488_v13  ;;  %v5124_v43 = vmul.f32 0.044715, %v5060_v58  ;;  %7846 = vtanh.f32 %v5249_v19 }
 0x6c7   :  { %v7839_v52 = vpop.eup %7838  ;;  %v5368_v47 = vadd.f32 1.0, %v7837_v18  ;;  %v5125_v37 = vmul.f32 0.044715, %v5061_v21  ;;  %v5489_v53 = vmul.f32 %v5425_v44, %v11203_v45 }
 0x6c8   :  { %v5429_v10 = vmul.f32 0.5, %v5365_v51  ;;  %v5188_v39 = vadd.f32 %v5124_v43, %v11271_v17  ;;  %v5369_v1 = vadd.f32 1.0, %v7839_v52 }
 0x6c9   :  { %v5189_v24 = vadd.f32 %v5125_v37, %v11276_v25  ;;  %v5432_v61 = vmul.f32 0.5, %v5368_v47 }
 0x6ca   :  { %v5493_v57 = vmul.f32 %v5429_v10, %v11220_v28  ;;  %v5252_v11 = vmul.f32 0.7978846, %v5188_v39  ;;  %v5433_v63 = vmul.f32 0.5, %v5369_v1 }
 0x6cb   :  { %v7841_v46 = vpop.eup %7840  ;;  %v5253_v31 = vmul.f32 0.7978846, %v5189_v24  ;;  %v5496_v45 = vmul.f32 %v5432_v61, %v11229_v62 }
 0x6cc   :  { %v5372_v38 = vadd.f32 1.0, %v7841_v46  ;;  %v5533_v36 = vpack.c.bf16 %v5493_v57, %v5489_v53  ;;  %7848 = vtanh.f32 %v5252_v11  ;;  %v5497_v27 = vmul.f32 %v5433_v63, %v11233_v55 }
 0x6cd   :  { %5960 = vmatmul.mubr.bf16.gmra.mrb[240].mxu0 %v5528_v33  ;;  %v7843_v20 = vpop.eup %7842  ;;  %7850 = vtanh.f32 %v5253_v31 }
 0x6ce   :  { %v5436_v34 = vmul.f32 0.5, %v5372_v38  ;;  %5967 = vmatprep.mubr.bf16.mxu0 %v5533_v36  ;;  %v5373_v23 = vadd.f32 1.0, %v7843_v20 }
 0x6cf   :  { %v7845_v41 = vpop.eup %7844 }
 0x6d0   :  { %v5500_v28 = vmul.f32 %v5436_v34, %v11238_v12  ;;  %v5437_v35 = vmul.f32 0.5, %v5373_v23  ;;  %v7847_v0 = vpop.eup %7846  ;;  %v5376_v22 = vadd.f32 1.0, %v7845_v41 }
 0x6d1   :  { %v5377_v3 = vadd.f32 1.0, %v7847_v0 }
 0x6d2   :  { %v5536_v49 = vpack.c.bf16 %v5500_v28, %v5496_v45  ;;  %v5501_v2 = vmul.f32 %v5437_v35, %v11246_v5  ;;  %v5440_v54 = vmul.f32 0.5, %v5376_v22 }
 0x6d3   :  { %v5441_v62 = vmul.f32 0.5, %v5377_v3 }
 0x6d4   :  { %v5537_v30 = vpack.c.bf16 %v5501_v2, %v5497_v27  ;;  %v5504_v13 = vmul.f32 %v5440_v54, %v11265_v16 }
 0x6d5   :  { %5968 = vmatmul.mubr.bf16.gmra.mrb[244].mxu0 %v5532_v15  ;;  %v5505_v55 = vmul.f32 %v5441_v62, %v11268_v32 }
 0x6d6   :  { %v7849_v48 = vpop.eup %7848  ;;  %5975 = vmatprep.mubr.bf16.mxu0 %v5537_v30 }
 0x6d7   :  { %v7851_v60 = vpop.eup %7850  ;;  %v5380_v42 = vadd.f32 1.0, %v7849_v48 }
 0x6d8   :  { %v5381_v26 = vadd.f32 1.0, %v7851_v60 }
 0x6d9   :  { %v5444_v12 = vmul.f32 0.5, %v5380_v42 }
 0x6da   :  { %v5445_v9 = vmul.f32 0.5, %v5381_v26 }
 0x6db   :  { %v5508_v50 = vmul.f32 %v5444_v12, %v11271_v17 }
 0x6dc   :  { %v5509_v5 = vmul.f32 %v5445_v9, %v11276_v25 }
 0x6dd   :  { %5976 = vmatmul.mubr.bf16.gmra.mrb[248].mxu0 %v5536_v49  ;;  %v5540_v56 = vpack.c.bf16 %v5508_v50, %v5504_v13 }
 0x6de   :  { %v5541_v29 = vpack.c.bf16 %v5509_v5, %v5505_v55 }
 0x6e0   :  { %5983 = vmatprep.mubr.bf16.mxu0 %v5541_v29 }
 0x6e5   :  { %5984 = vmatmul.mubr.bf16.gmra.mrb[252].mxu0 %v5540_v56 }
 0x70c   :  { %v7224_v40 = vpop.f32.mrb[144].mxu1 }
 0x70d   :  { %v4429_v19 = vpop.f32.mrb[145].mxu1 }
 0x70e   :  { %v7225_v14 = vpop.f32.mrb[146].mxu1 }
 0x70f   :  { %v4432_v4 = vpop.f32.mrb[147].mxu1 }
 0x714   :  { %v7228_v6 = vpop.f32.mrb[148].mxu1 }
 0x715   :  { %v4445_v7 = vpop.f32.mrb[149].mxu1 }
 0x716   :  { %v7229_v8 = vpop.f32.mrb[150].mxu1 }
 0x717   :  { %v4448_v59 = vpop.f32.mrb[151].mxu1 }
 0x71c   :  { %v7232_v16 = vpop.f32.mrb[152].mxu1 }
 0x71d   :  { %v4461_v58 = vpop.f32.mrb[153].mxu1 }
 0x71e   :  { %v7233_v17 = vpop.f32.mrb[154].mxu1 }
 0x71f   :  { %v4464_v33 = vpop.f32.mrb[155].mxu1 }
 0x724   :  { %v11358_v32 = vpop.f32.mrb[156].mxu1 }
 0x725   :  { %v4477_v25 = vpop.f32.mrb[157].mxu1 }
 0x726   :  { %v11360_v18 = vpop.f32.mrb[158].mxu1 }
 0x727   :  { %v4480_v44 = vpop.f32.mrb[159].mxu1 }
 0x72c   :  { %v6606_v51 = vpop.f32.mrb[160].mxu1 }
 0x72d   :  { %v6607_v21 = vpop.f32.mrb[161].mxu1 }
 0x72e   :  { %v6608_v15 = vadd.f32 %v6607_v21, %v6606_v51  ;;  %v6609_v43 = vpop.f32.mrb[162].mxu1 }
 0x72f   :  { %v6610_v52 = vpop.f32.mrb[163].mxu1 }
 0x730   :  { %v11362_v10 = vadd.f32 %v6608_v15, %v4429_v19  ;;  %v6611_v47 = vadd.f32 %v6610_v52, %v6609_v43 }
 0x732   :  { %v11364_v37 = vadd.f32 %v6611_v47, %v4432_v4 }
 0x73d   :  { %v6612_v39 = vpop.f32.mrb[164].mxu1 }
 0x73e   :  { %v6613_v53 = vpop.f32.mrb[165].mxu1 }
 0x73f   :  { %v6614_v57 = vadd.f32 %v6613_v53, %v6612_v39  ;;  %v6615_v24 = vpop.f32.mrb[166].mxu1 }
 0x740   :  { %v6616_v46 = vpop.f32.mrb[167].mxu1 }
 0x741   :  { %v11366_v1 = vadd.f32 %v7224_v40, %v6614_v57  ;;  %v6617_v11 = vadd.f32 %v6616_v46, %v6615_v24  ;;  %v7852_v24 = vld [vmem:[%s11558_s23] sm:$0xff] }
 0x743   :  { %v11368_v61 = vadd.f32 %v7225_v14, %v6617_v11 }
 0x746   :  { %v6618_v38 = vpop.f32.mrb[168].mxu1 }
 0x747   :  { %v6619_v31 = vpop.f32.mrb[169].mxu1 }
 0x748   :  { %v6620_v36 = vadd.f32 %v6619_v31, %v6618_v38  ;;  %v6621_v20 = vpop.f32.mrb[170].mxu1 }
 0x749   :  { %v6622_v34 = vpop.f32.mrb[171].mxu1 }
 0x74a   :  { %v11370_v63 = vadd.f32 %v6620_v36, %v4445_v7  ;;  %v6623_v23 = vadd.f32 %v6622_v34, %v6621_v20 }
 0x74c   :  { %v11372_v45 = vadd.f32 %v6623_v23, %v4448_v59 }
 0x74f   :  { %v6624_v28 = vpop.f32.mrb[172].mxu1 }
 0x750   :  { %v6625_v41 = vpop.f32.mrb[173].mxu1 }
 0x751   :  { %v6626_v35 = vadd.f32 %v6625_v41, %v6624_v28  ;;  %v6627_v0 = vpop.f32.mrb[174].mxu1  ;;  %v7854_v28 = vld [vmem:[%s11558_s23 + $0x10] sm:$0xff] }
 0x752   :  { %v6628_v49 = vpop.f32.mrb[175].mxu1 }
 0x753   :  { %v11374_v27 = vadd.f32 %v7228_v6, %v6626_v35  ;;  %v6629_v2 = vadd.f32 %v6628_v49, %v6627_v0  ;;  %v7855_v35 = vld [vmem:[%s11558_s23 + $0x18] sm:$0xff] }
 0x755   :  { %v11376_v22 = vadd.f32 %v7229_v8, %v6629_v2 }
 0x75a   :  { %v6630_v3 = vpop.f32.mrb[176].mxu1 }
 0x75b   :  { %v6631_v30 = vpop.f32.mrb[177].mxu1 }
 0x75c   :  { %v6632_v48 = vadd.f32 %v6631_v30, %v6630_v3  ;;  %v6633_v60 = vpop.f32.mrb[178].mxu1 }
 0x75d   :  { %v6634_v54 = vpop.f32.mrb[179].mxu1 }
 0x75e   :  { %v11378_v42 = vadd.f32 %v6632_v48, %v4461_v58  ;;  %v6635_v62 = vadd.f32 %v6634_v54, %v6633_v60  ;;  %v7856_v54 = vld [vmem:[%s11558_s23 + $0x20] sm:$0xff] }
 0x760   :  { %v11380_v26 = vadd.f32 %v6635_v62, %v4464_v33 }
 0x762   :  { %v6636_v12 = vpop.f32.mrb[180].mxu1 }
 0x763   :  { %v6637_v9 = vpop.f32.mrb[181].mxu1 }
 0x764   :  { %v6638_v13 = vadd.f32 %v6637_v9, %v6636_v12  ;;  %v6639_v50 = vpop.f32.mrb[182].mxu1  ;;  %v7857_v12 = vld [vmem:[%s11558_s23 + $0x28] sm:$0xff] }
 0x765   :  { %v6640_v55 = vpop.f32.mrb[183].mxu1 }
 0x766   :  { %v11382_v5 = vadd.f32 %v7232_v16, %v6638_v13  ;;  %v6641_v56 = vadd.f32 %v6640_v55, %v6639_v50 }
 0x768   :  { %v11384_v29 = vadd.f32 %v7233_v17, %v6641_v56 }
 0x76d   :  { %v6642_v40 = vpop.f32.mrb[184].mxu1 }
 0x76e   :  { %v6643_v19 = vpop.f32.mrb[185].mxu1 }
 0x76f   :  { %v6644_v14 = vadd.f32 %v6643_v19, %v6642_v40  ;;  %v6645_v4 = vpop.f32.mrb[186].mxu1 }
 0x770   :  { %v6646_v6 = vpop.f32.mrb[187].mxu1 }
 0x771   :  { %v11386_v7 = vadd.f32 %v6644_v14, %v4477_v25  ;;  %v6647_v8 = vadd.f32 %v6646_v6, %v6645_v4  ;;  %v7858_v14 = vld [vmem:[%s11558_s23 + $0x30] sm:$0xff]  ;;  %v7859_v6 = vld [vmem:[%s11558_s23 + $0x38] sm:$0xff] }
 0x773   :  { %v11388_v59 = vadd.f32 %v6647_v8, %v4480_v44 }
 0x777   :  { %v6648_v58 = vpop.f32.mrb[188].mxu1 }
 0x778   :  { %v6649_v33 = vpop.f32.mrb[189].mxu1 }
 0x779   :  { %v6650_v51 = vadd.f32 %v6649_v33, %v6648_v58  ;;  %v6651_v21 = vpop.f32.mrb[190].mxu1 }
 0x77a   :  { %v6670_v15 = vpop.f32.mrb[224].mxu0  ;;  %v6652_v16 = vpop.f32.mrb[191].mxu1 }
 0x77b   :  { %v11391_v43 = vadd.f32 %v11358_v32, %v6650_v51  ;;  %v6671_v17 = vpop.f32.mrb[225].mxu0  ;;  %v6653_v52 = vadd.f32 %v6652_v16, %v6651_v21  ;;  %v7853_v32 = vld [vmem:[%s11558_s23 + $0x8] sm:$0xff] }
 0x77c   :  { %v6672_v47 = vadd.f32 %v6671_v17, %v6670_v15  ;;  %v6673_v39 = vpop.f32.mrb[226].mxu0  ;;  %v7860_v17 = vld [vmem:[%s11558_s23 + $0x40] sm:$0xff] }
 0x77d   :  { %v11394_v53 = vadd.f32 %v11360_v18, %v6653_v52  ;;  %v6674_v25 = vpop.f32.mrb[227].mxu0 }
 0x77e   :  { %v5930_v44 = vadd.f32 %v6672_v47, %v11362_v10  ;;  %v6675_v57 = vadd.f32 %v6674_v25, %v6673_v39  ;;  %v7861_v47 = vld [vmem:[%s11558_s23 + $0x48] sm:$0xff] }
 0x780   :  { %v5992_v46 = vadd.f32 %v7852_v24, %v5930_v44  ;;  %v5933_v11 = vadd.f32 %v6675_v57, %v11364_v37 }
 0x782   :  { %6008 = vst [vmem:[#allocation2] sm:$0xff] %v5992_v46  ;;  %v5993_v38 = vadd.f32 %v7853_v32, %v5933_v11  ;;  %v7862_v32 = vld [vmem:[%s11558_s23 + $0x50] sm:$0xff] }
 0x783   :  { %v6676_v31 = vpop.f32.mrb[228].mxu0 }
 0x784   :  { %6009 = vst [vmem:[#allocation2 + $0x8] sm:$0xff] %v5993_v38  ;;  %v6677_v18 = vpop.f32.mrb[229].mxu0 }
 0x785   :  { %v6678_v36 = vadd.f32 %v6677_v18, %v6676_v31  ;;  %v6679_v20 = vpop.f32.mrb[230].mxu0  ;;  %v7863_v31 = vld [vmem:[%s11558_s23 + $0x58] sm:$0xff] }
 0x786   :  { %v6680_v10 = vpop.f32.mrb[231].mxu0 }
 0x787   :  { %v5938_v34 = vadd.f32 %v6678_v36, %v11366_v1  ;;  %v6681_v23 = vadd.f32 %v6680_v10, %v6679_v20 }
 0x789   :  { %v5994_v37 = vadd.f32 %v7854_v28, %v5938_v34  ;;  %v5941_v41 = vadd.f32 %v6681_v23, %v11368_v61 }
 0x78b   :  { %6010 = vst [vmem:[#allocation2 + $0x10] sm:$0xff] %v5994_v37  ;;  %v5995_v0 = vadd.f32 %v7855_v35, %v5941_v41  ;;  %v7864_v37 = vld [vmem:[%s11558_s23 + $0x60] sm:$0xff]  ;;  %v7865_v35 = vld [vmem:[%s11558_s23 + $0x68] sm:$0xff] }
 0x78d   :  { %v6682_v49 = vpop.f32.mrb[232].mxu0  ;;  %6011 = vst [vmem:[#allocation2 + $0x18] sm:$0xff] %v5995_v0 }
 0x78e   :  { %v6683_v2 = vpop.f32.mrb[233].mxu0 }
 0x78f   :  { %v6684_v3 = vadd.f32 %v6683_v2, %v6682_v49  ;;  %v6685_v30 = vpop.f32.mrb[234].mxu0 }
 0x790   :  { %v6686_v1 = vpop.f32.mrb[235].mxu0 }
 0x791   :  { %v5946_v48 = vadd.f32 %v6684_v3, %v11370_v63  ;;  %v6687_v60 = vadd.f32 %v6686_v1, %v6685_v30 }
 0x793   :  { %v5996_v61 = vadd.f32 %v7856_v54, %v5946_v48  ;;  %v5949_v62 = vadd.f32 %v6687_v60, %v11372_v45 }
 0x795   :  { %6012 = vst [vmem:[#allocation2 + $0x20] sm:$0xff] %v5996_v61  ;;  %v5997_v9 = vadd.f32 %v7857_v12, %v5949_v62  ;;  %v7867_v61 = vld [vmem:[%s11558_s23 + $0x78] sm:$0xff] }
 0x797   :  { %6013 = vst [vmem:[#allocation2 + $0x28] sm:$0xff] %v5997_v9 }
 0x798   :  { %v6688_v13 = vpop.f32.mrb[236].mxu0 }
 0x799   :  { %v6689_v50 = vpop.f32.mrb[237].mxu0 }
 0x79a   :  { %v6690_v55 = vadd.f32 %v6689_v50, %v6688_v13  ;;  %v6691_v56 = vpop.f32.mrb[238].mxu0 }
 0x79b   :  { %v6692_v63 = vpop.f32.mrb[239].mxu0 }
 0x79c   :  { %v5954_v40 = vadd.f32 %v6690_v55, %v11374_v27  ;;  %v6693_v19 = vadd.f32 %v6692_v63, %v6691_v56 }
 0x79e   :  { %v5998_v45 = vadd.f32 %v7858_v14, %v5954_v40  ;;  %v5957_v4 = vadd.f32 %v6693_v19, %v11376_v22 }
 0x7a0   :  { %6014 = vst [vmem:[#allocation2 + $0x30] sm:$0xff] %v5998_v45  ;;  %v5999_v8 = vadd.f32 %v7859_v6, %v5957_v4  ;;  %v6694_v58 = vpop.f32.mrb[240].mxu0 }
 0x7a1   :  { %v6695_v33 = vpop.f32.mrb[241].mxu0 }
 0x7a2   :  { %6015 = vst [vmem:[#allocation2 + $0x38] sm:$0xff] %v5999_v8  ;;  %v6696_v51 = vadd.f32 %v6695_v33, %v6694_v58  ;;  %v6697_v21 = vpop.f32.mrb[242].mxu0 }
 0x7a3   :  { %v6698_v27 = vpop.f32.mrb[243].mxu0 }
 0x7a4   :  { %v5962_v15 = vadd.f32 %v6696_v51, %v11378_v42  ;;  %v6699_v16 = vadd.f32 %v6698_v27, %v6697_v21 }
 0x7a6   :  { %v6000_v22 = vadd.f32 %v7860_v17, %v5962_v15  ;;  %v5965_v52 = vadd.f32 %v6699_v16, %v11380_v26 }
 0x7a8   :  { %6016 = vst [vmem:[#allocation2 + $0x40] sm:$0xff] %v6000_v22  ;;  %v6001_v39 = vadd.f32 %v7861_v47, %v5965_v52  ;;  %v6700_v25 = vpop.f32.mrb[244].mxu0 }
 0x7a9   :  { %v6701_v44 = vpop.f32.mrb[245].mxu0 }
 0x7aa   :  { %6017 = vst [vmem:[#allocation2 + $0x48] sm:$0xff] %v6001_v39  ;;  %v6702_v57 = vadd.f32 %v6701_v44, %v6700_v25  ;;  %v6703_v24 = vpop.f32.mrb[246].mxu0 }
 0x7ab   :  { %v6704_v42 = vpop.f32.mrb[247].mxu0 }
 0x7ac   :  { %v5970_v46 = vadd.f32 %v6702_v57, %v11382_v5  ;;  %v6705_v11 = vadd.f32 %v6704_v42, %v6703_v24 }
 0x7ae   :  { %v6002_v26 = vadd.f32 %v7862_v32, %v5970_v46  ;;  %v5973_v38 = vadd.f32 %v6705_v11, %v11384_v29 }
 0x7b0   :  { %6018 = vst [vmem:[#allocation2 + $0x50] sm:$0xff] %v6002_v26  ;;  %v6003_v18 = vadd.f32 %v7863_v31, %v5973_v38  ;;  %v6706_v36 = vpop.f32.mrb[248].mxu0 }
 0x7b1   :  { %v6707_v20 = vpop.f32.mrb[249].mxu0 }
 0x7b2   :  { %6019 = vst [vmem:[#allocation2 + $0x58] sm:$0xff] %v6003_v18  ;;  %v6708_v10 = vadd.f32 %v6707_v20, %v6706_v36  ;;  %v6709_v34 = vpop.f32.mrb[250].mxu0 }
 0x7b3   :  { %v6710_v5 = vpop.f32.mrb[251].mxu0 }
 0x7b4   :  { %v5978_v23 = vadd.f32 %v6708_v10, %v11386_v7  ;;  %v6711_v28 = vadd.f32 %v6710_v5, %v6709_v34 }
 0x7b6   :  { %v6004_v29 = vadd.f32 %v7864_v37, %v5978_v23  ;;  %v5981_v41 = vadd.f32 %v6711_v28, %v11388_v59  ;;  %v7866_v59 = vld [vmem:[%s11558_s23 + $0x70] sm:$0xff] }
 0x7b8   :  { %6020 = vst [vmem:[#allocation2 + $0x60] sm:$0xff] %v6004_v29  ;;  %v6005_v0 = vadd.f32 %v7865_v35, %v5981_v41  ;;  %v6712_v49 = vpop.f32.mrb[252].mxu0 }
 0x7b9   :  { %v6713_v2 = vpop.f32.mrb[253].mxu0 }
 0x7ba   :  { %6021 = vst [vmem:[#allocation2 + $0x68] sm:$0xff] %v6005_v0  ;;  %v6714_v3 = vadd.f32 %v6713_v2, %v6712_v49  ;;  %v6715_v30 = vpop.f32.mrb[254].mxu0 }
 0x7bb   :  { %v6716_v7 = vpop.f32.mrb[255].mxu0 }
 0x7bc   :  { %v5986_v1 = vadd.f32 %v6714_v3, %v11391_v43  ;;  %v6717_v48 = vadd.f32 %v6716_v7, %v6715_v30 }
 0x7be   :  { %v6006_v60 = vadd.f32 %v7866_v59, %v5986_v1  ;;  %v5989_v54 = vadd.f32 %v6717_v48, %v11394_v53 }
 0x7c0   :  { %6022 = vst [vmem:[#allocation2 + $0x70] sm:$0xff] %v6006_v60  ;;  %v6007_v62 = vadd.f32 %v7867_v61, %v5989_v54 }
 0x7c2   :  { %6023 = vst [vmem:[#allocation2 + $0x78] sm:$0xff] %v6007_v62 }
 0x7c3   :  { %7879 = shalt.err (!%p7876_p4)
}
 0x7c4   :  { %s7880_s8 = scalar_lea.hbm %s11488_s16, 2048 }
 0x7c5   :  { %p7881_p5 = scmp.ne.s32.totalorder %s11488_s16, %s7880_s8  ;;  %p7884_p6 = scmp.lt.u32.totalorder %s7880_s8, %s11488_s16 }
 0x7c7   :  { %p7886_p7 = pnand %p7884_p6, %p7881_p5 }
 0x7c9   :  { %7889 = shalt.err (!%p7886_p7)
}
 0x7ca   :  { %s7894_s7 = smov 128   ;;  %s7895_s13 = smov 8  }
 0x7cb   :  { %6035 = dma.vmem_to_hbm [thread:$0]  %s6030_s15, 2048, %s11488_s16, [#allocation3], %s7894_s7, %s7894_s7, %s7895_s13  }
 0x7cc   :  { %7890 = dma.done.wait [#allocation3], 2048  }
 0x7cd   :  { %7891 = vsyncadd [#allocation3], 4294965248 }
 0x7ce   :  { %6039 = vsyncpa [#allocation3], 1 }

</bundles_post_ra>
